<compile_context>
chip_gen: v5e
topology: v5e:2x2
jax: 0.10.0
libtpu: 0.0.40
codegen_flags: <defaults>
</compile_context>

<pallas_src>
import jax
import jax.numpy as jnp
from jax import lax
from jax.experimental import pallas as pl
from jax.experimental.pallas import tpu as pltpu


# ----------------------------------------------------------------------------
# Pallas kernel: projectors + score einsums + softmax-diag NLL losses
# ----------------------------------------------------------------------------
def pair_clip_si_kernel(
    si_pair_ref,  # (2B, 512) bf16 : rows [0:B] = si_global, [B:2B] = si_local
    stv_ref,      # (B, 512)  bf16
    txt_ref,      # (B, 768)  bf16
    wsi1_ref,     # (512, 512) bf16  projector_si[0].weight.T   (in, out)
    wsi2_ref,     # (512, 64)  bf16  projector_si[2].weight.T
    wsv1_ref,     # (512, 512) bf16  projector_sv[0].weight.T
    wsv2_ref,     # (512, 64)  bf16  projector_sv[2].weight.T
    wt1_ref,      # (768, 768) bf16  projector_TEXT[0].weight.T
    wt2_ref,      # (768, 64)  bf16  projector_TEXT[2].weight.T
    out_ref,      # (4,) f32 SMEM: [loss_1, loss_2, loss2_1, loss2_2]
):
    def project(x, w1, w2):
        # nn.Sequential(Linear(no bias), ReLU, Linear(no bias)) with weights
        # already in (in, out) layout -> plain MXU matmuls, f32 accumulation.
        h = jnp.dot(x, w1, preferred_element_type=jnp.float32)
        h = jnp.maximum(h, 0.0).astype(jnp.bfloat16)
        return jnp.dot(h, w2, preferred_element_type=jnp.float32)

    B = stv_ref.shape[0]

    # Fused si_global / si_local projection (single M=2B matmul pair).
    si_feat = project(si_pair_ref[...], wsi1_ref[...], wsi2_ref[...])  # (2B,64)
    si_g_feat = si_feat[:B]                                            # (B, 64)
    si_l_feat = si_feat[B:]                                            # (B, 64)

    stv_feat = project(stv_ref[...], wsv1_ref[...], wsv2_ref[...])     # (B, 64)
    txt_feat = project(txt_ref[...], wt1_ref[...], wt2_ref[...])       # (B, 64)

    # Identity mask for diagonal extraction — built once, reused for both pairs.
    eye = (lax.broadcasted_iota(jnp.int32, (B, B), 0)
           == lax.broadcasted_iota(jnp.int32, (B, B), 1))

    def pair_losses(a, b):
        # score[i, j] = <a_i, b_j>   ==  torch.einsum('ai,ci->ac', a, b)
        score = lax.dot_general(a, b, (((1,), (1,)), ((), ())),
                                preferred_element_type=jnp.float32)    # (B, B)

        masked = jnp.where(eye, score, 0.0)
        diag_r = jnp.sum(masked, axis=1, keepdims=True)   # (B, 1): s_ii
        diag_c = jnp.sum(masked, axis=0, keepdims=True)   # (1, B): s_jj

        # diag(softmax(score, dim=1)): p_i = exp(s_ii - rowmax_i) / rowsum_i
        rmax = jnp.max(score, axis=1, keepdims=True)
        rsum = jnp.sum(jnp.exp(score - rmax), axis=1, keepdims=True)
        p_row = jnp.exp(diag_r - rmax) / rsum             # (B, 1)

        # diag(softmax(score, dim=0)): p_j = exp(s_jj - colmax_j) / colsum_j
        cmax = jnp.max(score, axis=0, keepdims=True)
        csum = jnp.sum(jnp.exp(score - cmax), axis=0, keepdims=True)
        p_col = jnp.exp(diag_c - cmax) / csum             # (1, B)

        l_row = -jnp.sum(jnp.log(p_row + 1e-10))
        l_col = -jnp.sum(jnp.log(p_col + 1e-10))
        return l_row, l_col

    loss_1, loss_2 = pair_losses(si_g_feat, txt_feat)
    loss2_1, loss2_2 = pair_losses(si_l_feat, stv_feat)

    out_ref[0] = loss_1
    out_ref[1] = loss_2
    out_ref[2] = loss2_1
    out_ref[3] = loss2_2


# ----------------------------------------------------------------------------
# Wrapper
# ----------------------------------------------------------------------------
def pair_clip_si_forward(si_global, si_local, stv, text_cls, params):
    """Returns (loss_1, loss_2, loss2_1, loss2_2) as float32 scalars."""
    # Pre-transpose weights to (in, out) and cast to bf16 OUTSIDE the kernel.
    prep = lambda w: w.T.astype(jnp.bfloat16)
    wsi1, wsi2 = prep(params["wsi1"]), prep(params["wsi2"])
    wsv1, wsv2 = prep(params["wsv1"]), prep(params["wsv2"])
    wt1, wt2 = prep(params["wt1"]), prep(params["wt2"])

    # Fuse the two projector_si inputs along batch; cast activations to bf16.
    si_pair = jnp.concatenate([si_global, si_local], axis=0).astype(jnp.bfloat16)
    stv_b = stv.astype(jnp.bfloat16)
    txt_b = text_cls.astype(jnp.bfloat16)

    vmem = pl.BlockSpec(memory_space=pltpu.MemorySpace.VMEM)
    out = pl.pallas_call(
        pair_clip_si_kernel,
        out_shape=jax.ShapeDtypeStruct((4,), jnp.float32),
        in_specs=[vmem] * 9,
        out_specs=pl.BlockSpec(memory_space=pltpu.MemorySpace.SMEM),
    )(si_pair, stv_b, txt_b, wsi1, wsi2, wsv1, wsv2, wt1, wt2)
    return out[0], out[1], out[2], out[3]


def xavier_normal(key, out_f, in_f):
    # torch.nn.init.xavier_normal_: std = sqrt(2 / (fan_in + fan_out))
    std = (2.0 / (in_f + out_f)) ** 0.5
    return std * jax.random.normal(key, (out_f, in_f), dtype=jnp.float32)


def reference_forward(si_global, si_local, stv, text_cls, p):
    # Mirrors the kernel's precision (bf16 operands, f32 accumulation) so the
    # correctness check stays at a tight tolerance.
    def project(x, w1t, w2t):
        h = jnp.dot(x.astype(jnp.bfloat16), w1t, preferred_element_type=jnp.float32)
        h = jnp.maximum(h, 0.0).astype(jnp.bfloat16)
        return jnp.dot(h, w2t, preferred_element_type=jnp.float32)

    w = {k: v.T.astype(jnp.bfloat16) for k, v in p.items()}
    a = project(si_global, w["wsi1"], w["wsi2"])
    b = project(si_local, w["wsi1"], w["wsi2"])
    c = project(stv, w["wsv1"], w["wsv2"])
    d = project(text_cls, w["wt1"], w["wt2"])

    def losses(x, y):
        s = jnp.einsum("ai,ci->ac", x, y, precision=lax.Precision.HIGHEST)
        l1 = -jnp.sum(jnp.log(jnp.diag(jax.nn.softmax(s, axis=1)) + 1e-10))
        l2 = -jnp.sum(jnp.log(jnp.diag(jax.nn.softmax(s, axis=0)) + 1e-10))
        return l1, l2

    r1, r2 = losses(a, d)
    r3, r4 = losses(b, c)
    return r1, r2, r3, r4


if __name__ == "__main__":
    key = jax.random.PRNGKey(0)
    ks = jax.random.split(key, 10)

    B = 8          # batch (sublane-aligned so the fused si split is free)
    D_IMG = 512    # CLIP ViT-B/32 embed dim
    D_TXT = 768    # BERT-base hidden dim
    D_PROJ = 64

    # Pre-encoded features standing in for the CLIP / BERT encoder outputs.
    si_global = jax.random.normal(ks[0], (B, D_IMG), dtype=jnp.float32)
    si_local = jax.random.normal(ks[1], (B, D_IMG), dtype=jnp.float32)
    stv = jax.random.normal(ks[2], (B, D_IMG), dtype=jnp.float32)
    text_cls = jax.random.normal(ks[3], (B, D_TXT), dtype=jnp.float32)

    params = {
        "wsi1": xavier_normal(ks[4], D_IMG, D_IMG),
        "wsi2": xavier_normal(ks[5], D_PROJ, D_IMG),
        "wsv1": xavier_normal(ks[6], D_IMG, D_IMG),
        "wsv2": xavier_normal(ks[7], D_PROJ, D_IMG),
        "wt1": xavier_normal(ks[8], D_TXT, D_TXT),
        "wt2": xavier_normal(ks[9], D_PROJ, D_TXT),
    }

    fwd = jax.jit(pair_clip_si_forward)
    losses = fwd(si_global, si_local, stv, text_cls, params)
    losses = jax.block_until_ready(losses)

    ref = reference_forward(si_global, si_local, stv, text_cls, params)
    for got, want in zip(losses, ref):
        assert jnp.allclose(got, want, rtol=1e-3, atol=1e-3), (got, want)

    print("KERNEL_OK")
</pallas_src>

<mosaic_0001>
module attributes {stable_mosaic.version = 11 : i64} {
  func.func @pair_clip_si_kernel(%arg0: memref<16x512xbf16, #tpu.memory_space<vmem>>, %arg1: memref<8x512xbf16, #tpu.memory_space<vmem>>, %arg2: memref<8x768xbf16, #tpu.memory_space<vmem>>, %arg3: memref<512x512xbf16, #tpu.memory_space<vmem>>, %arg4: memref<512x64xbf16, #tpu.memory_space<vmem>>, %arg5: memref<512x512xbf16, #tpu.memory_space<vmem>>, %arg6: memref<512x64xbf16, #tpu.memory_space<vmem>>, %arg7: memref<768x768xbf16, #tpu.memory_space<vmem>>, %arg8: memref<768x64xbf16, #tpu.memory_space<vmem>>, %arg9: memref<4xf32, #tpu.memory_space<smem>>) attributes {dimension_semantics = [], scalar_prefetch = 0 : i64, scratch_operands = 0 : i64, tpu.core_type = #tpu.core_type<tc>} {
    %c0 = arith.constant 0 : index
    %c0_0 = arith.constant 0 : index
    %0 = vector.load %arg0[%c0, %c0_0] : memref<16x512xbf16, #tpu.memory_space<vmem>>, vector<16x512xbf16>
    %c0_1 = arith.constant 0 : index
    %c0_2 = arith.constant 0 : index
    %1 = vector.load %arg3[%c0_1, %c0_2] : memref<512x512xbf16, #tpu.memory_space<vmem>>, vector<512x512xbf16>
    %c0_3 = arith.constant 0 : index
    %c0_4 = arith.constant 0 : index
    %2 = vector.load %arg4[%c0_3, %c0_4] : memref<512x64xbf16, #tpu.memory_space<vmem>>, vector<512x64xbf16>
    %cst = arith.constant dense<0.000000e+00> : vector<16x512xf32>
    %3 = tpu.matmul %0, %1, %cst {dimension_numbers = #tpu.dot_dimension_numbers<[1], [0], [0], [1], [0, 0, 1, 1], [], []>} : vector<16x512xbf16>, vector<512x512xbf16>, vector<16x512xf32> -> vector<16x512xf32>
    %cst_5 = arith.constant 0.000000e+00 : f32
    %4 = vector.broadcast %cst_5 : f32 to vector<16x512xf32>
    %5 = arith.maximumf %3, %4 : vector<16x512xf32>
    %6 = arith.truncf %5 : vector<16x512xf32> to vector<16x512xbf16>
    %cst_6 = arith.constant dense<0.000000e+00> : vector<16x64xf32>
    %7 = tpu.matmul %6, %2, %cst_6 {dimension_numbers = #tpu.dot_dimension_numbers<[1], [0], [0], [1], [0, 0, 1, 1], [], []>} : vector<16x512xbf16>, vector<512x64xbf16>, vector<16x64xf32> -> vector<16x64xf32>
    %8 = vector.extract_strided_slice %7 {offsets = [0, 0], sizes = [8, 64], strides = [1, 1]} : vector<16x64xf32> to vector<8x64xf32>
    %9 = vector.extract_strided_slice %7 {offsets = [8, 0], sizes = [8, 64], strides = [1, 1]} : vector<16x64xf32> to vector<8x64xf32>
    %c0_7 = arith.constant 0 : index
    %c0_8 = arith.constant 0 : index
    %10 = vector.load %arg1[%c0_7, %c0_8] : memref<8x512xbf16, #tpu.memory_space<vmem>>, vector<8x512xbf16>
    %c0_9 = arith.constant 0 : index
    %c0_10 = arith.constant 0 : index
    %11 = vector.load %arg5[%c0_9, %c0_10] : memref<512x512xbf16, #tpu.memory_space<vmem>>, vector<512x512xbf16>
    %c0_11 = arith.constant 0 : index
    %c0_12 = arith.constant 0 : index
    %12 = vector.load %arg6[%c0_11, %c0_12] : memref<512x64xbf16, #tpu.memory_space<vmem>>, vector<512x64xbf16>
    %cst_13 = arith.constant dense<0.000000e+00> : vector<8x512xf32>
    %13 = tpu.matmul %10, %11, %cst_13 {dimension_numbers = #tpu.dot_dimension_numbers<[1], [0], [0], [1], [0, 0, 1, 1], [], []>} : vector<8x512xbf16>, vector<512x512xbf16>, vector<8x512xf32> -> vector<8x512xf32>
    %cst_14 = arith.constant 0.000000e+00 : f32
    %14 = vector.broadcast %cst_14 : f32 to vector<8x512xf32>
    %15 = arith.maximumf %13, %14 : vector<8x512xf32>
    %16 = arith.truncf %15 : vector<8x512xf32> to vector<8x512xbf16>
    %cst_15 = arith.constant dense<0.000000e+00> : vector<8x64xf32>
    %17 = tpu.matmul %16, %12, %cst_15 {dimension_numbers = #tpu.dot_dimension_numbers<[1], [0], [0], [1], [0, 0, 1, 1], [], []>} : vector<8x512xbf16>, vector<512x64xbf16>, vector<8x64xf32> -> vector<8x64xf32>
    %c0_16 = arith.constant 0 : index
    %c0_17 = arith.constant 0 : index
    %18 = vector.load %arg2[%c0_16, %c0_17] : memref<8x768xbf16, #tpu.memory_space<vmem>>, vector<8x768xbf16>
    %c0_18 = arith.constant 0 : index
    %c0_19 = arith.constant 0 : index
    %19 = vector.load %arg7[%c0_18, %c0_19] : memref<768x768xbf16, #tpu.memory_space<vmem>>, vector<768x768xbf16>
    %c0_20 = arith.constant 0 : index
    %c0_21 = arith.constant 0 : index
    %20 = vector.load %arg8[%c0_20, %c0_21] : memref<768x64xbf16, #tpu.memory_space<vmem>>, vector<768x64xbf16>
    %cst_22 = arith.constant dense<0.000000e+00> : vector<8x768xf32>
    %21 = tpu.matmul %18, %19, %cst_22 {dimension_numbers = #tpu.dot_dimension_numbers<[1], [0], [0], [1], [0, 0, 1, 1], [], []>} : vector<8x768xbf16>, vector<768x768xbf16>, vector<8x768xf32> -> vector<8x768xf32>
    %cst_23 = arith.constant 0.000000e+00 : f32
    %22 = vector.broadcast %cst_23 : f32 to vector<8x768xf32>
    %23 = arith.maximumf %21, %22 : vector<8x768xf32>
    %24 = arith.truncf %23 : vector<8x768xf32> to vector<8x768xbf16>
    %cst_24 = arith.constant dense<0.000000e+00> : vector<8x64xf32>
    %25 = tpu.matmul %24, %20, %cst_24 {dimension_numbers = #tpu.dot_dimension_numbers<[1], [0], [0], [1], [0, 0, 1, 1], [], []>} : vector<8x768xbf16>, vector<768x64xbf16>, vector<8x64xf32> -> vector<8x64xf32>
    %26 = tpu.iota {dimensions = array<i32: 0>} : vector<8x8xi32>
    %27 = tpu.iota {dimensions = array<i32: 1>} : vector<8x8xi32>
    %28 = arith.cmpi eq, %26, %27 : vector<8x8xi32>
    %cst_25 = arith.constant dense<0.000000e+00> : vector<8x8xf32>
    %29 = tpu.matmul %8, %25, %cst_25 {dimension_numbers = #tpu.dot_dimension_numbers<[1], [1], [0], [0], [0, 0, 1, 0], [], []>} : vector<8x64xf32>, vector<8x64xf32>, vector<8x8xf32> -> vector<8x8xf32>
    %cst_26 = arith.constant 0.000000e+00 : f32
    %30 = vector.broadcast %cst_26 : f32 to vector<8x8xf32>
    %31 = arith.select %28, %29, %30 : vector<8x8xi1>, vector<8x8xf32>
    %cst_27 = arith.constant dense<0.000000e+00> : vector<8xf32>
    %32 = vector.multi_reduction <add>, %31, %cst_27 [1] : vector<8x8xf32> to vector<8xf32>
    %33 = vector.shape_cast %32 : vector<8xf32> to vector<8x1xf32>
    %cst_28 = arith.constant dense<0.000000e+00> : vector<8xf32>
    %34 = vector.multi_reduction <add>, %31, %cst_28 [0] : vector<8x8xf32> to vector<8xf32>
    %35 = vector.shape_cast %34 : vector<8xf32> to vector<1x8xf32>
    %cst_29 = arith.constant dense<0xFF800000> : vector<8xf32>
    %36 = vector.multi_reduction <maximumf>, %29, %cst_29 [1] : vector<8x8xf32> to vector<8xf32>
    %37 = vector.shape_cast %36 : vector<8xf32> to vector<8x1xf32>
    %38 = vector.broadcast %37 : vector<8x1xf32> to vector<8x8xf32>
    %39 = arith.subf %29, %38 : vector<8x8xf32>
    %40 = math.exp %39 : vector<8x8xf32>
    %cst_30 = arith.constant dense<0.000000e+00> : vector<8xf32>
    %41 = vector.multi_reduction <add>, %40, %cst_30 [1] : vector<8x8xf32> to vector<8xf32>
    %42 = vector.shape_cast %41 : vector<8xf32> to vector<8x1xf32>
    %43 = arith.subf %33, %37 : vector<8x1xf32>
    %44 = math.exp %43 : vector<8x1xf32>
    %45 = arith.divf %44, %42 : vector<8x1xf32>
    %cst_31 = arith.constant dense<0xFF800000> : vector<8xf32>
    %46 = vector.multi_reduction <maximumf>, %29, %cst_31 [0] : vector<8x8xf32> to vector<8xf32>
    %47 = vector.shape_cast %46 : vector<8xf32> to vector<1x8xf32>
    %48 = vector.broadcast %47 : vector<1x8xf32> to vector<8x8xf32>
    %49 = arith.subf %29, %48 : vector<8x8xf32>
    %50 = math.exp %49 : vector<8x8xf32>
    %cst_32 = arith.constant dense<0.000000e+00> : vector<8xf32>
    %51 = vector.multi_reduction <add>, %50, %cst_32 [0] : vector<8x8xf32> to vector<8xf32>
    %52 = vector.shape_cast %51 : vector<8xf32> to vector<1x8xf32>
    %53 = arith.subf %35, %47 : vector<1x8xf32>
    %54 = math.exp %53 : vector<1x8xf32>
    %55 = arith.divf %54, %52 : vector<1x8xf32>
    %cst_33 = arith.constant 1.000000e-10 : f32
    %56 = vector.broadcast %cst_33 : f32 to vector<8x1xf32>
    %57 = arith.addf %45, %56 : vector<8x1xf32>
    %58 = math.log %57 : vector<8x1xf32>
    %59 = vector.shape_cast %58 : vector<8x1xf32> to vector<1x8x1xf32>
    %cst_34 = arith.constant dense<0.000000e+00> : vector<1xf32>
    %60 = vector.multi_reduction <add>, %59, %cst_34 [1, 2] : vector<1x8x1xf32> to vector<1xf32>
    %61 = vector.shape_cast %60 : vector<1xf32> to vector<1x1x1xf32>
    %62 = vector.extract %61[0, 0, 0] : f32 from vector<1x1x1xf32>
    %cst_35 = arith.constant 0.000000e+00 : f32
    %63 = arith.subf %cst_35, %62 : f32
    %cst_36 = arith.constant 1.000000e-10 : f32
    %64 = vector.broadcast %cst_36 : f32 to vector<1x8xf32>
    %65 = arith.addf %55, %64 : vector<1x8xf32>
    %66 = math.log %65 : vector<1x8xf32>
    %67 = vector.shape_cast %66 : vector<1x8xf32> to vector<1x1x8xf32>
    %cst_37 = arith.constant dense<0.000000e+00> : vector<1xf32>
    %68 = vector.multi_reduction <add>, %67, %cst_37 [1, 2] : vector<1x1x8xf32> to vector<1xf32>
    %69 = vector.shape_cast %68 : vector<1xf32> to vector<1x1x1xf32>
    %70 = vector.extract %69[0, 0, 0] : f32 from vector<1x1x1xf32>
    %cst_38 = arith.constant 0.000000e+00 : f32
    %71 = arith.subf %cst_38, %70 : f32
    %cst_39 = arith.constant dense<0.000000e+00> : vector<8x8xf32>
    %72 = tpu.matmul %9, %17, %cst_39 {dimension_numbers = #tpu.dot_dimension_numbers<[1], [1], [0], [0], [0, 0, 1, 0], [], []>} : vector<8x64xf32>, vector<8x64xf32>, vector<8x8xf32> -> vector<8x8xf32>
    %cst_40 = arith.constant 0.000000e+00 : f32
    %73 = vector.broadcast %cst_40 : f32 to vector<8x8xf32>
    %74 = arith.select %28, %72, %73 : vector<8x8xi1>, vector<8x8xf32>
    %cst_41 = arith.constant dense<0.000000e+00> : vector<8xf32>
    %75 = vector.multi_reduction <add>, %74, %cst_41 [1] : vector<8x8xf32> to vector<8xf32>
    %76 = vector.shape_cast %75 : vector<8xf32> to vector<8x1xf32>
    %cst_42 = arith.constant dense<0.000000e+00> : vector<8xf32>
    %77 = vector.multi_reduction <add>, %74, %cst_42 [0] : vector<8x8xf32> to vector<8xf32>
    %78 = vector.shape_cast %77 : vector<8xf32> to vector<1x8xf32>
    %cst_43 = arith.constant dense<0xFF800000> : vector<8xf32>
    %79 = vector.multi_reduction <maximumf>, %72, %cst_43 [1] : vector<8x8xf32> to vector<8xf32>
    %80 = vector.shape_cast %79 : vector<8xf32> to vector<8x1xf32>
    %81 = vector.broadcast %80 : vector<8x1xf32> to vector<8x8xf32>
    %82 = arith.subf %72, %81 : vector<8x8xf32>
    %83 = math.exp %82 : vector<8x8xf32>
    %cst_44 = arith.constant dense<0.000000e+00> : vector<8xf32>
    %84 = vector.multi_reduction <add>, %83, %cst_44 [1] : vector<8x8xf32> to vector<8xf32>
    %85 = vector.shape_cast %84 : vector<8xf32> to vector<8x1xf32>
    %86 = arith.subf %76, %80 : vector<8x1xf32>
    %87 = math.exp %86 : vector<8x1xf32>
    %88 = arith.divf %87, %85 : vector<8x1xf32>
    %cst_45 = arith.constant dense<0xFF800000> : vector<8xf32>
    %89 = vector.multi_reduction <maximumf>, %72, %cst_45 [0] : vector<8x8xf32> to vector<8xf32>
    %90 = vector.shape_cast %89 : vector<8xf32> to vector<1x8xf32>
    %91 = vector.broadcast %90 : vector<1x8xf32> to vector<8x8xf32>
    %92 = arith.subf %72, %91 : vector<8x8xf32>
    %93 = math.exp %92 : vector<8x8xf32>
    %cst_46 = arith.constant dense<0.000000e+00> : vector<8xf32>
    %94 = vector.multi_reduction <add>, %93, %cst_46 [0] : vector<8x8xf32> to vector<8xf32>
    %95 = vector.shape_cast %94 : vector<8xf32> to vector<1x8xf32>
    %96 = arith.subf %78, %90 : vector<1x8xf32>
    %97 = math.exp %96 : vector<1x8xf32>
    %98 = arith.divf %97, %95 : vector<1x8xf32>
    %cst_47 = arith.constant 1.000000e-10 : f32
    %99 = vector.broadcast %cst_47 : f32 to vector<8x1xf32>
    %100 = arith.addf %88, %99 : vector<8x1xf32>
    %101 = math.log %100 : vector<8x1xf32>
    %102 = vector.shape_cast %101 : vector<8x1xf32> to vector<1x8x1xf32>
    %cst_48 = arith.constant dense<0.000000e+00> : vector<1xf32>
    %103 = vector.multi_reduction <add>, %102, %cst_48 [1, 2] : vector<1x8x1xf32> to vector<1xf32>
    %104 = vector.shape_cast %103 : vector<1xf32> to vector<1x1x1xf32>
    %105 = vector.extract %104[0, 0, 0] : f32 from vector<1x1x1xf32>
    %cst_49 = arith.constant 0.000000e+00 : f32
    %106 = arith.subf %cst_49, %105 : f32
    %cst_50 = arith.constant 1.000000e-10 : f32
    %107 = vector.broadcast %cst_50 : f32 to vector<1x8xf32>
    %108 = arith.addf %98, %107 : vector<1x8xf32>
    %109 = math.log %108 : vector<1x8xf32>
    %110 = vector.shape_cast %109 : vector<1x8xf32> to vector<1x1x8xf32>
    %cst_51 = arith.constant dense<0.000000e+00> : vector<1xf32>
    %111 = vector.multi_reduction <add>, %110, %cst_51 [1, 2] : vector<1x1x8xf32> to vector<1xf32>
    %112 = vector.shape_cast %111 : vector<1xf32> to vector<1x1x1xf32>
    %113 = vector.extract %112[0, 0, 0] : f32 from vector<1x1x1xf32>
    %cst_52 = arith.constant 0.000000e+00 : f32
    %114 = arith.subf %cst_52, %113 : f32
    %c0_53 = arith.constant 0 : index
    %115 = memref.load %arg9[%c0_53] : memref<4xf32, #tpu.memory_space<smem>>
    memref.store %63, %arg9[%c0_53] : memref<4xf32, #tpu.memory_space<smem>>
    %c1 = arith.constant 1 : index
    %116 = memref.load %arg9[%c1] : memref<4xf32, #tpu.memory_space<smem>>
    memref.store %71, %arg9[%c1] : memref<4xf32, #tpu.memory_space<smem>>
    %c2 = arith.constant 2 : index
    %117 = memref.load %arg9[%c2] : memref<4xf32, #tpu.memory_space<smem>>
    memref.store %106, %arg9[%c2] : memref<4xf32, #tpu.memory_space<smem>>
    %c3 = arith.constant 3 : index
    %118 = memref.load %arg9[%c3] : memref<4xf32, #tpu.memory_space<smem>>
    memref.store %114, %arg9[%c3] : memref<4xf32, #tpu.memory_space<smem>>
    return
  }
}

</mosaic_0001>

<bundles_post_ra>
// kernel: pair_clip_si_forward.1
= control target key start
LH: loop header
LB: loop body
LE: loop exit
PB: predicated region body
PF: predicated region fallthrough
CT: control target
= control target key end

     0   :  { %s12970_s0 = inlined_call_operand.vmem [shape: bf16[16,512], index: 0, kind: input, shape index: {}]   ;;  %s12971_s1 = inlined_call_operand.vmem [shape: bf16[8,512], index: 1, kind: input, shape index: {}]   ;;  %s12972_s2 = inlined_call_operand.vmem [shape: bf16[8,768], index: 2, kind: input, shape index: {}]   ;;  %s12973_s3 = inlined_call_operand.vmem [shape: bf16[512,512], index: 3, kind: input, shape index: {}]   ;;  %s12974_s4 = inlined_call_operand.vmem [shape: bf16[512,64], index: 4, kind: input, shape index: {}]   ;;  %s12975_s5 = inlined_call_operand.vmem [shape: bf16[512,512], index: 5, kind: input, shape index: {}]   ;;  %s12976_s6 = inlined_call_operand.vmem [shape: bf16[512,64], index: 6, kind: input, shape index: {}]   ;;  %s12977_s7 = inlined_call_operand.vmem [shape: bf16[768,768], index: 7, kind: input, shape index: {}]   ;;  %s12978_s8 = inlined_call_operand.vmem [shape: bf16[768,64], index: 8, kind: input, shape index: {}]   ;;  %s12979_s9 = inlined_call_operand.vmem [shape: f32[4], index: 9, kind: output, shape index: {}]  }
   0x1   :  { %v5787_v0 = vld [vmem:[%s12973_s3 + $0xe0] sm:$0xf]  ;;  %v8335_v1 = vld [vmem:[%s12973_s3 + $0xec] sm:$0xf0] }
   0x2   :  { %v5915_v2 = vld [vmem:[%s12973_s3 + $0x1e0] sm:$0xf]  ;;  %v5788_v3 = vor.u32 %v8335_v1, %v5787_v0  ;;  %v8367_v4 = vld [vmem:[%s12973_s3 + $0x1ec] sm:$0xf0] }
   0x3   :  { %v6043_v5 = vld [vmem:[%s12973_s3 + $0x2e0] sm:$0xf]  ;;  %v8399_v6 = vld [vmem:[%s12973_s3 + $0x2ec] sm:$0xf0]  ;;  %v5916_v7 = vor.u32 %v8367_v4, %v5915_v2 }
   0x4   :  { %v6044_v8 = vor.u32 %v8399_v6, %v6043_v5  ;;  %v6171_v9 = vld [vmem:[%s12973_s3 + $0x3e0] sm:$0xf]  ;;  %v8431_v10 = vld [vmem:[%s12973_s3 + $0x3ec] sm:$0xf0]  ;;  %889 = vmatpush.bf16.msra.mxu0 %v5788_v3 }
   0x5   :  { %v5771_v11 = vld [vmem:[%s12973_s3 + $0xc0] sm:$0xf]  ;;  %v6172_v12 = vor.u32 %v8431_v10, %v6171_v9  ;;  %v8331_v13 = vld [vmem:[%s12973_s3 + $0xcc] sm:$0xf0]  ;;  %903 = vmatpush.bf16.msra.mxu1 %v5916_v7 }
   0x6   :  { %v5899_v14 = vld [vmem:[%s12973_s3 + $0x1c0] sm:$0xf]  ;;  %v8363_v15 = vld [vmem:[%s12973_s3 + $0x1cc] sm:$0xf0]  ;;  %917 = vmatpush.bf16.msra.mxu2 %v6044_v8  ;;  %v5772_v16 = vor.u32 %v8331_v13, %v5771_v11 }
   0x7   :  { %v5900_v17 = vor.u32 %v8363_v15, %v5899_v14  ;;  %v6027_v18 = vld [vmem:[%s12973_s3 + $0x2c0] sm:$0xf]  ;;  %v8395_v19 = vld [vmem:[%s12973_s3 + $0x2cc] sm:$0xf0]  ;;  %931 = vmatpush.bf16.msra.mxu3 %v6172_v12 }
   0x8   :  { %v6155_v20 = vld [vmem:[%s12973_s3 + $0x3c0] sm:$0xf]  ;;  %v6028_v21 = vor.u32 %v8395_v19, %v6027_v18  ;;  %v8427_v22 = vld [vmem:[%s12973_s3 + $0x3cc] sm:$0xf0]  ;;  %890 = vmatpush.bf16.msra.mxu0 %v5772_v16 }
   0x9   :  { %v5755_v23 = vld [vmem:[%s12973_s3 + $0xa0] sm:$0xf]  ;;  %v8327_v24 = vld [vmem:[%s12973_s3 + $0xac] sm:$0xf0]  ;;  %v6156_v25 = vor.u32 %v8427_v22, %v6155_v20  ;;  %904 = vmatpush.bf16.msra.mxu1 %v5900_v17 }
   0xa   :  { %v5883_v26 = vld [vmem:[%s12973_s3 + $0x1a0] sm:$0xf]  ;;  %v8359_v27 = vld [vmem:[%s12973_s3 + $0x1ac] sm:$0xf0]  ;;  %v5756_v29 = vor.u32 %v8327_v24, %v5755_v23  ;;  %918 = vmatpush.bf16.msra.mxu2 %v6028_v21 }
   0xb   :  { %v6011_v28 = vld [vmem:[%s12973_s3 + $0x2a0] sm:$0xf]  ;;  %v8391_v30 = vld [vmem:[%s12973_s3 + $0x2ac] sm:$0xf0]  ;;  %v5884_v33 = vor.u32 %v8359_v27, %v5883_v26  ;;  %932 = vmatpush.bf16.msra.mxu3 %v6156_v25 }
   0xc   :  { %v6139_v31 = vld [vmem:[%s12973_s3 + $0x3a0] sm:$0xf]  ;;  %v8423_v32 = vld [vmem:[%s12973_s3 + $0x3ac] sm:$0xf0]  ;;  %v6012_v34 = vor.u32 %v8391_v30, %v6011_v28  ;;  %891 = vmatpush.bf16.msra.mxu0 %v5756_v29  ;;  %v8333_v28 = vld [vmem:[%s12973_s3 + $0xe4] sm:$0xf] }
   0xd   :  { %v5739_v35 = vld [vmem:[%s12973_s3 + $0x80] sm:$0xf]  ;;  %v8323_v36 = vld [vmem:[%s12973_s3 + $0x8c] sm:$0xf0]  ;;  %v6140_v38 = vor.u32 %v8423_v32, %v6139_v31  ;;  %905 = vmatpush.bf16.msra.mxu1 %v5884_v33  ;;  %v5789_v29 = vld [vmem:[%s12973_s3 + $0xf0] sm:$0xf0] }
   0xe   :  { %v5867_v37 = vld [vmem:[%s12973_s3 + $0x180] sm:$0xf]  ;;  %v8355_v39 = vld [vmem:[%s12973_s3 + $0x18c] sm:$0xf0]  ;;  %v5740_v44 = vor.u32 %v8323_v36, %v5739_v35  ;;  %919 = vmatpush.bf16.msra.mxu2 %v6012_v34  ;;  %v8365_v30 = vld [vmem:[%s12973_s3 + $0x1e4] sm:$0xf] }
   0xf   :  { %v5995_v40 = vld [vmem:[%s12973_s3 + $0x280] sm:$0xf]  ;;  %v8387_v41 = vld [vmem:[%s12973_s3 + $0x28c] sm:$0xf0]  ;;  %v5868_v45 = vor.u32 %v8355_v39, %v5867_v37  ;;  %933 = vmatpush.bf16.msra.mxu3 %v6140_v38  ;;  %v5917_v32 = vld [vmem:[%s12973_s3 + $0x1f0] sm:$0xf0] }
  0x10   :  { %v6123_v42 = vld [vmem:[%s12973_s3 + $0x380] sm:$0xf]  ;;  %v8419_v43 = vld [vmem:[%s12973_s3 + $0x38c] sm:$0xf0]  ;;  %v5996_v46 = vor.u32 %v8387_v41, %v5995_v40  ;;  %892 = vmatpush.bf16.msra.mxu0 %v5740_v44  ;;  %v8397_v33 = vld [vmem:[%s12973_s3 + $0x2e4] sm:$0xf]  ;;  %v5792_v40 = vor.u32 %v8333_v28, %v5789_v29 }
  0x11   :  { %v5723_v47 = vld [vmem:[%s12973_s3 + $0x60] sm:$0xf]  ;;  %v8319_v48 = vld [vmem:[%s12973_s3 + $0x6c] sm:$0xf0]  ;;  %v6124_v50 = vor.u32 %v8419_v43, %v6123_v42  ;;  %906 = vmatpush.bf16.msra.mxu1 %v5868_v45  ;;  %v6045_v34 = vld [vmem:[%s12973_s3 + $0x2f0] sm:$0xf0]  ;;  %v5920_v43 = vor.u32 %v8365_v30, %v5917_v32 }
  0x12   :  { %v5851_v49 = vld [vmem:[%s12973_s3 + $0x160] sm:$0xf]  ;;  %v8351_v51 = vld [vmem:[%s12973_s3 + $0x16c] sm:$0xf0]  ;;  %v5724_v56 = vor.u32 %v8319_v48, %v5723_v47  ;;  %920 = vmatpush.bf16.msra.mxu2 %v5996_v46  ;;  %v8429_v37 = vld [vmem:[%s12973_s3 + $0x3e4] sm:$0xf]  ;;  %v6048_v44 = vor.u32 %v8397_v33, %v6045_v34 }
  0x13   :  { %v5979_v52 = vld [vmem:[%s12973_s3 + $0x260] sm:$0xf]  ;;  %v8383_v53 = vld [vmem:[%s12973_s3 + $0x26c] sm:$0xf0]  ;;  %v5852_v57 = vor.u32 %v8351_v51, %v5851_v49  ;;  %934 = vmatpush.bf16.msra.mxu3 %v6124_v50  ;;  %v6173_v38 = vld [vmem:[%s12973_s3 + $0x3f0] sm:$0xf0] }
  0x14   :  { %v6107_v54 = vld [vmem:[%s12973_s3 + $0x360] sm:$0xf]  ;;  %v8415_v55 = vld [vmem:[%s12973_s3 + $0x36c] sm:$0xf0]  ;;  %v5980_v58 = vor.u32 %v8383_v53, %v5979_v52  ;;  %893 = vmatpush.bf16.msra.mxu0 %v5724_v56  ;;  %v8329_v41 = vld [vmem:[%s12973_s3 + $0xc4] sm:$0xf]  ;;  %v6176_v48 = vor.u32 %v8429_v37, %v6173_v38 }
  0x15   :  { %v5707_v59 = vld [vmem:[%s12973_s3 + $0x40] sm:$0xf]  ;;  %v8315_v60 = vld [vmem:[%s12973_s3 + $0x4c] sm:$0xf0]  ;;  %v6108_v62 = vor.u32 %v8415_v55, %v6107_v54  ;;  %907 = vmatpush.bf16.msra.mxu1 %v5852_v57  ;;  %v5773_v42 = vld [vmem:[%s12973_s3 + $0xd0] sm:$0xf0] }
  0x16   :  { %v5835_v61 = vld [vmem:[%s12973_s3 + $0x140] sm:$0xf]  ;;  %v8347_v63 = vld [vmem:[%s12973_s3 + $0x14c] sm:$0xf0]  ;;  %v5708_v4 = vor.u32 %v8315_v60, %v5707_v59  ;;  %921 = vmatpush.bf16.msra.mxu2 %v5980_v58  ;;  %v8361_v45 = vld [vmem:[%s12973_s3 + $0x1c4] sm:$0xf]  ;;  %v5776_v55 = vor.u32 %v8329_v41, %v5773_v42 }
  0x17   :  { %v5963_v0 = vld [vmem:[%s12973_s3 + $0x240] sm:$0xf]  ;;  %v8379_v1 = vld [vmem:[%s12973_s3 + $0x24c] sm:$0xf0]  ;;  %v5836_v5 = vor.u32 %v8347_v63, %v5835_v61  ;;  %935 = vmatpush.bf16.msra.mxu3 %v6108_v62  ;;  %v5901_v46 = vld [vmem:[%s12973_s3 + $0x1d0] sm:$0xf0] }
  0x18   :  { %v6091_v2 = vld [vmem:[%s12973_s3 + $0x340] sm:$0xf]  ;;  %v8411_v3 = vld [vmem:[%s12973_s3 + $0x34c] sm:$0xf0]  ;;  %v5964_v6 = vor.u32 %v8379_v1, %v5963_v0  ;;  %894 = vmatpush.bf16.msra.mxu0 %v5708_v4  ;;  %v8393_v47 = vld [vmem:[%s12973_s3 + $0x2c4] sm:$0xf]  ;;  %v5904_v60 = vor.u32 %v8361_v45, %v5901_v46 }
  0x19   :  { %v5691_v7 = vld [vmem:[%s12973_s3 + $0x20] sm:$0xf]  ;;  %v8311_v8 = vld [vmem:[%s12973_s3 + $0x2c] sm:$0xf0]  ;;  %v6092_v10 = vor.u32 %v8411_v3, %v6091_v2  ;;  %908 = vmatpush.bf16.msra.mxu1 %v5836_v5  ;;  %v6029_v49 = vld [vmem:[%s12973_s3 + $0x2d0] sm:$0xf0] }
  0x1a   :  { %v5819_v9 = vld [vmem:[%s12973_s3 + $0x120] sm:$0xf]  ;;  %v8343_v11 = vld [vmem:[%s12973_s3 + $0x12c] sm:$0xf0]  ;;  %v5692_v16 = vor.u32 %v8311_v8, %v5691_v7  ;;  %922 = vmatpush.bf16.msra.mxu2 %v5964_v6  ;;  %v8425_v50 = vld [vmem:[%s12973_s3 + $0x3c4] sm:$0xf]  ;;  %v6032_v61 = vor.u32 %v8393_v47, %v6029_v49 }
  0x1b   :  { %v5947_v12 = vld [vmem:[%s12973_s3 + $0x220] sm:$0xf]  ;;  %v8375_v13 = vld [vmem:[%s12973_s3 + $0x22c] sm:$0xf0]  ;;  %v5820_v19 = vor.u32 %v8343_v11, %v5819_v9  ;;  %936 = vmatpush.bf16.msra.mxu3 %v6092_v10  ;;  %v6157_v51 = vld [vmem:[%s12973_s3 + $0x3d0] sm:$0xf0] }
  0x1c   :  { %v6075_v14 = vld [vmem:[%s12973_s3 + $0x320] sm:$0xf]  ;;  %v8407_v15 = vld [vmem:[%s12973_s3 + $0x32c] sm:$0xf0]  ;;  %v5948_v20 = vor.u32 %v8375_v13, %v5947_v12  ;;  %895 = vmatpush.bf16.msra.mxu0 %v5692_v16  ;;  %v5667_v52 = vld [vmem:[%s12970_s0 + $0x8] sm:$0xf]  ;;  %v6160_v2 = vor.u32 %v8425_v50, %v6157_v51 }
  0x1d   :  { %v5675_v17 = vld [vmem:[%s12973_s3] sm:$0xf]  ;;  %v8307_v18 = vld [vmem:[%s12973_s3 + $0xc] sm:$0xf0]  ;;  %v6076_v24 = vor.u32 %v8407_v15, %v6075_v14  ;;  %909 = vmatpush.bf16.msra.mxu1 %v5820_v19  ;;  %v8304_v53 = vld [vmem:[%s12970_s0 + $0x14] sm:$0xf0] }
  0x1e   :  { %v5803_v21 = vld [vmem:[%s12973_s3 + $0x100] sm:$0xf]  ;;  %v8339_v22 = vld [vmem:[%s12973_s3 + $0x10c] sm:$0xf0]  ;;  %v5676_v31 = vor.u32 %v8307_v18, %v5675_v17  ;;  %923 = vmatpush.bf16.msra.mxu2 %v5948_v20  ;;  %v8302_v54 = vld [vmem:[%s12970_s0 + $0xc] sm:$0xf]  ;;  %v9322_v58 = vor.u32 %v8304_v53, %v5667_v52 }
  0x1f   :  { %v5931_v23 = vld [vmem:[%s12973_s3 + $0x200] sm:$0xf]  ;;  %v8371_v25 = vld [vmem:[%s12973_s3 + $0x20c] sm:$0xf0]  ;;  %v5804_v35 = vor.u32 %v8339_v22, %v5803_v21  ;;  %937 = vmatpush.bf16.msra.mxu3 %v6076_v24  ;;  %v8325_v56 = vld [vmem:[%s12973_s3 + $0xa4] sm:$0xf] }
  0x20   :  { %v6059_v26 = vld [vmem:[%s12973_s3 + $0x300] sm:$0xf]  ;;  %v8403_v27 = vld [vmem:[%s12973_s3 + $0x30c] sm:$0xf0]  ;;  %v5932_v36 = vor.u32 %v8371_v25, %v5931_v23  ;;  %896 = vmatpush.bf16.msra.mxu0 %v5676_v31  ;;  %v5757_v57 = vld [vmem:[%s12973_s3 + $0xb0] sm:$0xf0] }
  0x21   :  { %v6060_v39 = vor.u32 %v8403_v27, %v6059_v26  ;;  %910 = vmatpush.bf16.msra.mxu1 %v5804_v35  ;;  %v5669_v59 = vld [vmem:[%s12970_s0 + $0x18] sm:$0xf0]  ;;  %v8357_v62 = vld [vmem:[%s12973_s3 + $0x1a4] sm:$0xf]  ;;  %v5885_v63 = vld [vmem:[%s12973_s3 + $0x1b0] sm:$0xf0]  ;;  %v5760_v9 = vor.u32 %v8325_v56, %v5757_v57 }
  0x22   :  { %924 = vmatpush.bf16.msra.mxu2 %v5932_v36  ;;  %v8389_v0 = vld [vmem:[%s12973_s3 + $0x2a4] sm:$0xf]  ;;  %v9336_v1 = vor.u32 %v8302_v54, %v5669_v59  ;;  %v6013_v3 = vld [vmem:[%s12973_s3 + $0x2b0] sm:$0xf0]  ;;  %v5659_v6 = vld [vmem:[%s12970_s0] sm:$0xf]  ;;  %v5888_v12 = vor.u32 %v8357_v62, %v5885_v63 }
  0x23   :  { %938 = vmatpush.bf16.msra.mxu3 %v6060_v39  ;;  %v8421_v4 = vld [vmem:[%s12973_s3 + $0x3a4] sm:$0xf]  ;;  %v6141_v5 = vld [vmem:[%s12973_s3 + $0x3b0] sm:$0xf0]  ;;  %v8303_v7 = vld [vmem:[%s12970_s0 + $0xc] sm:$0xf0]  ;;  %v6016_v13 = vor.u32 %v8389_v0, %v6013_v3 }
  0x24   :  { %945 = vmatpush.bf16.msrb.mxu0 %v5792_v40  ;;  %v8301_v8 = vld [vmem:[%s12970_s0 + $0x4] sm:$0xf]  ;;  %v9358_v10 = vor.u32 %v8303_v7, %v5659_v6  ;;  %v5661_v11 = vld [vmem:[%s12970_s0 + $0x10] sm:$0xf0]  ;;  %v6144_v18 = vor.u32 %v8421_v4, %v6141_v5 }
  0x25   :  { %959 = vmatpush.bf16.msrb.mxu1 %v5920_v43  ;;  %925 = vmatmul.bf16.vlgmr.msra.gmra.mxu2 %v9322_v58  ;;  %v8321_v14 = vld [vmem:[%s12973_s3 + $0x84] sm:$0xf]  ;;  %v5741_v15 = vld [vmem:[%s12973_s3 + $0x90] sm:$0xf0]  ;;  %v9372_v17 = vor.u32 %v8301_v8, %v5661_v11  ;;  %v5795_v11 = vld [vmem:[%s12973_s3 + $0xe8] sm:$0xf] }
  0x26   :  { %973 = vmatpush.bf16.msrb.mxu2 %v6048_v44  ;;  %939 = vmatmul.bf16.vlgmr.msra.gmra.mxu3 %v9336_v1  ;;  %v8353_v16 = vld [vmem:[%s12973_s3 + $0x184] sm:$0xf]  ;;  %v5869_v19 = vld [vmem:[%s12973_s3 + $0x190] sm:$0xf0]  ;;  %v5744_v24 = vor.u32 %v8321_v14, %v5741_v15  ;;  %v8368_v15 = vld [vmem:[%s12973_s3 + $0x1f4] sm:$0xf0] }
  0x27   :  { %987 = vmatpush.bf16.msrb.mxu3 %v6176_v48  ;;  %v8385_v20 = vld [vmem:[%s12973_s3 + $0x284] sm:$0xf]  ;;  %v5997_v21 = vld [vmem:[%s12973_s3 + $0x290] sm:$0xf0]  ;;  %897 = vmatmul.bf16.vlgmr.msra.gmra.mxu0 %v9358_v10  ;;  %v5872_v25 = vor.u32 %v8353_v16, %v5869_v19  ;;  %v6051_v16 = vld [vmem:[%s12973_s3 + $0x2e8] sm:$0xf] }
  0x28   :  { %946 = vmatpush.bf16.msrb.mxu0 %v5776_v55  ;;  %v8417_v22 = vld [vmem:[%s12973_s3 + $0x384] sm:$0xf]  ;;  %v6125_v23 = vld [vmem:[%s12973_s3 + $0x390] sm:$0xf0]  ;;  %911 = vmatmul.bf16.vlgmr.msra.gmra.mxu1 %v9372_v17  ;;  %v6000_v26 = vor.u32 %v8385_v20, %v5997_v21  ;;  %v6179_v21 = vld [vmem:[%s12973_s3 + $0x3e8] sm:$0xf] }
  0x29   :  { %960 = vmatpush.bf16.msrb.mxu1 %v5904_v60  ;;  %v8317_v27 = vld [vmem:[%s12973_s3 + $0x64] sm:$0xf]  ;;  %v5725_v28 = vld [vmem:[%s12973_s3 + $0x70] sm:$0xf0]  ;;  %v6128_v30 = vor.u32 %v8417_v22, %v6125_v23  ;;  %v8432_v22 = vld [vmem:[%s12973_s3 + $0x3f4] sm:$0xf0] }
  0x2a   :  { %974 = vmatpush.bf16.msrb.mxu2 %v6032_v61  ;;  %v8349_v29 = vld [vmem:[%s12973_s3 + $0x164] sm:$0xf]  ;;  %v5853_v31 = vld [vmem:[%s12973_s3 + $0x170] sm:$0xf0]  ;;  %v5728_v36 = vor.u32 %v8317_v27, %v5725_v28  ;;  %v5779_v27 = vld [vmem:[%s12973_s3 + $0xc8] sm:$0xf] }
  0x2b   :  { %988 = vmatpush.bf16.msrb.mxu3 %v6160_v2  ;;  %v8381_v32 = vld [vmem:[%s12973_s3 + $0x264] sm:$0xf]  ;;  %v5981_v33 = vld [vmem:[%s12973_s3 + $0x270] sm:$0xf0]  ;;  %v5856_v37 = vor.u32 %v8349_v29, %v5853_v31  ;;  %v8332_v28 = vld [vmem:[%s12973_s3 + $0xd4] sm:$0xf0] }
  0x2c   :  { %947 = vmatpush.bf16.msrb.mxu0 %v5760_v9  ;;  %v8413_v34 = vld [vmem:[%s12973_s3 + $0x364] sm:$0xf]  ;;  %v6109_v35 = vld [vmem:[%s12973_s3 + $0x370] sm:$0xf0]  ;;  %v5984_v38 = vor.u32 %v8381_v32, %v5981_v33  ;;  %v5907_v29 = vld [vmem:[%s12973_s3 + $0x1c8] sm:$0xf] }
  0x2d   :  { %961 = vmatpush.bf16.msrb.mxu1 %v5888_v12  ;;  %v8313_v39 = vld [vmem:[%s12973_s3 + $0x44] sm:$0xf]  ;;  %v5709_v40 = vld [vmem:[%s12973_s3 + $0x50] sm:$0xf0]  ;;  %v6112_v42 = vor.u32 %v8413_v34, %v6109_v35  ;;  %v8336_v12 = vld [vmem:[%s12973_s3 + $0xf4] sm:$0xf0] }
  0x2e   :  { %975 = vmatpush.bf16.msrb.mxu2 %v6016_v13  ;;  %v8345_v41 = vld [vmem:[%s12973_s3 + $0x144] sm:$0xf]  ;;  %v5837_v43 = vld [vmem:[%s12973_s3 + $0x150] sm:$0xf0]  ;;  %v5712_v48 = vor.u32 %v8313_v39, %v5709_v40  ;;  %v5923_v13 = vld [vmem:[%s12973_s3 + $0x1e8] sm:$0xf] }
  0x2f   :  { %989 = vmatpush.bf16.msrb.mxu3 %v6144_v18  ;;  %v8377_v44 = vld [vmem:[%s12973_s3 + $0x244] sm:$0xf]  ;;  %v5965_v45 = vld [vmem:[%s12973_s3 + $0x250] sm:$0xf0]  ;;  %v5840_v49 = vor.u32 %v8345_v41, %v5837_v43  ;;  %v8400_v18 = vld [vmem:[%s12973_s3 + $0x2f4] sm:$0xf0] }
  0x30   :  { %948 = vmatpush.bf16.msrb.mxu0 %v5744_v24  ;;  %v8409_v46 = vld [vmem:[%s12973_s3 + $0x344] sm:$0xf]  ;;  %v6093_v47 = vld [vmem:[%s12973_s3 + $0x350] sm:$0xf0]  ;;  %v5968_v50 = vor.u32 %v8377_v44, %v5965_v45  ;;  %v5796_v24 = vor.u32 %v8336_v12, %v5795_v11  ;;  %v8364_v31 = vld [vmem:[%s12973_s3 + $0x1d4] sm:$0xf0] }
  0x31   :  { %962 = vmatpush.bf16.msrb.mxu1 %v5872_v25  ;;  %v8309_v51 = vld [vmem:[%s12973_s3 + $0x24] sm:$0xf]  ;;  %v5693_v52 = vld [vmem:[%s12973_s3 + $0x30] sm:$0xf0]  ;;  %v6096_v54 = vor.u32 %v8409_v46, %v6093_v47  ;;  %v5924_v25 = vor.u32 %v8368_v15, %v5923_v13  ;;  %v6035_v32 = vld [vmem:[%s12973_s3 + $0x2c8] sm:$0xf] }
  0x32   :  { %976 = vmatpush.bf16.msrb.mxu2 %v6000_v26  ;;  %v8341_v53 = vld [vmem:[%s12973_s3 + $0x124] sm:$0xf]  ;;  %v5821_v55 = vld [vmem:[%s12973_s3 + $0x130] sm:$0xf0]  ;;  %v5696_v61 = vor.u32 %v8309_v51, %v5693_v52  ;;  %v6052_v26 = vor.u32 %v8400_v18, %v6051_v16  ;;  %v8396_v33 = vld [vmem:[%s12973_s3 + $0x2d4] sm:$0xf0] }
  0x33   :  { %990 = vmatpush.bf16.msrb.mxu3 %v6128_v30  ;;  %v8373_v56 = vld [vmem:[%s12973_s3 + $0x224] sm:$0xf]  ;;  %v5949_v57 = vld [vmem:[%s12973_s3 + $0x230] sm:$0xf0]  ;;  %v5824_v0 = vor.u32 %v8341_v53, %v5821_v55  ;;  %v6180_v30 = vor.u32 %v8432_v22, %v6179_v21  ;;  %v6163_v34 = vld [vmem:[%s12973_s3 + $0x3c8] sm:$0xf] }
  0x34   :  { %949 = vmatpush.bf16.msrb.mxu0 %v5728_v36  ;;  %v8405_v59 = vld [vmem:[%s12973_s3 + $0x324] sm:$0xf]  ;;  %v6077_v60 = vld [vmem:[%s12973_s3 + $0x330] sm:$0xf0]  ;;  %v5952_v2 = vor.u32 %v8373_v56, %v5949_v57  ;;  %v8428_v35 = vld [vmem:[%s12973_s3 + $0x3d4] sm:$0xf0]  ;;  %v5780_v36 = vor.u32 %v8332_v28, %v5779_v27 }
  0x35   :  { %963 = vmatpush.bf16.msrb.mxu1 %v5856_v37  ;;  %v8305_v62 = vld [vmem:[%s12973_s3 + $0x4] sm:$0xf]  ;;  %v5677_v63 = vld [vmem:[%s12973_s3 + $0x10] sm:$0xf0]  ;;  %v6080_v6 = vor.u32 %v8405_v59, %v6077_v60  ;;  %v5908_v37 = vor.u32 %v8364_v31, %v5907_v29  ;;  %v5763_v39 = vld [vmem:[%s12973_s3 + $0xa8] sm:$0xf] }
  0x36   :  { %977 = vmatpush.bf16.msrb.mxu2 %v5984_v38  ;;  %v8337_v3 = vld [vmem:[%s12973_s3 + $0x104] sm:$0xf]  ;;  %v5805_v4 = vld [vmem:[%s12973_s3 + $0x110] sm:$0xf0]  ;;  %v5680_v14 = vor.u32 %v8305_v62, %v5677_v63  ;;  %v6036_v38 = vor.u32 %v8396_v33, %v6035_v32  ;;  %v8328_v40 = vld [vmem:[%s12973_s3 + $0xb4] sm:$0xf0] }
  0x37   :  { %991 = vmatpush.bf16.msrb.mxu3 %v6112_v42  ;;  %v8369_v5 = vld [vmem:[%s12973_s3 + $0x204] sm:$0xf]  ;;  %v5933_v7 = vld [vmem:[%s12973_s3 + $0x210] sm:$0xf0]  ;;  %v5808_v19 = vor.u32 %v8337_v3, %v5805_v4  ;;  %v5891_v41 = vld [vmem:[%s12973_s3 + $0x1a8] sm:$0xf]  ;;  %v6164_v42 = vor.u32 %v8428_v35, %v6163_v34 }
  0x38   :  { %950 = vmatpush.bf16.msrb.mxu0 %v5712_v48  ;;  %v8401_v8 = vld [vmem:[%s12973_s3 + $0x304] sm:$0xf]  ;;  %v6061_v9 = vld [vmem:[%s12973_s3 + $0x310] sm:$0xf0]  ;;  %v5936_v20 = vor.u32 %v8369_v5, %v5933_v7  ;;  %v8360_v43 = vld [vmem:[%s12973_s3 + $0x1b4] sm:$0xf0]  ;;  %v5764_v48 = vor.u32 %v8328_v40, %v5763_v39 }
  0x39   :  { %964 = vmatpush.bf16.msrb.mxu1 %v5840_v49  ;;  %v6064_v23 = vor.u32 %v8401_v8, %v6061_v9  ;;  %v6019_v44 = vld [vmem:[%s12973_s3 + $0x2a8] sm:$0xf]  ;;  %v8392_v45 = vld [vmem:[%s12973_s3 + $0x2b4] sm:$0xf0]  ;;  %v5892_v49 = vor.u32 %v8360_v43, %v5891_v41 }
  0x3a   :  { %978 = vmatpush.bf16.msrb.mxu2 %v5968_v50  ;;  %v6147_v46 = vld [vmem:[%s12973_s3 + $0x3a8] sm:$0xf]  ;;  %v8424_v47 = vld [vmem:[%s12973_s3 + $0x3b4] sm:$0xf0]  ;;  %v6020_v50 = vor.u32 %v8392_v45, %v6019_v44 }
  0x3b   :  { %992 = vmatpush.bf16.msrb.mxu3 %v6096_v54  ;;  %v5747_v51 = vld [vmem:[%s12973_s3 + $0x88] sm:$0xf]  ;;  %v8324_v52 = vld [vmem:[%s12973_s3 + $0x94] sm:$0xf0]  ;;  %v6148_v54 = vor.u32 %v8424_v47, %v6147_v46 }
  0x3c   :  { %951 = vmatpush.bf16.msrb.mxu0 %v5696_v61  ;;  %v5875_v53 = vld [vmem:[%s12973_s3 + $0x188] sm:$0xf]  ;;  %v8356_v55 = vld [vmem:[%s12973_s3 + $0x194] sm:$0xf0]  ;;  %v5748_v61 = vor.u32 %v8324_v52, %v5747_v51 }
  0x3d   :  { %965 = vmatpush.bf16.msrb.mxu1 %v5824_v0  ;;  %v6003_v56 = vld [vmem:[%s12973_s3 + $0x288] sm:$0xf]  ;;  %v8388_v57 = vld [vmem:[%s12973_s3 + $0x294] sm:$0xf0]  ;;  %v5876_v62 = vor.u32 %v8356_v55, %v5875_v53 }
  0x3e   :  { %979 = vmatpush.bf16.msrb.mxu2 %v5952_v2  ;;  %v6131_v59 = vld [vmem:[%s12973_s3 + $0x388] sm:$0xf]  ;;  %v8420_v60 = vld [vmem:[%s12973_s3 + $0x394] sm:$0xf0]  ;;  %v6004_v63 = vor.u32 %v8388_v57, %v6003_v56 }
  0x3f   :  { %993 = vmatpush.bf16.msrb.mxu3 %v6080_v6  ;;  %v5731_v0 = vld [vmem:[%s12973_s3 + $0x68] sm:$0xf]  ;;  %v8320_v2 = vld [vmem:[%s12973_s3 + $0x74] sm:$0xf0]  ;;  %v6132_v4 = vor.u32 %v8420_v60, %v6131_v59 }
  0x40   :  { %952 = vmatpush.bf16.msrb.mxu0 %v5680_v14  ;;  %v5859_v3 = vld [vmem:[%s12973_s3 + $0x168] sm:$0xf]  ;;  %v8352_v5 = vld [vmem:[%s12973_s3 + $0x174] sm:$0xf0]  ;;  %v5732_v11 = vor.u32 %v8320_v2, %v5731_v0 }
  0x41   :  { %966 = vmatpush.bf16.msrb.mxu1 %v5808_v19  ;;  %v5987_v6 = vld [vmem:[%s12973_s3 + $0x268] sm:$0xf]  ;;  %v8384_v7 = vld [vmem:[%s12973_s3 + $0x274] sm:$0xf0]  ;;  %v5860_v12 = vor.u32 %v8352_v5, %v5859_v3 }
  0x42   :  { %980 = vmatpush.bf16.msrb.mxu2 %v5936_v20  ;;  %v6115_v8 = vld [vmem:[%s12973_s3 + $0x368] sm:$0xf]  ;;  %v8416_v9 = vld [vmem:[%s12973_s3 + $0x374] sm:$0xf0]  ;;  %v5988_v13 = vor.u32 %v8384_v7, %v5987_v6 }
  0x43   :  { %994 = vmatpush.bf16.msrb.mxu3 %v6064_v23  ;;  %953 = vmatmul.bf16.vlgmr.msrb.gmra.mxu0 %v9358_v10  ;;  %v5715_v14 = vld [vmem:[%s12973_s3 + $0x48] sm:$0xf]  ;;  %v8316_v15 = vld [vmem:[%s12973_s3 + $0x54] sm:$0xf0]  ;;  %v6116_v18 = vor.u32 %v8416_v9, %v6115_v8 }
  0x44   :  { %1001 = vmatpush.bf16.msra.mxu0 %v5796_v24  ;;  %967 = vmatmul.bf16.vlgmr.msrb.gmra.mxu1 %v9372_v17  ;;  %v5843_v16 = vld [vmem:[%s12973_s3 + $0x148] sm:$0xf]  ;;  %v8348_v19 = vld [vmem:[%s12973_s3 + $0x154] sm:$0xf0]  ;;  %v5716_v24 = vor.u32 %v8316_v15, %v5715_v14 }
  0x45   :  { %1015 = vmatpush.bf16.msra.mxu1 %v5924_v25  ;;  %981 = vmatmul.bf16.vlgmr.msrb.gmra.mxu2 %v9322_v58  ;;  %v5971_v20 = vld [vmem:[%s12973_s3 + $0x248] sm:$0xf]  ;;  %v8380_v21 = vld [vmem:[%s12973_s3 + $0x254] sm:$0xf0]  ;;  %v5844_v25 = vor.u32 %v8348_v19, %v5843_v16 }
  0x46   :  { %1029 = vmatpush.bf16.msra.mxu2 %v6052_v26  ;;  %995 = vmatmul.bf16.vlgmr.msrb.gmra.mxu3 %v9336_v1  ;;  %v6099_v22 = vld [vmem:[%s12973_s3 + $0x348] sm:$0xf]  ;;  %v8412_v23 = vld [vmem:[%s12973_s3 + $0x354] sm:$0xf0]  ;;  %v5972_v26 = vor.u32 %v8380_v21, %v5971_v20 }
  0x47   :  { %1043 = vmatpush.bf16.msra.mxu3 %v6180_v30  ;;  %v5699_v27 = vld [vmem:[%s12973_s3 + $0x28] sm:$0xf]  ;;  %v8312_v28 = vld [vmem:[%s12973_s3 + $0x34] sm:$0xf0]  ;;  %v6100_v30 = vor.u32 %v8412_v23, %v6099_v22 }
  0x48   :  { %1002 = vmatpush.bf16.msra.mxu0 %v5780_v36  ;;  %v5827_v29 = vld [vmem:[%s12973_s3 + $0x128] sm:$0xf]  ;;  %v8344_v31 = vld [vmem:[%s12973_s3 + $0x134] sm:$0xf0] }
  0x49   :  { %1016 = vmatpush.bf16.msra.mxu1 %v5908_v37  ;;  %v5955_v32 = vld [vmem:[%s12973_s3 + $0x228] sm:$0xf]  ;;  %v8376_v33 = vld [vmem:[%s12973_s3 + $0x234] sm:$0xf0] }
  0x4a   :  { %1030 = vmatpush.bf16.msra.mxu2 %v6036_v38  ;;  %v6083_v34 = vld [vmem:[%s12973_s3 + $0x328] sm:$0xf]  ;;  %v8408_v35 = vld [vmem:[%s12973_s3 + $0x334] sm:$0xf0] }
  0x4b   :  { %1044 = vmatpush.bf16.msra.mxu3 %v6164_v42 }
  0x4c   :  { %1003 = vmatpush.bf16.msra.mxu0 %v5764_v48 }
  0x4d   :  { %1017 = vmatpush.bf16.msra.mxu1 %v5892_v49 }
  0x4e   :  { %1031 = vmatpush.bf16.msra.mxu2 %v6020_v50 }
  0x4f   :  { %1045 = vmatpush.bf16.msra.mxu3 %v6148_v54 }
  0x50   :  { %1004 = vmatpush.bf16.msra.mxu0 %v5748_v61 }
  0x51   :  { %1018 = vmatpush.bf16.msra.mxu1 %v5876_v62 }
  0x52   :  { %1032 = vmatpush.bf16.msra.mxu2 %v6004_v63 }
  0x53   :  { %1046 = vmatpush.bf16.msra.mxu3 %v6132_v4 }
  0x54   :  { %1005 = vmatpush.bf16.msra.mxu0 %v5732_v11 }
  0x55   :  { %1019 = vmatpush.bf16.msra.mxu1 %v5860_v12 }
  0x56   :  { %1033 = vmatpush.bf16.msra.mxu2 %v5988_v13 }
  0x57   :  { %1047 = vmatpush.bf16.msra.mxu3 %v6116_v18 }
  0x58   :  { %14 = vsyncpa [#allocation3], 0  ;;  %1006 = vmatpush.bf16.msra.mxu0 %v5716_v24  ;;  %v5700_v36 = vor.u32 %v8312_v28, %v5699_v27  ;;  %v5683_v37 = vld [vmem:[%s12973_s3 + $0x8] sm:$0xf]  ;;  %v8308_v38 = vld [vmem:[%s12973_s3 + $0x14] sm:$0xf0]  ;;  %v5828_v39 = vor.u32 %v8344_v31, %v5827_v29  ;;  %v5956_v40 = vor.u32 %v8376_v33, %v5955_v32  ;;  %v6084_v44 = vor.u32 %v8408_v35, %v6083_v34 }
  0x59   :  { %1020 = vmatpush.bf16.msra.mxu1 %v5844_v25  ;;  %v5811_v41 = vld [vmem:[%s12973_s3 + $0x108] sm:$0xf]  ;;  %v8340_v42 = vld [vmem:[%s12973_s3 + $0x114] sm:$0xf0]  ;;  %v8334_v48 = vld [vmem:[%s12973_s3 + $0xec] sm:$0xf]  ;;  %v5684_v51 = vor.u32 %v8308_v38, %v5683_v37 }
  0x5a   :  { %1034 = vmatpush.bf16.msra.mxu2 %v5972_v26  ;;  %v5939_v43 = vld [vmem:[%s12973_s3 + $0x208] sm:$0xf]  ;;  %v8372_v45 = vld [vmem:[%s12973_s3 + $0x214] sm:$0xf0]  ;;  %v5797_v49 = vld [vmem:[%s12973_s3 + $0xf8] sm:$0xf0]  ;;  %v5812_v55 = vor.u32 %v8340_v42, %v5811_v41 }
  0x5b   :  { %1048 = vmatpush.bf16.msra.mxu3 %v6100_v30  ;;  %v6067_v46 = vld [vmem:[%s12973_s3 + $0x308] sm:$0xf]  ;;  %v8404_v47 = vld [vmem:[%s12973_s3 + $0x314] sm:$0xf0]  ;;  %v8366_v50 = vld [vmem:[%s12973_s3 + $0x1ec] sm:$0xf]  ;;  %v5940_v56 = vor.u32 %v8372_v45, %v5939_v43  ;;  %v5800_v61 = vor.u32 %v8334_v48, %v5797_v49 }
  0x5c   :  { %1007 = vmatpush.bf16.msra.mxu0 %v5700_v36  ;;  %v5925_v52 = vld [vmem:[%s12973_s3 + $0x1f8] sm:$0xf0]  ;;  %v8398_v53 = vld [vmem:[%s12973_s3 + $0x2ec] sm:$0xf]  ;;  %v6068_v60 = vor.u32 %v8404_v47, %v6067_v46  ;;  %vm5380_vm0 = vcmask 523264   ;;  %vm5408_vm1 = vcmask 64512  }
  0x5d   :  { %v6053_v54 = vld [vmem:[%s12973_s3 + $0x2f8] sm:$0xf0]  ;;  %1021 = vmatpush.bf16.msra.mxu1 %v5828_v39  ;;  %v8430_v57 = vld [vmem:[%s12973_s3 + $0x3ec] sm:$0xf]  ;;  %v5928_v62 = vor.u32 %v8366_v50, %v5925_v52  ;;  %vm5497_vm7 = vcmask 57344   ;;  %s5647_s30 = sshll.u32 %s12979_s9, 4  ;;  %s5648_s30 = int_to_ptr.vmem [resolvable:$true] %s5647_s30 }
  0x5e   :  { %1035 = vmatpush.bf16.msra.mxu2 %v5956_v40  ;;  %v6181_v59 = vld [vmem:[%s12973_s3 + $0x3f8] sm:$0xf0]  ;;  %v6056_v63 = vor.u32 %v8398_v53, %v6053_v54  ;;  %v8330_v0 = vld [vmem:[%s12973_s3 + $0xcc] sm:$0xf]  ;;  %s9016_s14 = smov [#allocation2]  }
  0x5f   :  { %1049 = vmatpush.bf16.msra.mxu3 %v6084_v44  ;;  %v5781_v2 = vld [vmem:[%s12973_s3 + $0xd8] sm:$0xf0]  ;;  %v8362_v3 = vld [vmem:[%s12973_s3 + $0x1cc] sm:$0xf]  ;;  %v6184_v4 = vor.u32 %v8430_v57, %v6181_v59 }
  0x60   :  { %1008 = vmatpush.bf16.msra.mxu0 %v5684_v51  ;;  %v5909_v5 = vld [vmem:[%s12973_s3 + $0x1d8] sm:$0xf0]  ;;  %v8394_v6 = vld [vmem:[%s12973_s3 + $0x2cc] sm:$0xf]  ;;  %v5784_v11 = vor.u32 %v8330_v0, %v5781_v2 }
  0x61   :  { %v6037_v7 = vld [vmem:[%s12973_s3 + $0x2d8] sm:$0xf0]  ;;  %1022 = vmatpush.bf16.msra.mxu1 %v5812_v55  ;;  %v8426_v8 = vld [vmem:[%s12973_s3 + $0x3cc] sm:$0xf]  ;;  %v5912_v12 = vor.u32 %v8362_v3, %v5909_v5 }
  0x62   :  { %1036 = vmatpush.bf16.msra.mxu2 %v5940_v56  ;;  %v6165_v9 = vld [vmem:[%s12973_s3 + $0x3d8] sm:$0xf0]  ;;  %v6040_v13 = vor.u32 %v8394_v6, %v6037_v7  ;;  %v8326_v14 = vld [vmem:[%s12973_s3 + $0xac] sm:$0xf] }
  0x63   :  { %1050 = vmatpush.bf16.msra.mxu3 %v6068_v60  ;;  %v5765_v15 = vld [vmem:[%s12973_s3 + $0xb8] sm:$0xf0]  ;;  %v8358_v16 = vld [vmem:[%s12973_s3 + $0x1ac] sm:$0xf]  ;;  %v6168_v18 = vor.u32 %v8426_v8, %v6165_v9  ;;  %1009 = vmatmul.bf16.vlgmr.msra.gmra.mxu0 %v9358_v10 }
  0x64   :  { %1057 = vmatpush.bf16.msrb.mxu0 %v5800_v61  ;;  %v5893_v19 = vld [vmem:[%s12973_s3 + $0x1b8] sm:$0xf0]  ;;  %v8390_v20 = vld [vmem:[%s12973_s3 + $0x2ac] sm:$0xf]  ;;  %1023 = vmatmul.bf16.vlgmr.msra.gmra.mxu1 %v9372_v17  ;;  %v5768_v24 = vor.u32 %v8326_v14, %v5765_v15 }
  0x65   :  { %1071 = vmatpush.bf16.msrb.mxu1 %v5928_v62  ;;  %1037 = vmatmul.bf16.vlgmr.msra.gmra.mxu2 %v9322_v58  ;;  %v6021_v21 = vld [vmem:[%s12973_s3 + $0x2b8] sm:$0xf0]  ;;  %v8422_v22 = vld [vmem:[%s12973_s3 + $0x3ac] sm:$0xf]  ;;  %v5896_v25 = vor.u32 %v8358_v16, %v5893_v19 }
  0x66   :  { %1085 = vmatpush.bf16.msrb.mxu2 %v6056_v63  ;;  %1051 = vmatmul.bf16.vlgmr.msra.gmra.mxu3 %v9336_v1  ;;  %v6149_v23 = vld [vmem:[%s12973_s3 + $0x3b8] sm:$0xf0]  ;;  %v6024_v26 = vor.u32 %v8390_v20, %v6021_v21  ;;  %v8322_v27 = vld [vmem:[%s12973_s3 + $0x8c] sm:$0xf] }
  0x67   :  { %1099 = vmatpush.bf16.msrb.mxu3 %v6184_v4  ;;  %v5749_v28 = vld [vmem:[%s12973_s3 + $0x98] sm:$0xf0]  ;;  %v8354_v29 = vld [vmem:[%s12973_s3 + $0x18c] sm:$0xf]  ;;  %v6152_v30 = vor.u32 %v8422_v22, %v6149_v23 }
  0x68   :  { %1058 = vmatpush.bf16.msrb.mxu0 %v5784_v11  ;;  %v5877_v31 = vld [vmem:[%s12973_s3 + $0x198] sm:$0xf0]  ;;  %v8386_v32 = vld [vmem:[%s12973_s3 + $0x28c] sm:$0xf]  ;;  %v5752_v36 = vor.u32 %v8322_v27, %v5749_v28 }
  0x69   :  { %1072 = vmatpush.bf16.msrb.mxu1 %v5912_v12  ;;  %v6005_v33 = vld [vmem:[%s12973_s3 + $0x298] sm:$0xf0]  ;;  %v8418_v34 = vld [vmem:[%s12973_s3 + $0x38c] sm:$0xf]  ;;  %v5880_v37 = vor.u32 %v8354_v29, %v5877_v31  ;;  %v8439_v29 = vld [vmem:[%s12974_s4 + $0x30] sm:$0xff] }
  0x6a   :  { %1086 = vmatpush.bf16.msrb.mxu2 %v6040_v13  ;;  %v6133_v35 = vld [vmem:[%s12973_s3 + $0x398] sm:$0xf0]  ;;  %v6008_v38 = vor.u32 %v8386_v32, %v6005_v33  ;;  %v8318_v39 = vld [vmem:[%s12973_s3 + $0x6c] sm:$0xf]  ;;  %v8437_v31 = vld [vmem:[%s12974_s4 + $0x20] sm:$0xff] }
  0x6b   :  { %1100 = vmatpush.bf16.msrb.mxu3 %v6168_v18  ;;  %v5733_v40 = vld [vmem:[%s12973_s3 + $0x78] sm:$0xf0]  ;;  %v8350_v41 = vld [vmem:[%s12973_s3 + $0x16c] sm:$0xf]  ;;  %v6136_v42 = vor.u32 %v8418_v34, %v6133_v35  ;;  %v8433_v34 = vld [vmem:[%s12974_s4] sm:$0xff] }
  0x6c   :  { %1059 = vmatpush.bf16.msrb.mxu0 %v5768_v24  ;;  %v5861_v43 = vld [vmem:[%s12973_s3 + $0x178] sm:$0xf0]  ;;  %v8382_v44 = vld [vmem:[%s12973_s3 + $0x26c] sm:$0xf]  ;;  %v5736_v48 = vor.u32 %v8318_v39, %v5733_v40  ;;  %v8445_v35 = vld [vmem:[%s12974_s4 + $0x60] sm:$0xff] }
  0x6d   :  { %1073 = vmatpush.bf16.msrb.mxu1 %v5896_v25  ;;  %v5989_v45 = vld [vmem:[%s12973_s3 + $0x278] sm:$0xf0]  ;;  %v8414_v46 = vld [vmem:[%s12973_s3 + $0x36c] sm:$0xf]  ;;  %v5864_v49 = vor.u32 %v8350_v41, %v5861_v43 }
  0x6e   :  { %1087 = vmatpush.bf16.msrb.mxu2 %v6024_v26  ;;  %v6117_v47 = vld [vmem:[%s12973_s3 + $0x378] sm:$0xf0]  ;;  %v5992_v50 = vor.u32 %v8382_v44, %v5989_v45  ;;  %v8314_v51 = vld [vmem:[%s12973_s3 + $0x4c] sm:$0xf] }
  0x6f   :  { %1101 = vmatpush.bf16.msrb.mxu3 %v6152_v30  ;;  %v5717_v52 = vld [vmem:[%s12973_s3 + $0x58] sm:$0xf0]  ;;  %v8346_v53 = vld [vmem:[%s12973_s3 + $0x14c] sm:$0xf]  ;;  %v6120_v54 = vor.u32 %v8414_v46, %v6117_v47 }
  0x70   :  { %1060 = vmatpush.bf16.msrb.mxu0 %v5752_v36  ;;  %v5845_v55 = vld [vmem:[%s12973_s3 + $0x158] sm:$0xf0]  ;;  %v8378_v56 = vld [vmem:[%s12973_s3 + $0x24c] sm:$0xf]  ;;  %v5720_v61 = vor.u32 %v8314_v51, %v5717_v52 }
  0x71   :  { %1074 = vmatpush.bf16.msrb.mxu1 %v5880_v37  ;;  %v5973_v57 = vld [vmem:[%s12973_s3 + $0x258] sm:$0xf0]  ;;  %v8410_v59 = vld [vmem:[%s12973_s3 + $0x34c] sm:$0xf]  ;;  %v5848_v62 = vor.u32 %v8346_v53, %v5845_v55  ;;  %v8455_v53 = vld [vmem:[%s12974_s4 + $0xb0] sm:$0xff] }
  0x72   :  { %1088 = vmatpush.bf16.msrb.mxu2 %v6008_v38  ;;  %v6101_v60 = vld [vmem:[%s12973_s3 + $0x358] sm:$0xf0]  ;;  %v5976_v63 = vor.u32 %v8378_v56, %v5973_v57  ;;  %v8310_v0 = vld [vmem:[%s12973_s3 + $0x2c] sm:$0xf]  ;;  %v8441_v56 = vld [vmem:[%s12974_s4 + $0x40] sm:$0xff] }
  0x73   :  { %1102 = vmatpush.bf16.msrb.mxu3 %v6136_v42  ;;  %v5701_v2 = vld [vmem:[%s12973_s3 + $0x38] sm:$0xf0]  ;;  %v8342_v3 = vld [vmem:[%s12973_s3 + $0x12c] sm:$0xf]  ;;  %v6104_v4 = vor.u32 %v8410_v59, %v6101_v60  ;;  %v8443_v42 = vld [vmem:[%s12974_s4 + $0x50] sm:$0xff] }
  0x74   :  { %1061 = vmatpush.bf16.msrb.mxu0 %v5736_v48  ;;  %v5829_v5 = vld [vmem:[%s12973_s3 + $0x138] sm:$0xf0]  ;;  %v8374_v6 = vld [vmem:[%s12973_s3 + $0x22c] sm:$0xf]  ;;  %v5704_v11 = vor.u32 %v8310_v0, %v5701_v2 }
  0x75   :  { %1075 = vmatpush.bf16.msrb.mxu1 %v5864_v49  ;;  %v5957_v7 = vld [vmem:[%s12973_s3 + $0x238] sm:$0xf0]  ;;  %v8406_v8 = vld [vmem:[%s12973_s3 + $0x32c] sm:$0xf]  ;;  %v5832_v12 = vor.u32 %v8342_v3, %v5829_v5 }
  0x76   :  { %1089 = vmatpush.bf16.msrb.mxu2 %v5992_v50  ;;  %v6085_v9 = vld [vmem:[%s12973_s3 + $0x338] sm:$0xf0]  ;;  %v5960_v13 = vor.u32 %v8374_v6, %v5957_v7  ;;  %v8306_v14 = vld [vmem:[%s12973_s3 + $0xc] sm:$0xf]  ;;  %v8461_v6 = vld [vmem:[%s12974_s4 + $0xe0] sm:$0xff] }
  0x77   :  { %1103 = vmatpush.bf16.msrb.mxu3 %v6120_v54  ;;  %v5685_v15 = vld [vmem:[%s12973_s3 + $0x18] sm:$0xf0]  ;;  %v8338_v16 = vld [vmem:[%s12973_s3 + $0x10c] sm:$0xf]  ;;  %v6088_v18 = vor.u32 %v8406_v8, %v6085_v9 }
  0x78   :  { %1062 = vmatpush.bf16.msrb.mxu0 %v5720_v61  ;;  %v5813_v19 = vld [vmem:[%s12973_s3 + $0x118] sm:$0xf0]  ;;  %v8370_v20 = vld [vmem:[%s12973_s3 + $0x20c] sm:$0xf]  ;;  %v5688_v24 = vor.u32 %v8306_v14, %v5685_v15  ;;  %v8449_v15 = vld [vmem:[%s12974_s4 + $0x80] sm:$0xff] }
  0x79   :  { %1076 = vmatpush.bf16.msrb.mxu1 %v5848_v62  ;;  %v5941_v21 = vld [vmem:[%s12973_s3 + $0x218] sm:$0xf0]  ;;  %v8402_v22 = vld [vmem:[%s12973_s3 + $0x30c] sm:$0xf]  ;;  %v5816_v25 = vor.u32 %v8338_v16, %v5813_v19  ;;  %v8453_v62 = vld [vmem:[%s12974_s4 + $0xa0] sm:$0xff] }
  0x7a   :  { %1090 = vmatpush.bf16.msrb.mxu2 %v5976_v63  ;;  %v6069_v23 = vld [vmem:[%s12973_s3 + $0x318] sm:$0xf0]  ;;  %v5944_v26 = vor.u32 %v8370_v20, %v5941_v21  ;;  %v8438_v30 = vld [vmem:[%s12974_s4 + $0x28] sm:$0xff]  ;;  %v8463_v63 = vld [vmem:[%s12974_s4 + $0xf0] sm:$0xff] }
  0x7b   :  { %1104 = vmatpush.bf16.msrb.mxu3 %v6104_v4  ;;  %v6072_v27 = vor.u32 %v8402_v22, %v6069_v23  ;;  %v8440_v28 = vld [vmem:[%s12974_s4 + $0x38] sm:$0xff]  ;;  %v8434_v32 = vld [vmem:[%s12974_s4 + $0x8] sm:$0xff]  ;;  %v8451_v4 = vld [vmem:[%s12974_s4 + $0x90] sm:$0xff] }
  0x7c   :  { %1063 = vmatpush.bf16.msrb.mxu0 %v5704_v11  ;;  %v8446_v33 = vld [vmem:[%s12974_s4 + $0x68] sm:$0xff]  ;;  %v8444_v41 = vld [vmem:[%s12974_s4 + $0x58] sm:$0xff]  ;;  %v6683_v16 = vld [vmem:[%s12975_s5 + $0x2e0] sm:$0xf] }
  0x7d   :  { %1077 = vmatpush.bf16.msrb.mxu1 %v5832_v12  ;;  %v8456_v43 = vld [vmem:[%s12974_s4 + $0xb8] sm:$0xff]  ;;  %v8442_v51 = vld [vmem:[%s12974_s4 + $0x48] sm:$0xff]  ;;  %v8459_v22 = vld [vmem:[%s12974_s4 + $0xd0] sm:$0xff] }
  0x7e   :  { %1091 = vmatpush.bf16.msrb.mxu2 %v5960_v13  ;;  %v8454_v57 = vld [vmem:[%s12974_s4 + $0xa8] sm:$0xff]  ;;  %v8464_v60 = vld [vmem:[%s12974_s4 + $0xf8] sm:$0xff] }
  0x7f   :  { %1105 = vmatpush.bf16.msrb.mxu3 %v6088_v18  ;;  %v8452_v0 = vld [vmem:[%s12974_s4 + $0x98] sm:$0xff]  ;;  %v8462_v2 = vld [vmem:[%s12974_s4 + $0xe8] sm:$0xff]  ;;  %v8559_v18 = vld [vmem:[%s12975_s5 + $0x2ec] sm:$0xf0] }
  0x80   :  { %1064 = vmatpush.bf16.msrb.mxu0 %v5688_v24  ;;  %v8450_v9 = vld [vmem:[%s12974_s4 + $0x88] sm:$0xff]  ;;  %v8460_v12 = vld [vmem:[%s12974_s4 + $0xd8] sm:$0xff]  ;;  %v6684_v20 = vor.u32 %v8559_v18, %v6683_v16  ;;  %v8511_v18 = vld [vmem:[%s12975_s5 + $0x16c] sm:$0xf0] }
  0x81   :  { %1078 = vmatpush.bf16.msrb.mxu1 %v5816_v25  ;;  %v6427_v25 = vld [vmem:[%s12975_s5 + $0xe0] sm:$0xf] }
  0x82   :  { %1092 = vmatpush.bf16.msrb.mxu2 %v5944_v26  ;;  %v8495_v26 = vld [vmem:[%s12975_s5 + $0xec] sm:$0xf0] }
  0x83   :  { %1106 = vmatpush.bf16.msrb.mxu3 %v6072_v27  ;;  %1065 = vmatmul.bf16.vlgmr.msrb.gmra.mxu0 %v9358_v10  ;;  %v8436_v10 = vld [vmem:[%s12974_s4 + $0x18] sm:$0xff]  ;;  %v6555_v27 = vld [vmem:[%s12975_s5 + $0x1e0] sm:$0xf] }
  0x84   :  { %1317 = vmatpush.bf16.msra.mxu0 %v8440_v28  ;;  %1079 = vmatmul.bf16.vlgmr.msrb.gmra.mxu1 %v9372_v17  ;;  %v8447_v17 = vld [vmem:[%s12974_s4 + $0x70] sm:$0xff] }
  0x85   :  { %1093 = vmatmul.bf16.vlgmr.msrb.gmra.mxu2 %v9322_v58  ;;  %v8448_v58 = vld [vmem:[%s12974_s4 + $0x78] sm:$0xff] }
  0x86   :  { %1107 = vmatmul.bf16.vlgmr.msrb.gmra.mxu3 %v9336_v1  ;;  %1331 = vmatpush.bf16.msra.mxu1 %v8448_v58  ;;  %v8435_v1 = vld [vmem:[%s12974_s4 + $0x10] sm:$0xff] }
  0x87   :  { %1345 = vmatpush.bf16.msra.mxu2 %v8456_v43  ;;  %1359 = vmatpush.bf16.msra.mxu3 %v8464_v60  ;;  %v8555_v58 = vld [vmem:[%s12975_s5 + $0x2cc] sm:$0xf0]  ;;  %v6795_v60 = vld [vmem:[%s12975_s5 + $0x3c0] sm:$0xf] }
  0x88   :  { %1318 = vmatpush.bf16.msra.mxu0 %v8439_v29 }
  0x8a   :  { %1332 = vmatpush.bf16.msra.mxu1 %v8447_v17 }
  0x8b   :  { %1346 = vmatpush.bf16.msra.mxu2 %v8455_v53  ;;  %1360 = vmatpush.bf16.msra.mxu3 %v8463_v63  ;;  %v6379_v63 = vld [vmem:[%s12975_s5 + $0x80] sm:$0xf] }
  0x8c   :  { %1319 = vmatpush.bf16.msra.mxu0 %v8438_v30  ;;  %v6428_v30 = vor.u32 %v8495_v26, %v6427_v25  ;;  %v6763_v25 = vld [vmem:[%s12975_s5 + $0x380] sm:$0xf]  ;;  %v8579_v26 = vld [vmem:[%s12975_s5 + $0x38c] sm:$0xf0] }
  0x8e   :  { %1333 = vmatpush.bf16.msra.mxu1 %v8446_v33 }
  0x8f   :  { %1347 = vmatpush.bf16.msra.mxu2 %v8454_v57  ;;  %1361 = vmatpush.bf16.msra.mxu3 %v8462_v2  ;;  %v6507_v2 = vld [vmem:[%s12975_s5 + $0x180] sm:$0xf] }
  0x90   :  { %1320 = vmatpush.bf16.msra.mxu0 %v8437_v31  ;;  %v8527_v31 = vld [vmem:[%s12975_s5 + $0x1ec] sm:$0xf0] }
  0x92   :  { %1334 = vmatpush.bf16.msra.mxu1 %v8445_v35  ;;  %v6411_v35 = vld [vmem:[%s12975_s5 + $0xc0] sm:$0xf] }
  0x93   :  { %1348 = vmatpush.bf16.msra.mxu2 %v8453_v62  ;;  %1362 = vmatpush.bf16.msra.mxu3 %v8461_v6  ;;  %v8543_v6 = vld [vmem:[%s12975_s5 + $0x26c] sm:$0xf0] }
  0x94   :  { %1321 = vmatpush.bf16.msra.mxu0 %v8436_v10  ;;  %v6667_v10 = vld [vmem:[%s12975_s5 + $0x2c0] sm:$0xf] }
  0x95   :  { %v6668_v17 = vor.u32 %v8555_v58, %v6667_v10  ;;  %v8507_v58 = vld [vmem:[%s12975_s5 + $0x14c] sm:$0xf0] }
  0x96   :  { %1335 = vmatpush.bf16.msra.mxu1 %v8444_v41  ;;  %v6651_v41 = vld [vmem:[%s12975_s5 + $0x2a0] sm:$0xf] }
  0x97   :  { %1349 = vmatpush.bf16.msra.mxu2 %v8452_v0  ;;  %1363 = vmatpush.bf16.msra.mxu3 %v8460_v12  ;;  %v8483_v0 = vld [vmem:[%s12975_s5 + $0x8c] sm:$0xf0] }
  0x98   :  { %1322 = vmatpush.bf16.msra.mxu0 %v8435_v1  ;;  %v6556_v1 = vor.u32 %v8527_v31, %v6555_v27  ;;  %v6764_v27 = vor.u32 %v8579_v26, %v6763_v25  ;;  %v6475_v31 = vld [vmem:[%s12975_s5 + $0x140] sm:$0xf]  ;;  %v8563_v26 = vld [vmem:[%s12975_s5 + $0x30c] sm:$0xf0] }
  0x99   :  { %v6699_v25 = vld [vmem:[%s12975_s5 + $0x300] sm:$0xf] }
  0x9a   :  { %1336 = vmatpush.bf16.msra.mxu1 %v8443_v42  ;;  %v8457_v42 = vld [vmem:[%s12974_s4 + $0xc0] sm:$0xff] }
  0x9b   :  { %1350 = vmatpush.bf16.msra.mxu2 %v8451_v4  ;;  %1364 = vmatpush.bf16.msra.mxu3 %v8459_v22  ;;  %v8515_v4 = vld [vmem:[%s12975_s5 + $0x18c] sm:$0xf0] }
  0x9c   :  { %1323 = vmatpush.bf16.msra.mxu0 %v8434_v32  ;;  %v8458_v32 = vld [vmem:[%s12974_s4 + $0xc8] sm:$0xff] }
  0x9e   :  { %1337 = vmatpush.bf16.msra.mxu1 %v8442_v51  ;;  %v8487_v51 = vld [vmem:[%s12975_s5 + $0xac] sm:$0xf0] }
  0x9f   :  { %1351 = vmatpush.bf16.msra.mxu2 %v8450_v9  ;;  %1365 = vmatpush.bf16.msra.mxu3 %v8458_v32  ;;  %v6779_v9 = vld [vmem:[%s12975_s5 + $0x3a0] sm:$0xf] }
  0xa0   :  { %1324 = vmatpush.bf16.msra.mxu0 %v8433_v34 }
  0xa2   :  { %1338 = vmatpush.bf16.msra.mxu1 %v8441_v56  ;;  %v8547_v56 = vld [vmem:[%s12975_s5 + $0x28c] sm:$0xf0] }
  0xa3   :  { %1352 = vmatpush.bf16.msra.mxu2 %v8449_v15  ;;  %1366 = vmatpush.bf16.msra.mxu3 %v8457_v42  ;;  %v6491_v15 = vld [vmem:[%s12975_s5 + $0x160] sm:$0xf] }
  0xa4   :  { %v898_v36 = vpop.f32.mrf.mxu0  ;;  %2221 = vmatpush.bf16.msrb.mxu0 %v6428_v30  ;;  %v6492_v22 = vor.u32 %v8511_v18, %v6491_v15  ;;  %v8475_v30 = vld [vmem:[%s12975_s5 + $0x4c] sm:$0xf0]  ;;  %v6459_v42 = vld [vmem:[%s12975_s5 + $0x120] sm:$0xf]  ;;  %v8489_v18 = vld [vmem:[%s12975_s5 + $0xc4] sm:$0xf] }
  0xa5   :  { %v912_v37 = vpop.f32.mrf.mxu1 }
  0xa6   :  { %v913_v38 = vadd.f32 %v912_v37, %v898_v36  ;;  %2234 = vmatpush.bf16.msrb.mxu1 %v6556_v1  ;;  %v8491_v36 = vld [vmem:[%s12975_s5 + $0xcc] sm:$0xf0]  ;;  %v6539_v37 = vld [vmem:[%s12975_s5 + $0x1c0] sm:$0xf] }
  0xa7   :  { %2247 = vmatpush.bf16.msrb.mxu2 %v6684_v20  ;;  %v8539_v20 = vld [vmem:[%s12975_s5 + $0x24c] sm:$0xf0]  ;;  %v6587_v1 = vld [vmem:[%s12975_s5 + $0x220] sm:$0xf] }
  0xa8   :  { %v926_v39 = vpop.f32.mrf.mxu2 }
  0xa9   :  { %v940_v40 = vpop.f32.mrf.mxu3  ;;  %v927_v44 = vadd.f32 %v926_v39, %v913_v38  ;;  %v6412_v39 = vor.u32 %v8491_v36, %v6411_v35  ;;  %v6747_v35 = vld [vmem:[%s12975_s5 + $0x360] sm:$0xf]  ;;  %v8575_v36 = vld [vmem:[%s12975_s5 + $0x36c] sm:$0xf0] }
  0xab   :  { %v941_v47 = vadd.f32 %v940_v40, %v927_v44  ;;  %2248 = vmatpush.bf16.msrb.mxu2 %v6668_v17  ;;  %v8523_v40 = vld [vmem:[%s12975_s5 + $0x1cc] sm:$0xf0]  ;;  %2222 = vmatpush.bf16.msrb.mxu0 %v6412_v39 }
  0xac   :  { %v900_v45 = vpop.f32.mrf.mxu0  ;;  %v6540_v43 = vor.u32 %v8523_v40, %v6539_v37  ;;  %v8551_v44 = vld [vmem:[%s12975_s5 + $0x2ac] sm:$0xf0]  ;;  %v6331_v40 = vld [vmem:[%s12975_s5 + $0x20] sm:$0xf] }
  0xad   :  { %v914_v46 = vpop.f32.mrf.mxu1  ;;  %v1113_v54 = vmax.f32 %v941_v47, 0.0  ;;  %v8535_v17 = vld [vmem:[%s12975_s5 + $0x22c] sm:$0xf0] }
  0xae   :  { %v915_v48 = vadd.f32 %v914_v46, %v900_v45  ;;  %v6811_v45 = vld [vmem:[%s12975_s5 + $0x3e0] sm:$0xf]  ;;  %v8591_v46 = vld [vmem:[%s12975_s5 + $0x3ec] sm:$0xf0]  ;;  %2235 = vmatpush.bf16.msrb.mxu1 %v6540_v43 }
  0xb0   :  { %v928_v49 = vpop.f32.mrf.mxu2 }
  0xb1   :  { %v942_v50 = vpop.f32.mrf.mxu3  ;;  %v929_v52 = vadd.f32 %v928_v49, %v915_v48  ;;  %v6652_v48 = vor.u32 %v8551_v44, %v6651_v41  ;;  %v6812_v49 = vor.u32 %v8591_v46, %v6811_v45  ;;  %v8471_v41 = vld [vmem:[%s12975_s5 + $0x2c] sm:$0xf0]  ;;  %v6571_v46 = vld [vmem:[%s12975_s5 + $0x200] sm:$0xf] }
  0xb2   :  { %v6332_v44 = vor.u32 %v8471_v41, %v6331_v40  ;;  %v8503_v45 = vld [vmem:[%s12975_s5 + $0x12c] sm:$0xf0]  ;;  %v6509_v41 = vld [vmem:[%s12975_s5 + $0x190] sm:$0xf0] }
  0xb3   :  { %v943_v55 = vadd.f32 %v942_v50, %v929_v52  ;;  %v6395_v50 = vld [vmem:[%s12975_s5 + $0xa0] sm:$0xf]  ;;  %2249 = vmatpush.bf16.msrb.mxu2 %v6652_v48  ;;  %2260 = vmatpush.bf16.msrb.mxu3 %v6812_v49  ;;  %v6460_v49 = vor.u32 %v8503_v45, %v6459_v42  ;;  %v6637_v45 = vld [vmem:[%s12975_s5 + $0x290] sm:$0xf0] }
  0xb4   :  { %v6523_v52 = vld [vmem:[%s12975_s5 + $0x1a0] sm:$0xf]  ;;  %v6396_v53 = vor.u32 %v8487_v51, %v6395_v50 }
  0xb5   :  { %v1117_v59 = vmax.f32 %v943_v55, 0.0  ;;  %v6635_v55 = vld [vmem:[%s12975_s5 + $0x280] sm:$0xf] }
  0xb6   :  { %2223 = vmatpush.bf16.msrb.mxu0 %v6396_v53  ;;  %v6731_v51 = vld [vmem:[%s12975_s5 + $0x340] sm:$0xf]  ;;  %v8571_v53 = vld [vmem:[%s12975_s5 + $0x34c] sm:$0xf0] }
  0xb7   :  { %v1121_v61 = vpack.c.bf16 %v1117_v59, %v1113_v54  ;;  %v8519_v54 = vld [vmem:[%s12975_s5 + $0x1ac] sm:$0xf0]  ;;  %v6636_v59 = vor.u32 %v8547_v56, %v6635_v55  ;;  %v6732_v55 = vor.u32 %v8571_v53, %v6731_v51  ;;  %v6315_v56 = vld [vmem:[%s12975_s5] sm:$0xf] }
  0xb8   :  { %v6524_v57 = vor.u32 %v8519_v54, %v6523_v52 }
  0xb9   :  { %1325 = vmatmul.bf16.vlgmr.msra.gmra.mxu0 %v1121_v61  ;;  %v8587_v61 = vld [vmem:[%s12975_s5 + $0x3cc] sm:$0xf0]  ;;  %2250 = vmatpush.bf16.msrb.mxu2 %v6636_v59  ;;  %v6443_v59 = vld [vmem:[%s12975_s5 + $0x100] sm:$0xf] }
  0xba   :  { %v6796_v62 = vor.u32 %v8587_v61, %v6795_v60  ;;  %2236 = vmatpush.bf16.msrb.mxu1 %v6524_v57  ;;  %v8467_v57 = vld [vmem:[%s12975_s5 + $0xc] sm:$0xf0] }
  0xbb   :  { %v6316_v60 = vor.u32 %v8467_v57, %v6315_v56  ;;  %v8499_v61 = vld [vmem:[%s12975_s5 + $0x10c] sm:$0xf0]  ;;  %v8541_v56 = vld [vmem:[%s12975_s5 + $0x264] sm:$0xf]  ;;  %v6621_v57 = vld [vmem:[%s12975_s5 + $0x270] sm:$0xf0] }
  0xbc   :  { %2261 = vmatpush.bf16.msrb.mxu3 %v6796_v62  ;;  %v8493_v62 = vld [vmem:[%s12975_s5 + $0xe4] sm:$0xf] }
  0xc0   :  { %v954_v3 = vpop.f32.mrf.mxu0 }
  0xc1   :  { %v968_v5 = vpop.f32.mrf.mxu1 }
  0xc2   :  { %v969_v7 = vadd.f32 %v968_v5, %v954_v3  ;;  %v6380_v3 = vor.u32 %v8483_v0, %v6379_v63  ;;  %v6619_v5 = vld [vmem:[%s12975_s5 + $0x260] sm:$0xf]  ;;  %v6429_v63 = vld [vmem:[%s12975_s5 + $0xf0] sm:$0xf0] }
  0xc4   :  { %2224 = vmatpush.bf16.msrb.mxu0 %v6380_v3  ;;  %v6432_v3 = vor.u32 %v8493_v62, %v6429_v63  ;;  %v8505_v62 = vld [vmem:[%s12975_s5 + $0x144] sm:$0xf] }
  0xc8   :  { %v982_v8 = vpop.f32.mrf.mxu2  ;;  %v956_v14 = vpop.f32.mrf.mxu0 }
  0xc9   :  { %v996_v11 = vpop.f32.mrf.mxu3  ;;  %v983_v13 = vadd.f32 %v982_v8, %v969_v7  ;;  %v970_v19 = vpop.f32.mrf.mxu1  ;;  %v6508_v7 = vor.u32 %v8515_v4, %v6507_v2  ;;  %v6620_v8 = vor.u32 %v8543_v6, %v6619_v5  ;;  %v6444_v2 = vor.u32 %v8499_v61, %v6443_v59  ;;  %v8525_v4 = vld [vmem:[%s12975_s5 + $0x1e4] sm:$0xf]  ;;  %v6557_v5 = vld [vmem:[%s12975_s5 + $0x1f0] sm:$0xf0] }
  0xca   :  { %v971_v21 = vadd.f32 %v970_v19, %v956_v14  ;;  %v8479_v14 = vld [vmem:[%s12975_s5 + $0x6c] sm:$0xf0]  ;;  %v6603_v19 = vld [vmem:[%s12975_s5 + $0x240] sm:$0xf]  ;;  %v6349_v61 = vld [vmem:[%s12975_s5 + $0x50] sm:$0xf0] }
  0xcb   :  { %v997_v23 = vadd.f32 %v996_v11, %v983_v13  ;;  %v8583_v11 = vld [vmem:[%s12975_s5 + $0x3ac] sm:$0xf0]  ;;  %v6363_v13 = vld [vmem:[%s12975_s5 + $0x60] sm:$0xf]  ;;  %2237 = vmatpush.bf16.msrb.mxu1 %v6508_v7  ;;  %2251 = vmatpush.bf16.msrb.mxu2 %v6620_v8  ;;  %v6560_v8 = vor.u32 %v8525_v4, %v6557_v5 }
  0xcc   :  { %v6780_v12 = vor.u32 %v8583_v11, %v6779_v9  ;;  %v6364_v16 = vor.u32 %v8479_v14, %v6363_v13  ;;  %v6715_v9 = vld [vmem:[%s12975_s5 + $0x320] sm:$0xf]  ;;  %v8567_v11 = vld [vmem:[%s12975_s5 + $0x32c] sm:$0xf0]  ;;  %v8557_v13 = vld [vmem:[%s12975_s5 + $0x2e4] sm:$0xf] }
  0xcd   :  { %v1114_v33 = vmax.f32 %v997_v23, 0.0  ;;  %v6604_v23 = vor.u32 %v8539_v20, %v6603_v19  ;;  %v6685_v14 = vld [vmem:[%s12975_s5 + $0x2f0] sm:$0xf0]  ;;  %v6716_v15 = vor.u32 %v8567_v11, %v6715_v9  ;;  %v8521_v20 = vld [vmem:[%s12975_s5 + $0x1c4] sm:$0xf] }
  0xce   :  { %2262 = vmatpush.bf16.msrb.mxu3 %v6780_v12  ;;  %2225 = vmatpush.bf16.msrb.mxu0 %v6364_v16  ;;  %v6413_v19 = vld [vmem:[%s12975_s5 + $0xd0] sm:$0xf0]  ;;  %v1373_v4 = vld [vmem:[%s12971_s1] sm:$0xff] }
  0xcf   :  { %2238 = vmatpush.bf16.msrb.mxu1 %v6492_v22  ;;  %2252 = vmatpush.bf16.msrb.mxu2 %v6604_v23  ;;  %v6541_v22 = vld [vmem:[%s12975_s5 + $0x1d0] sm:$0xf0]  ;;  %v1569_v9 = vunpack.c.l.b16 %v1373_v4  ;;  %v1570_v11 = vunpack.c.h.b16 %v1373_v4  ;;  %v8488_v4 = vld [vmem:[%s12975_s5 + $0xb4] sm:$0xf0] }
  0xd0   :  { %v984_v24 = vpop.f32.mrf.mxu2 }
  0xd1   :  { %v985_v28 = vadd.f32 %v984_v24, %v971_v21  ;;  %v998_v29 = vpop.f32.mrf.mxu3 }
  0xd2   :  { %2263 = vmatpush.bf16.msrb.mxu3 %v6764_v27  ;;  %v6688_v27 = vor.u32 %v8557_v13, %v6685_v14  ;;  %v8469_v14 = vld [vmem:[%s12975_s5 + $0x24] sm:$0xf] }
  0xd3   :  { %v999_v34 = vadd.f32 %v998_v29, %v985_v28  ;;  %v6347_v29 = vld [vmem:[%s12975_s5 + $0x40] sm:$0xf] }
  0xd4   :  { %v6348_v10 = vor.u32 %v8475_v30, %v6347_v29  ;;  %v6669_v29 = vld [vmem:[%s12975_s5 + $0x2d0] sm:$0xf0]  ;;  %v6700_v30 = vor.u32 %v8563_v26, %v6699_v25  ;;  %v8533_v26 = vld [vmem:[%s12975_s5 + $0x224] sm:$0xf] }
  0xd5   :  { %v1118_v38 = vmax.f32 %v999_v34, 0.0  ;;  %v6588_v34 = vor.u32 %v8535_v17, %v6587_v1  ;;  %v8517_v1 = vld [vmem:[%s12975_s5 + $0x1a4] sm:$0xf] }
  0xd6   :  { %2226 = vmatpush.bf16.msrb.mxu0 %v6348_v10  ;;  %v8485_v10 = vld [vmem:[%s12975_s5 + $0xa4] sm:$0xf] }
  0xd7   :  { %v1122_v47 = vpack.c.bf16 %v1118_v38, %v1114_v33  ;;  %v6476_v33 = vor.u32 %v8507_v58, %v6475_v31  ;;  %v6748_v38 = vor.u32 %v8575_v36, %v6747_v35  ;;  %2253 = vmatpush.bf16.msrb.mxu2 %v6588_v34  ;;  %v6397_v58 = vld [vmem:[%s12975_s5 + $0xb0] sm:$0xf0]  ;;  %v8549_v35 = vld [vmem:[%s12975_s5 + $0x2a4] sm:$0xf] }
  0xd8   :  { %v6400_v17 = vor.u32 %v8485_v10, %v6397_v58  ;;  %v6653_v36 = vld [vmem:[%s12975_s5 + $0x2b0] sm:$0xf0]  ;;  %v8497_v10 = vld [vmem:[%s12975_s5 + $0x104] sm:$0xf] }
  0xd9   :  { %1339 = vmatmul.bf16.vlgmr.msra.gmra.mxu1 %v1122_v47  ;;  %v8531_v47 = vld [vmem:[%s12975_s5 + $0x20c] sm:$0xf0]  ;;  %2264 = vmatpush.bf16.msrb.mxu3 %v6748_v38  ;;  %v6381_v38 = vld [vmem:[%s12975_s5 + $0x90] sm:$0xf0] }
  0xda   :  { %2239 = vmatpush.bf16.msrb.mxu1 %v6476_v33  ;;  %v6572_v50 = vor.u32 %v8531_v47, %v6571_v46  ;;  %2227 = vmatpush.bf16.msrb.mxu0 %v6332_v44  ;;  %v8545_v44 = vld [vmem:[%s12975_s5 + $0x284] sm:$0xf]  ;;  %v6365_v47 = vld [vmem:[%s12975_s5 + $0x70] sm:$0xf0] }
  0xdb   :  { %v8477_v46 = vld [vmem:[%s12975_s5 + $0x64] sm:$0xf]  ;;  %v6445_v58 = vld [vmem:[%s12975_s5 + $0x110] sm:$0xf0] }
  0xdc   :  { %2254 = vmatpush.bf16.msrb.mxu2 %v6572_v50  ;;  %v6368_v51 = vor.u32 %v8477_v46, %v6365_v47  ;;  %v6419_v47 = vld [vmem:[%s12975_s5 + $0xc8] sm:$0xf] }
  0xdd   :  { %2265 = vmatpush.bf16.msrb.mxu3 %v6732_v55  ;;  %v6640_v55 = vor.u32 %v8545_v44, %v6637_v45  ;;  %v6691_v44 = vld [vmem:[%s12975_s5 + $0x2e8] sm:$0xf]  ;;  %v8560_v45 = vld [vmem:[%s12975_s5 + $0x2f4] sm:$0xf0] }
  0xde   :  { %2240 = vmatpush.bf16.msrb.mxu1 %v6460_v49  ;;  %2228 = vmatpush.bf16.msrb.mxu0 %v6316_v60  ;;  %v8473_v60 = vld [vmem:[%s12975_s5 + $0x44] sm:$0xf] }
  0xdf   :  { %v6352_v63 = vor.u32 %v8473_v60, %v6349_v61  ;;  %v6692_v61 = vor.u32 %v8560_v45, %v6691_v44  ;;  %v6749_v44 = vld [vmem:[%s12975_s5 + $0x370] sm:$0xf0] }
  0xe0   :  { %v1010_v21 = vpop.f32.mrf.mxu0 }
  0xe1   :  { %v1024_v24 = vpop.f32.mrf.mxu1  ;;  %2266 = vmatpush.bf16.msrb.mxu3 %v6716_v15  ;;  %v6333_v15 = vld [vmem:[%s12975_s5 + $0x30] sm:$0xf0] }
  0xe2   :  { %v1025_v28 = vadd.f32 %v1024_v24, %v1010_v21  ;;  %2241 = vmatpush.bf16.msrb.mxu1 %v6444_v2  ;;  %2273 = vmatpush.bf16.msra.mxu0 %v6432_v3  ;;  %v6416_v21 = vor.u32 %v8489_v18, %v6413_v19  ;;  %v6544_v24 = vor.u32 %v8521_v20, %v6541_v22 }
  0xe3   :  { %v10299_v18 = vpack.c.b16 %v1569_v9, %v1569_v9  ;;  %v10301_v19 = vpack.c.b16 %v1570_v11, %v1570_v11  ;;  %v6336_v20 = vor.u32 %v8469_v14, %v6333_v15  ;;  %v8520_v11 = vld [vmem:[%s12975_s5 + $0x1b4] sm:$0xf0]  ;;  %v6659_v14 = vld [vmem:[%s12975_s5 + $0x2a8] sm:$0xf] }
  0xe4   :  { %v8552_v15 = vld [vmem:[%s12975_s5 + $0x2b4] sm:$0xf0] }
  0xe5   :  { %2267 = vmatpush.bf16.msrb.mxu3 %v6700_v30  ;;  %2229 = vmatmul.bf16.vlgmr.msrb.gmra.mxu0 %v10299_v18  ;;  %v6317_v30 = vld [vmem:[%s12975_s5 + $0x10] sm:$0xf0] }
  0xe6   :  { %2286 = vmatpush.bf16.msra.mxu1 %v6560_v8  ;;  %2274 = vmatpush.bf16.msra.mxu0 %v6416_v21  ;;  %v6605_v8 = vld [vmem:[%s12975_s5 + $0x250] sm:$0xf0] }
  0xe7   :  { %v6461_v21 = vld [vmem:[%s12975_s5 + $0x130] sm:$0xf0] }
  0xe8   :  { %v1038_v32 = vpop.f32.mrf.mxu2  ;;  %v1012_v43 = vpop.f32.mrf.mxu0 }
  0xe9   :  { %v1052_v37 = vpop.f32.mrf.mxu3  ;;  %v1039_v39 = vadd.f32 %v1038_v32, %v1025_v28  ;;  %v1026_v48 = vpop.f32.mrf.mxu1  ;;  %v8553_v28 = vld [vmem:[%s12975_s5 + $0x2c4] sm:$0xf]  ;;  %v6525_v32 = vld [vmem:[%s12975_s5 + $0x1b0] sm:$0xf0]  ;;  %2242 = vmatmul.bf16.vlgmr.msrb.gmra.mxu1 %v10301_v19 }
  0xea   :  { %v1027_v52 = vadd.f32 %v1026_v48, %v1012_v43  ;;  %2287 = vmatpush.bf16.msra.mxu1 %v6544_v24  ;;  %v6528_v33 = vor.u32 %v8517_v1, %v6525_v32  ;;  %v6672_v34 = vor.u32 %v8553_v28, %v6669_v29  ;;  %2275 = vmatpush.bf16.msra.mxu0 %v6400_v17  ;;  %v8509_v48 = vld [vmem:[%s12975_s5 + $0x164] sm:$0xf]  ;;  %v6589_v28 = vld [vmem:[%s12975_s5 + $0x230] sm:$0xf0]  ;;  %v6435_v1 = vld [vmem:[%s12975_s5 + $0xe8] sm:$0xf] }
  0xeb   :  { %v1053_v54 = vadd.f32 %v1052_v37, %v1039_v39  ;;  %v8481_v37 = vld [vmem:[%s12975_s5 + $0x84] sm:$0xf]  ;;  %v6656_v43 = vor.u32 %v8549_v35, %v6653_v36  ;;  %v6448_v32 = vor.u32 %v8497_v10, %v6445_v58  ;;  %v8528_v35 = vld [vmem:[%s12975_s5 + $0x1f4] sm:$0xf0]  ;;  %v6371_v10 = vld [vmem:[%s12975_s5 + $0x68] sm:$0xf] }
  0xec   :  { %v8513_v39 = vld [vmem:[%s12975_s5 + $0x184] sm:$0xf]  ;;  %v6384_v40 = vor.u32 %v8481_v37, %v6381_v38  ;;  %v6592_v37 = vor.u32 %v8533_v26, %v6589_v28  ;;  %v8516_v26 = vld [vmem:[%s12975_s5 + $0x194] sm:$0xf0]  ;;  %v6660_v28 = vor.u32 %v8552_v15, %v6659_v14  ;;  %v6437_v14 = vld [vmem:[%s12975_s5 + $0xf8] sm:$0xf0] }
  0xed   :  { %v1115_v12 = vmax.f32 %v1053_v54, 0.0  ;;  %v6512_v42 = vor.u32 %v8513_v39, %v6509_v41  ;;  %v10258_v54 = vld [vmem:[%s12971_s1 + $0x8] sm:$0xff]  ;;  %v8465_v29 = vld [vmem:[%s12975_s5 + $0x4] sm:$0xf]  ;;  %v8480_v58 = vld [vmem:[%s12975_s5 + $0x74] sm:$0xf0] }
  0xee   :  { %2288 = vmatpush.bf16.msra.mxu1 %v6528_v33  ;;  %2276 = vmatpush.bf16.msra.mxu0 %v6384_v40  ;;  %v1571_v59 = vunpack.c.l.b16 %v10258_v54  ;;  %v8496_v33 = vld [vmem:[%s12975_s5 + $0xf4] sm:$0xf0]  ;;  %v8529_v38 = vld [vmem:[%s12975_s5 + $0x204] sm:$0xf] }
  0xef   :  { %v6436_v39 = vor.u32 %v8496_v33, %v6435_v1  ;;  %v6499_v1 = vld [vmem:[%s12975_s5 + $0x168] sm:$0xf]  ;;  %v6372_v33 = vor.u32 %v8480_v58, %v6371_v10  ;;  %v6421_v10 = vld [vmem:[%s12975_s5 + $0xd8] sm:$0xf0]  ;;  %v8522_v58 = vld [vmem:[%s12975_s5 + $0x1cc] sm:$0xf] }
  0xf0   :  { %v1040_v0 = vpop.f32.mrf.mxu2  ;;  %v10279_v2 = vpack.c.b16 %v1571_v59, %v1571_v59 }
  0xf1   :  { %v1041_v6 = vadd.f32 %v1040_v0, %v1027_v52  ;;  %v1054_v7 = vpop.f32.mrf.mxu3  ;;  %v6493_v52 = vld [vmem:[%s12975_s5 + $0x170] sm:$0xf0] }
  0xf2   :  { %2289 = vmatpush.bf16.msra.mxu1 %v6512_v42  ;;  %v6496_v53 = vor.u32 %v8509_v48, %v6493_v52  ;;  %2277 = vmatpush.bf16.msra.mxu0 %v6368_v51  ;;  %v6477_v0 = vld [vmem:[%s12975_s5 + $0x150] sm:$0xf0]  ;;  %v8492_v48 = vld [vmem:[%s12975_s5 + $0xd4] sm:$0xf0]  ;;  %v8589_v51 = vld [vmem:[%s12975_s5 + $0x3e4] sm:$0xf] }
  0xf3   :  { %v1055_v16 = vadd.f32 %v1054_v7, %v1041_v6  ;;  %v6480_v3 = vor.u32 %v8505_v62, %v6477_v0  ;;  %v6624_v6 = vor.u32 %v8541_v56, %v6621_v57  ;;  %v8537_v7 = vld [vmem:[%s12975_s5 + $0x244] sm:$0xf]  ;;  %v6813_v52 = vld [vmem:[%s12975_s5 + $0x3f0] sm:$0xf0]  ;;  %v6675_v62 = vld [vmem:[%s12975_s5 + $0x2c8] sm:$0xf] }
  0xf4   :  { %v6608_v25 = vor.u32 %v8537_v7, %v6605_v8  ;;  %v6816_v0 = vor.u32 %v8589_v51, %v6813_v52  ;;  %v8585_v7 = vld [vmem:[%s12975_s5 + $0x3c4] sm:$0xf]  ;;  %v6797_v8 = vld [vmem:[%s12975_s5 + $0x3d0] sm:$0xf0]  ;;  %v8540_v51 = vld [vmem:[%s12975_s5 + $0x254] sm:$0xf0] }
  0xf5   :  { %v1119_v23 = vmax.f32 %v1055_v16, 0.0  ;;  %v8501_v16 = vld [vmem:[%s12975_s5 + $0x124] sm:$0xf] }
  0xf6   :  { %2290 = vmatpush.bf16.msra.mxu1 %v6496_v53  ;;  %2278 = vmatpush.bf16.msra.mxu0 %v6352_v63  ;;  %v6464_v22 = vor.u32 %v8501_v16, %v6461_v21  ;;  %v6420_v53 = vor.u32 %v8492_v48, %v6419_v47  ;;  %v8556_v63 = vld [vmem:[%s12975_s5 + $0x2d4] sm:$0xf0]  ;;  %v6800_v16 = vor.u32 %v8585_v7, %v6797_v8  ;;  %v6323_v7 = vld [vmem:[%s12975_s5 + $0x8] sm:$0xf] }
  0xf7   :  { %v1123_v31 = vpack.c.bf16 %v1119_v23, %v1115_v12  ;;  %v8484_v21 = vld [vmem:[%s12975_s5 + $0x94] sm:$0xf0] }
  0xf8   :  { %v8468_v8 = vld [vmem:[%s12975_s5 + $0x14] sm:$0xf0] }
  0xf9   :  { %1353 = vmatmul.bf16.vlgmr.msra.gmra.mxu2 %v1123_v31  ;;  %v6320_v31 = vor.u32 %v8465_v29, %v6317_v30  ;;  %v6643_v29 = vld [vmem:[%s12975_s5 + $0x288] sm:$0xf]  ;;  %v8548_v30 = vld [vmem:[%s12975_s5 + $0x294] sm:$0xf0] }
  0xfa   :  { %2299 = vmatpush.bf16.msra.mxu2 %v6688_v27  ;;  %2291 = vmatpush.bf16.msra.mxu1 %v6480_v3  ;;  %v6403_v3 = vld [vmem:[%s12975_s5 + $0xa8] sm:$0xf] }
  0xfb   :  { %2279 = vmatpush.bf16.msra.mxu0 %v6336_v20  ;;  %v6404_v9 = vor.u32 %v8488_v4, %v6403_v3  ;;  %v6387_v20 = vld [vmem:[%s12975_s5 + $0x88] sm:$0xf] }
  0xfc   :  { %v6595_v4 = vld [vmem:[%s12975_s5 + $0x228] sm:$0xf] }
  0xfe   :  { %2300 = vmatpush.bf16.msra.mxu2 %v6672_v34  ;;  %2292 = vmatpush.bf16.msra.mxu1 %v6464_v22  ;;  %v6563_v34 = vld [vmem:[%s12975_s5 + $0x1e8] sm:$0xf] }
  0xff   :  { %v6564_v40 = vor.u32 %v8528_v35, %v6563_v34  ;;  %2280 = vmatpush.bf16.msra.mxu0 %v6320_v31  ;;  %v6515_v22 = vld [vmem:[%s12975_s5 + $0x188] sm:$0xf]  ;;  %v8512_v34 = vld [vmem:[%s12975_s5 + $0x174] sm:$0xf0] }
 0x100   :  { %v1066_v49 = vpop.f32.mrf.mxu0  ;;  %v6500_v35 = vor.u32 %v8512_v34, %v6499_v1  ;;  %v6819_v1 = vld [vmem:[%s12975_s5 + $0x3e8] sm:$0xf] }
 0x101   :  { %v1080_v50 = vpop.f32.mrf.mxu1 }
 0x102   :  { %2301 = vmatpush.bf16.msra.mxu2 %v6656_v43  ;;  %v1081_v12 = vadd.f32 %v1080_v50, %v1066_v49  ;;  %v6573_v43 = vld [vmem:[%s12975_s5 + $0x210] sm:$0xf0]  ;;  %2293 = vmatpush.bf16.msra.mxu1 %v6448_v32  ;;  %v6547_v49 = vld [vmem:[%s12975_s5 + $0x1c8] sm:$0xf] }
 0x103   :  { %2325 = vmatpush.bf16.msrb.mxu0 %v6436_v39  ;;  %v6576_v56 = vor.u32 %v8529_v38, %v6573_v43  ;;  %v6765_v32 = vld [vmem:[%s12975_s5 + $0x390] sm:$0xf0]  ;;  %v6627_v38 = vld [vmem:[%s12975_s5 + $0x268] sm:$0xf]  ;;  %v8544_v39 = vld [vmem:[%s12975_s5 + $0x274] sm:$0xf0] }
 0x104   :  { %2281 = vmatmul.bf16.vlgmr.msra.gmra.mxu0 %v10299_v18  ;;  %v8573_v43 = vld [vmem:[%s12975_s5 + $0x364] sm:$0xf] }
 0x105   :  { %2294 = vmatmul.bf16.vlgmr.msra.gmra.mxu1 %v10301_v19  ;;  %v6752_v52 = vor.u32 %v8573_v43, %v6749_v44  ;;  %v6803_v43 = vld [vmem:[%s12975_s5 + $0x3c8] sm:$0xf]  ;;  %v8588_v44 = vld [vmem:[%s12975_s5 + $0x3d4] sm:$0xf0] }
 0x106   :  { %2302 = vmatpush.bf16.msra.mxu2 %v6640_v55  ;;  %2338 = vmatpush.bf16.msrb.mxu1 %v6564_v40  ;;  %v8524_v55 = vld [vmem:[%s12975_s5 + $0x1d4] sm:$0xf0] }
 0x107   :  { %v6548_v57 = vor.u32 %v8524_v55, %v6547_v49  ;;  %2326 = vmatpush.bf16.msrb.mxu0 %v6420_v53  ;;  %v6628_v49 = vor.u32 %v8544_v39, %v6627_v38  ;;  %v6339_v53 = vld [vmem:[%s12975_s5 + $0x28] sm:$0xf]  ;;  %v8472_v55 = vld [vmem:[%s12975_s5 + $0x34] sm:$0xf0]  ;;  %v8554_v38 = vld [vmem:[%s12975_s5 + $0x2cc] sm:$0xf] }
 0x108   :  { %v1094_v5 = vpop.f32.mrf.mxu2  ;;  %v1068_v23 = vpop.f32.mrf.mxu0  ;;  %v6677_v39 = vld [vmem:[%s12975_s5 + $0x2d8] sm:$0xf0] }
 0x109   :  { %v1108_v13 = vpop.f32.mrf.mxu3  ;;  %2255 = vmatmul.bf16.vlgmr.msrb.gmra.mxu2 %v10279_v2  ;;  %v1082_v24 = vpop.f32.mrf.mxu1  ;;  %v1095_v27 = vadd.f32 %v1094_v5, %v1081_v12  ;;  %v6531_v5 = vld [vmem:[%s12975_s5 + $0x1a8] sm:$0xf] }
 0x10a   :  { %2303 = vmatpush.bf16.msra.mxu2 %v6624_v6  ;;  %v1083_v17 = vadd.f32 %v1082_v24, %v1068_v23  ;;  %2339 = vmatpush.bf16.msrb.mxu1 %v6548_v57  ;;  %v6532_v12 = vor.u32 %v8520_v11, %v6531_v5  ;;  %v8581_v23 = vld [vmem:[%s12975_s5 + $0x3a4] sm:$0xf]  ;;  %v6781_v24 = vld [vmem:[%s12975_s5 + $0x3b0] sm:$0xf0]  ;;  %v8536_v5 = vld [vmem:[%s12975_s5 + $0x234] sm:$0xf0]  ;;  %v6324_v11 = vor.u32 %v8468_v8, %v6323_v7 }
 0x10b   :  { %v1109_v41 = vadd.f32 %v1108_v13, %v1095_v27  ;;  %v6676_v13 = vor.u32 %v8556_v63, %v6675_v62  ;;  %2327 = vmatpush.bf16.msrb.mxu0 %v6404_v9  ;;  %v6516_v27 = vor.u32 %v8516_v26, %v6515_v22  ;;  %v6784_v31 = vor.u32 %v8581_v23, %v6781_v24  ;;  %v8569_v57 = vld [vmem:[%s12975_s5 + $0x344] sm:$0xf]  ;;  %v6451_v9 = vld [vmem:[%s12975_s5 + $0x108] sm:$0xf]  ;;  %v6701_v23 = vld [vmem:[%s12975_s5 + $0x310] sm:$0xf0] }
 0x10c   :  { %v8565_v63 = vld [vmem:[%s12975_s5 + $0x324] sm:$0xf]  ;;  %v6596_v24 = vor.u32 %v8536_v5, %v6595_v4  ;;  %v8478_v5 = vld [vmem:[%s12975_s5 + $0x6c] sm:$0xf]  ;;  %v6771_v8 = vld [vmem:[%s12975_s5 + $0x388] sm:$0xf] }
 0x10d   :  { %v1116_v59 = vmax.f32 %v1109_v41, 0.0  ;;  %v6355_v41 = vld [vmem:[%s12975_s5 + $0x48] sm:$0xf]  ;;  %v8561_v22 = vld [vmem:[%s12975_s5 + $0x304] sm:$0xf] }
 0x10e   :  { %2304 = vmatpush.bf16.msra.mxu2 %v6608_v25  ;;  %2340 = vmatpush.bf16.msrb.mxu1 %v6532_v12  ;;  %v6388_v25 = vor.u32 %v8484_v21, %v6387_v20  ;;  %v8500_v12 = vld [vmem:[%s12975_s5 + $0x114] sm:$0xf0]  ;;  %v8526_v20 = vld [vmem:[%s12975_s5 + $0x1ec] sm:$0xf]  ;;  %v6565_v21 = vld [vmem:[%s12975_s5 + $0x1f8] sm:$0xf0] }
 0x10f   :  { %v6452_v15 = vor.u32 %v8500_v12, %v6451_v9  ;;  %v6568_v26 = vor.u32 %v8526_v20, %v6565_v21  ;;  %v8510_v7 = vld [vmem:[%s12975_s5 + $0x16c] sm:$0xf]  ;;  %v8580_v9 = vld [vmem:[%s12975_s5 + $0x394] sm:$0xf0]  ;;  %v6501_v12 = vld [vmem:[%s12975_s5 + $0x178] sm:$0xf0] }
 0x110   :  { %v1096_v36 = vpop.f32.mrf.mxu2  ;;  %2328 = vmatpush.bf16.msrb.mxu0 %v6388_v25  ;;  %v6579_v25 = vld [vmem:[%s12975_s5 + $0x208] sm:$0xf]  ;;  %v6772_v20 = vor.u32 %v8580_v9, %v6771_v8  ;;  %v8474_v21 = vld [vmem:[%s12975_s5 + $0x4c] sm:$0xf] }
 0x111   :  { %v1097_v42 = vadd.f32 %v1096_v36, %v1083_v17  ;;  %v1110_v46 = vpop.f32.mrf.mxu3  ;;  %v8577_v17 = vld [vmem:[%s12975_s5 + $0x384] sm:$0xf]  ;;  %v1572_v36 = vunpack.c.h.b16 %v10258_v54  ;;  %v8476_v54 = vld [vmem:[%s12975_s5 + $0x54] sm:$0xf0] }
 0x112   :  { %2305 = vmatpush.bf16.msra.mxu2 %v6592_v37  ;;  %2341 = vmatpush.bf16.msrb.mxu1 %v6516_v27  ;;  %v6644_v37 = vor.u32 %v8548_v30, %v6643_v29  ;;  %v6768_v40 = vor.u32 %v8577_v17, %v6765_v32  ;;  %v6356_v45 = vor.u32 %v8476_v54, %v6355_v41  ;;  %v8558_v29 = vld [vmem:[%s12975_s5 + $0x2ec] sm:$0xf]  ;;  %v6693_v30 = vld [vmem:[%s12975_s5 + $0x2f8] sm:$0xf0]  ;;  %v8592_v17 = vld [vmem:[%s12975_s5 + $0x3f4] sm:$0xf0] }
 0x113   :  { %v1111_v50 = vadd.f32 %v1110_v46, %v1097_v42  ;;  %v6483_v42 = vld [vmem:[%s12975_s5 + $0x148] sm:$0xf]  ;;  %v8508_v46 = vld [vmem:[%s12975_s5 + $0x154] sm:$0xf0]  ;;  %v10469_v48 = vpack.c.b16 %v1572_v36, %v1572_v36  ;;  %v6704_v36 = vor.u32 %v8561_v22, %v6701_v23  ;;  %v8486_v41 = vld [vmem:[%s12975_s5 + $0xac] sm:$0xf] }
 0x114   :  { %2329 = vmatpush.bf16.msrb.mxu0 %v6372_v33  ;;  %v6484_v47 = vor.u32 %v8508_v46, %v6483_v42  ;;  %v6549_v33 = vld [vmem:[%s12975_s5 + $0x1d8] sm:$0xf0]  ;;  %v8518_v42 = vld [vmem:[%s12975_s5 + $0x1ac] sm:$0xf] }
 0x115   :  { %v1120_v60 = vmax.f32 %v1111_v50, 0.0  ;;  %v6611_v50 = vld [vmem:[%s12975_s5 + $0x248] sm:$0xf]  ;;  %v6405_v54 = vld [vmem:[%s12975_s5 + $0xb8] sm:$0xf0] }
 0x116   :  { %2306 = vmatpush.bf16.msra.mxu2 %v6576_v56  ;;  %2342 = vmatpush.bf16.msrb.mxu1 %v6500_v35  ;;  %v6467_v56 = vld [vmem:[%s12975_s5 + $0x128] sm:$0xf]  ;;  %v6612_v3 = vor.u32 %v8540_v51, %v6611_v50  ;;  %v6552_v35 = vor.u32 %v8522_v58, %v6549_v33  ;;  %v6533_v46 = vld [vmem:[%s12975_s5 + $0x1b8] sm:$0xf0]  ;;  %v8550_v50 = vld [vmem:[%s12975_s5 + $0x2ac] sm:$0xf] }
 0x117   :  { %v1124_v6 = vpack.c.bf16 %v1120_v60, %v1116_v59  ;;  %v6733_v59 = vld [vmem:[%s12975_s5 + $0x350] sm:$0xf0]  ;;  %v6340_v60 = vor.u32 %v8472_v55, %v6339_v53  ;;  %v6661_v51 = vld [vmem:[%s12975_s5 + $0x2b8] sm:$0xf0]  ;;  %v8482_v53 = vld [vmem:[%s12975_s5 + $0x8c] sm:$0xf] }
 0x118   :  { %2330 = vmatpush.bf16.msrb.mxu0 %v6356_v45  ;;  %v6408_v45 = vor.u32 %v8486_v41, %v6405_v54  ;;  %v6389_v55 = vld [vmem:[%s12975_s5 + $0x98] sm:$0xf0]  ;;  %v8506_v23 = vld [vmem:[%s12975_s5 + $0x14c] sm:$0xf]  ;;  %v8572_v33 = vld [vmem:[%s12975_s5 + $0x354] sm:$0xf0] }
 0x119   :  { %1367 = vmatmul.bf16.vlgmr.msra.gmra.mxu3 %v1124_v6  ;;  %2307 = vmatmul.bf16.vlgmr.msra.gmra.mxu2 %v10279_v2  ;;  %v6736_v6 = vor.u32 %v8569_v57, %v6733_v59  ;;  %v6787_v57 = vld [vmem:[%s12975_s5 + $0x3a8] sm:$0xf]  ;;  %v8584_v59 = vld [vmem:[%s12975_s5 + $0x3b4] sm:$0xf0]  ;;  %v6357_v22 = vld [vmem:[%s12975_s5 + $0x58] sm:$0xf0] }
 0x11a   :  { %2351 = vmatpush.bf16.msrb.mxu2 %v6692_v61  ;;  %2312 = vmatpush.bf16.msra.mxu3 %v6816_v0  ;;  %v8504_v61 = vld [vmem:[%s12975_s5 + $0x134] sm:$0xf0]  ;;  %v6717_v0 = vld [vmem:[%s12975_s5 + $0x330] sm:$0xf0]  ;;  %v6788_v4 = vor.u32 %v8584_v59, %v6787_v57  ;;  %v8470_v58 = vld [vmem:[%s12975_s5 + $0x2c] sm:$0xf] }
 0x11b   :  { %2343 = vmatpush.bf16.msrb.mxu1 %v6484_v47  ;;  %v6468_v62 = vor.u32 %v8504_v61, %v6467_v56  ;;  %v6720_v27 = vor.u32 %v8565_v63, %v6717_v0  ;;  %v6536_v47 = vor.u32 %v8518_v42, %v6533_v46  ;;  %v8514_v56 = vld [vmem:[%s12975_s5 + $0x18c] sm:$0xf]  ;;  %v6517_v61 = vld [vmem:[%s12975_s5 + $0x198] sm:$0xf0]  ;;  %v6664_v63 = vor.u32 %v8550_v50, %v6661_v51 }
 0x11c   :  { %2331 = vmatpush.bf16.msrb.mxu0 %v6340_v60  ;;  %v6392_v60 = vor.u32 %v8482_v53, %v6389_v55  ;;  %v8546_v0 = vld [vmem:[%s12975_s5 + $0x28c] sm:$0xf]  ;;  %v6325_v54 = vld [vmem:[%s12975_s5 + $0x18] sm:$0xf0]  ;;  %v6707_v53 = vld [vmem:[%s12975_s5 + $0x308] sm:$0xf] }
 0x11d   :  { %v8466_v41 = vld [vmem:[%s12975_s5 + $0xc] sm:$0xf]  ;;  %v6453_v46 = vld [vmem:[%s12975_s5 + $0x118] sm:$0xf0]  ;;  %v8564_v55 = vld [vmem:[%s12975_s5 + $0x314] sm:$0xf0] }
 0x11e   :  { %2352 = vmatpush.bf16.msrb.mxu2 %v6676_v13  ;;  %2313 = vmatpush.bf16.msra.mxu3 %v6800_v16  ;;  %v8494_v13 = vld [vmem:[%s12975_s5 + $0xec] sm:$0xf]  ;;  %v6821_v57 = vld [vmem:[%s12975_s5 + $0x3f8] sm:$0xf0] }
 0x11f   :  { %2344 = vmatpush.bf16.msrb.mxu1 %v6468_v62  ;;  %v6440_v16 = vor.u32 %v8494_v13, %v6437_v14  ;;  %v6520_v62 = vor.u32 %v8514_v56, %v6517_v61  ;;  %v6504_v13 = vor.u32 %v8510_v7, %v6501_v12  ;;  %v8498_v42 = vld [vmem:[%s12975_s5 + $0x10c] sm:$0xf]  ;;  %v6773_v7 = vld [vmem:[%s12975_s5 + $0x398] sm:$0xf0] }
 0x120   :  { %2332 = vmatpush.bf16.msrb.mxu0 %v6324_v11  ;;  %v8530_v51 = vld [vmem:[%s12975_s5 + $0x20c] sm:$0xf] }
 0x121   :  { %v8590_v56 = vld [vmem:[%s12975_s5 + $0x3ec] sm:$0xf] }
 0x122   :  { %2353 = vmatpush.bf16.msrb.mxu2 %v6660_v28  ;;  %2314 = vmatpush.bf16.msra.mxu3 %v6784_v31  ;;  %v8532_v28 = vld [vmem:[%s12975_s5 + $0x214] sm:$0xf0]  ;;  %v8490_v31 = vld [vmem:[%s12975_s5 + $0xcc] sm:$0xf]  ;;  %v6824_v61 = vor.u32 %v8590_v56, %v6821_v57  ;;  %v7315_v56 = vld [vmem:[%s12977_s7 + $0x2d0] sm:$0xf] }
 0x123   :  { %2345 = vmatpush.bf16.msrb.mxu1 %v6452_v15  ;;  %v6424_v32 = vor.u32 %v8490_v31, %v6421_v10  ;;  %v6580_v34 = vor.u32 %v8532_v28, %v6579_v25  ;;  %2333 = vmatmul.bf16.vlgmr.msrb.gmra.mxu0 %v10299_v18  ;;  %v8542_v15 = vld [vmem:[%s12975_s5 + $0x26c] sm:$0xf]  ;;  %v8576_v25 = vld [vmem:[%s12975_s5 + $0x374] sm:$0xf0]  ;;  %v6613_v31 = vld [vmem:[%s12975_s5 + $0x258] sm:$0xf0] }
 0x124   :  { %2377 = vmatpush.bf16.msra.mxu0 %v6440_v16  ;;  %v6629_v16 = vld [vmem:[%s12975_s5 + $0x278] sm:$0xf0]  ;;  %v8574_v12 = vld [vmem:[%s12975_s5 + $0x36c] sm:$0xf]  ;;  %v8718_v57 = vld [vmem:[%s12977_s7 + $0x2e4] sm:$0xf0] }
 0x126   :  { %2354 = vmatpush.bf16.msrb.mxu2 %v6644_v37  ;;  %2315 = vmatpush.bf16.msra.mxu3 %v6768_v40  ;;  %v6696_v37 = vor.u32 %v8558_v29, %v6693_v30  ;;  %v6820_v40 = vor.u32 %v8592_v17, %v6819_v1  ;;  %v6632_v29 = vor.u32 %v8542_v15, %v6629_v16  ;;  %v8538_v30 = vld [vmem:[%s12975_s5 + $0x24c] sm:$0xf]  ;;  %v6341_v1 = vld [vmem:[%s12975_s5 + $0x38] sm:$0xf0] }
 0x127   :  { %2390 = vmatpush.bf16.msra.mxu1 %v6568_v26  ;;  %v6360_v26 = vor.u32 %v8474_v21, %v6357_v22  ;;  %v8502_v17 = vld [vmem:[%s12975_s5 + $0x12c] sm:$0xf]  ;;  %v8597_v21 = vld [vmem:[%s12976_s6 + $0x20] sm:$0xff] }
 0x128   :  { %2346 = vmatmul.bf16.vlgmr.msrb.gmra.mxu1 %v10301_v19  ;;  %2378 = vmatpush.bf16.msra.mxu0 %v6424_v32  ;;  %v6739_v32 = vld [vmem:[%s12975_s5 + $0x348] sm:$0xf]  ;;  %v8570_v16 = vld [vmem:[%s12975_s5 + $0x34c] sm:$0xf] }
 0x129   :  { %2268 = vmatmul.bf16.vlgmr.msrb.gmra.mxu3 %v10469_v48 }
 0x12a   :  { %2355 = vmatpush.bf16.msrb.mxu2 %v6628_v49  ;;  %2316 = vmatpush.bf16.msra.mxu3 %v6752_v52  ;;  %v6680_v49 = vor.u32 %v8554_v38, %v6677_v39  ;;  %v6804_v52 = vor.u32 %v8588_v44, %v6803_v43  ;;  %v8534_v38 = vld [vmem:[%s12975_s5 + $0x22c] sm:$0xf]  ;;  %v6597_v39 = vld [vmem:[%s12975_s5 + $0x238] sm:$0xf0]  ;;  %v6723_v43 = vld [vmem:[%s12975_s5 + $0x328] sm:$0xf] }
 0x12b   :  { %2391 = vmatpush.bf16.msra.mxu1 %v6552_v35  ;;  %v6469_v35 = vld [vmem:[%s12975_s5 + $0x138] sm:$0xf0]  ;;  %v8568_v44 = vld [vmem:[%s12975_s5 + $0x334] sm:$0xf0] }
 0x12c   :  { %2379 = vmatpush.bf16.msra.mxu0 %v6408_v45  ;;  %v6328_v45 = vor.u32 %v8466_v41, %v6325_v54  ;;  %v6724_v50 = vor.u32 %v8568_v44, %v6723_v43  ;;  %v8658_v41 = vld [vmem:[%s12977_s7 + $0x104] sm:$0xf0]  ;;  %v8652_v43 = vld [vmem:[%s12977_s7 + $0xd4] sm:$0xf0] }
 0x12e   :  { %2356 = vmatpush.bf16.msrb.mxu2 %v6612_v3  ;;  %2317 = vmatpush.bf16.msra.mxu3 %v6736_v6  ;;  %v6645_v3 = vld [vmem:[%s12975_s5 + $0x298] sm:$0xf0] }
 0x12f   :  { %2392 = vmatpush.bf16.msra.mxu1 %v6536_v47  ;;  %v6373_v6 = vld [vmem:[%s12975_s5 + $0x78] sm:$0xf0]  ;;  %v6648_v14 = vor.u32 %v8546_v0, %v6645_v3  ;;  %v6456_v47 = vor.u32 %v8498_v42, %v6453_v46  ;;  %v7051_v42 = vld [vmem:[%s12977_s7 + $0xc0] sm:$0xf] }
 0x130   :  { %2380 = vmatpush.bf16.msra.mxu0 %v6392_v60  ;;  %v6376_v11 = vor.u32 %v8478_v5, %v6373_v6  ;;  %v6708_v60 = vor.u32 %v8564_v55, %v6707_v53  ;;  %v8600_v0 = vld [vmem:[%s12976_s6 + $0x38] sm:$0xff]  ;;  %v8578_v6 = vld [vmem:[%s12975_s5 + $0x38c] sm:$0xf]  ;;  %v7027_v53 = vld [vmem:[%s12977_s7 + $0x90] sm:$0xf] }
 0x131   :  { %v6789_v3 = vld [vmem:[%s12975_s5 + $0x3b8] sm:$0xf0]  ;;  %v8646_v55 = vld [vmem:[%s12977_s7 + $0xa4] sm:$0xf0] }
 0x132   :  { %2357 = vmatpush.bf16.msrb.mxu2 %v6596_v24  ;;  %2318 = vmatpush.bf16.msra.mxu3 %v6720_v27  ;;  %v6755_v24 = vld [vmem:[%s12975_s5 + $0x368] sm:$0xf]  ;;  %v6485_v27 = vld [vmem:[%s12975_s5 + $0x158] sm:$0xf0] }
 0x133   :  { %2393 = vmatpush.bf16.msra.mxu1 %v6520_v62  ;;  %v6488_v28 = vor.u32 %v8506_v23, %v6485_v27  ;;  %v6756_v10 = vor.u32 %v8576_v25, %v6755_v24  ;;  %v8586_v62 = vld [vmem:[%s12975_s5 + $0x3cc] sm:$0xf]  ;;  %v6725_v24 = vld [vmem:[%s12975_s5 + $0x338] sm:$0xf0] }
 0x134   :  { %2381 = vmatpush.bf16.msra.mxu0 %v6376_v11  ;;  %v6776_v11 = vor.u32 %v8578_v6, %v6773_v7  ;;  %v8566_v23 = vld [vmem:[%s12975_s5 + $0x32c] sm:$0xf]  ;;  %v8596_v25 = vld [vmem:[%s12976_s6 + $0x18] sm:$0xff] }
 0x135   :  { %v6728_v27 = vor.u32 %v8566_v23, %v6725_v24  ;;  %v8614_v7 = vld [vmem:[%s12976_s6 + $0xa8] sm:$0xff]  ;;  %v7243_v23 = vld [vmem:[%s12977_s7 + $0x240] sm:$0xf]  ;;  %v8700_v24 = vld [vmem:[%s12977_s7 + $0x254] sm:$0xf0] }
 0x136   :  { %2358 = vmatpush.bf16.msrb.mxu2 %v6580_v34  ;;  %2319 = vmatpush.bf16.msra.mxu3 %v6704_v36  ;;  %v6344_v34 = vor.u32 %v8470_v58, %v6341_v1  ;;  %v6472_v36 = vor.u32 %v8502_v17, %v6469_v35  ;;  %v1326_v8 = vpop.f32.mrf.mxu0  ;;  %v8594_v58 = vld [vmem:[%s12976_s6 + $0x8] sm:$0xff]  ;;  %v7123_v17 = vld [vmem:[%s12977_s7 + $0x150] sm:$0xf] }
 0x137   :  { %2394 = vmatpush.bf16.msra.mxu1 %v6504_v13  ;;  %v6757_v13 = vld [vmem:[%s12975_s5 + $0x378] sm:$0xf0]  ;;  %v8606_v1 = vld [vmem:[%s12976_s6 + $0x68] sm:$0xff] }
 0x138   :  { %2382 = vmatpush.bf16.msra.mxu0 %v6360_v26  ;;  %v6760_v15 = vor.u32 %v8574_v12, %v6757_v13  ;;  %v8608_v26 = vld [vmem:[%s12976_s6 + $0x78] sm:$0xff]  ;;  %v8706_v12 = vld [vmem:[%s12977_s7 + $0x284] sm:$0xf0] }
 0x139   :  { %2359 = vmatmul.bf16.vlgmr.msrb.gmra.mxu2 %v10279_v2  ;;  %2320 = vmatmul.bf16.vlgmr.msra.gmra.mxu3 %v10469_v48 }
 0x13a   :  { %2403 = vmatpush.bf16.msra.mxu2 %v6696_v37  ;;  %2364 = vmatpush.bf16.msrb.mxu3 %v6820_v40  ;;  %v6616_v37 = vor.u32 %v8538_v30, %v6613_v31  ;;  %v6740_v40 = vor.u32 %v8572_v33, %v6739_v32  ;;  %v8595_v30 = vld [vmem:[%s12976_s6 + $0x10] sm:$0xff]  ;;  %v8670_v32 = vld [vmem:[%s12977_s7 + $0x164] sm:$0xf0]  ;;  %v8593_v33 = vld [vmem:[%s12976_s6] sm:$0xff] }
 0x13b   :  { %2395 = vmatpush.bf16.msra.mxu1 %v6488_v28  ;;  %v8562_v28 = vld [vmem:[%s12975_s5 + $0x30c] sm:$0xf]  ;;  %v8607_v31 = vld [vmem:[%s12976_s6 + $0x70] sm:$0xff]  ;;  %v7124_v35 = vor.u32 %v8670_v32, %v7123_v17 }
 0x13c   :  { %2383 = vmatpush.bf16.msra.mxu0 %v6344_v34  ;;  %v8605_v34 = vld [vmem:[%s12976_s6 + $0x60] sm:$0xff] }
 0x13e   :  { %2404 = vmatpush.bf16.msra.mxu2 %v6680_v49  ;;  %2365 = vmatpush.bf16.msrb.mxu3 %v6804_v52  ;;  %v6600_v49 = vor.u32 %v8534_v38, %v6597_v39  ;;  %v6581_v52 = vld [vmem:[%s12975_s5 + $0x218] sm:$0xf0] }
 0x13f   :  { %2396 = vmatpush.bf16.msra.mxu1 %v6472_v36  ;;  %v6584_v59 = vor.u32 %v8530_v51, %v6581_v52  ;;  %v7099_v36 = vld [vmem:[%s12977_s7 + $0x120] sm:$0xf]  ;;  %v8604_v38 = vld [vmem:[%s12976_s6 + $0x58] sm:$0xff] }
 0x140   :  { %2384 = vmatpush.bf16.msra.mxu0 %v6328_v45  ;;  %v8602_v45 = vld [vmem:[%s12976_s6 + $0x48] sm:$0xff]  ;;  %v8601_v51 = vld [vmem:[%s12976_s6 + $0x40] sm:$0xff]  ;;  %v8616_v52 = vld [vmem:[%s12976_s6 + $0xb8] sm:$0xff] }
 0x142   :  { %2405 = vmatpush.bf16.msra.mxu2 %v6664_v63  ;;  %2366 = vmatpush.bf16.msrb.mxu3 %v6788_v4  ;;  %v6805_v63 = vld [vmem:[%s12975_s5 + $0x3d8] sm:$0xf0]  ;;  %v8599_v4 = vld [vmem:[%s12976_s6 + $0x30] sm:$0xff] }
 0x143   :  { %2397 = vmatpush.bf16.msra.mxu1 %v6456_v47  ;;  %2385 = vmatmul.bf16.vlgmr.msra.gmra.mxu0 %v10299_v18  ;;  %v6808_v18 = vor.u32 %v8586_v62, %v6805_v63  ;;  %v7052_v47 = vor.u32 %v8652_v43, %v7051_v42  ;;  %v8615_v62 = vld [vmem:[%s12976_s6 + $0xb0] sm:$0xff]  ;;  %v7003_v63 = vld [vmem:[%s12977_s7 + $0x60] sm:$0xf]  ;;  %v8624_v42 = vld [vmem:[%s12976_s6 + $0xf8] sm:$0xff] }
 0x144   :  { %2629 = vmatpush.bf16.msrb.mxu0 %v8600_v0  ;;  %v8640_v0 = vld [vmem:[%s12977_s7 + $0x74] sm:$0xf0] }
 0x146   :  { %2406 = vmatpush.bf16.msra.mxu2 %v6648_v14  ;;  %2367 = vmatpush.bf16.msrb.mxu3 %v6772_v20  ;;  %v8598_v14 = vld [vmem:[%s12976_s6 + $0x28] sm:$0xff]  ;;  %v6741_v20 = vld [vmem:[%s12975_s5 + $0x358] sm:$0xf0] }
 0x147   :  { %2398 = vmatmul.bf16.vlgmr.msra.gmra.mxu1 %v10301_v19  ;;  %v8582_v19 = vld [vmem:[%s12975_s5 + $0x3ac] sm:$0xf]  ;;  %v6744_v22 = vor.u32 %v8570_v16, %v6741_v20  ;;  %v6955_v16 = vld [vmem:[%s12977_s7] sm:$0xf]  ;;  %v8628_v20 = vld [vmem:[%s12977_s7 + $0x14] sm:$0xf0] }
 0x148   :  { %v6792_v5 = vor.u32 %v8582_v19, %v6789_v3  ;;  %2630 = vmatpush.bf16.msrb.mxu0 %v8599_v4  ;;  %2642 = vmatpush.bf16.msrb.mxu1 %v8608_v26  ;;  %v8712_v19 = vld [vmem:[%s12977_s7 + $0x2b4] sm:$0xf0]  ;;  %v7004_v3 = vor.u32 %v8640_v0, %v7003_v63  ;;  %v7244_v26 = vor.u32 %v8700_v24, %v7243_v23  ;;  %v7459_v63 = vld [vmem:[%s12977_s7 + $0x3f0] sm:$0xf]  ;;  %v8754_v0 = vld [vmem:[%s12977_s7 + $0x404] sm:$0xf0] }
 0x14a   :  { %2407 = vmatpush.bf16.msra.mxu2 %v6632_v29  ;;  %2368 = vmatpush.bf16.msrb.mxu3 %v6756_v10  ;;  %v6709_v29 = vld [vmem:[%s12975_s5 + $0x318] sm:$0xf0] }
 0x14b   :  { %v6712_v10 = vor.u32 %v8562_v28, %v6709_v29  ;;  %v7219_v28 = vld [vmem:[%s12977_s7 + $0x210] sm:$0xf]  ;;  %v8694_v29 = vld [vmem:[%s12977_s7 + $0x224] sm:$0xf0] }
 0x14c   :  { %2631 = vmatpush.bf16.msrb.mxu0 %v8598_v14  ;;  %2643 = vmatpush.bf16.msrb.mxu1 %v8607_v31 }
 0x14e   :  { %2408 = vmatpush.bf16.msra.mxu2 %v6616_v37  ;;  %2369 = vmatpush.bf16.msrb.mxu3 %v6740_v40  ;;  %v8664_v37 = vld [vmem:[%s12977_s7 + $0x134] sm:$0xf0]  ;;  %v7075_v40 = vld [vmem:[%s12977_s7 + $0xf0] sm:$0xf] }
 0x14f   :  { %v7100_v39 = vor.u32 %v8664_v37, %v7099_v36  ;;  %v7076_v54 = vor.u32 %v8658_v41, %v7075_v40  ;;  %v7171_v36 = vld [vmem:[%s12977_s7 + $0x1b0] sm:$0xf]  ;;  %v8682_v37 = vld [vmem:[%s12977_s7 + $0x1c4] sm:$0xf0]  ;;  %v8609_v40 = vld [vmem:[%s12976_s6 + $0x80] sm:$0xff] }
 0x150   :  { %2632 = vmatpush.bf16.msrb.mxu0 %v8597_v21  ;;  %2644 = vmatpush.bf16.msrb.mxu1 %v8606_v1  ;;  %v8688_v1 = vld [vmem:[%s12977_s7 + $0x1f4] sm:$0xf0]  ;;  %v7147_v41 = vld [vmem:[%s12977_s7 + $0x180] sm:$0xf] }
 0x152   :  { %2409 = vmatpush.bf16.msra.mxu2 %v6600_v49  ;;  %2370 = vmatpush.bf16.msrb.mxu3 %v6724_v50  ;;  %v10852_v49 = vpop.f32.mrf.mxu0 }
 0x154   :  { %2633 = vmatpush.bf16.msrb.mxu0 %v8596_v25  ;;  %2645 = vmatpush.bf16.msrb.mxu1 %v8605_v34 }
 0x156   :  { %2410 = vmatpush.bf16.msra.mxu2 %v6584_v59  ;;  %2371 = vmatpush.bf16.msrb.mxu3 %v6708_v60  ;;  %v7028_v60 = vor.u32 %v8646_v55, %v7027_v53  ;;  %v8623_v53 = vld [vmem:[%s12976_s6 + $0xf0] sm:$0xff]  ;;  %v7483_v55 = vld [vmem:[%s12977_s7 + $0x420] sm:$0xf] }
 0x158   :  { %2634 = vmatpush.bf16.msrb.mxu0 %v8595_v30  ;;  %2646 = vmatpush.bf16.msrb.mxu1 %v8604_v38  ;;  %v7220_v30 = vor.u32 %v8694_v29, %v7219_v28  ;;  %v7843_v29 = vld [vmem:[%s12977_s7 + $0x6f0] sm:$0xf] }
 0x159   :  { %2411 = vmatmul.bf16.vlgmr.msra.gmra.mxu2 %v10279_v2  ;;  %2372 = vmatmul.bf16.vlgmr.msrb.gmra.mxu3 %v10469_v48  ;;  %v1340_v2 = vpop.f32.mrf.mxu1 }
 0x15a   :  { %2416 = vmatpush.bf16.msra.mxu3 %v6824_v61  ;;  %v1341_v9 = vadd.f32 %v1340_v2, %v1326_v8  ;;  %2655 = vmatpush.bf16.msrb.mxu2 %v8616_v52  ;;  %v7316_v61 = vor.u32 %v8718_v57, %v7315_v56  ;;  %v6979_v8 = vld [vmem:[%s12977_s7 + $0x30] sm:$0xf]  ;;  %v8634_v2 = vld [vmem:[%s12977_s7 + $0x44] sm:$0xf0]  ;;  %v8760_v56 = vld [vmem:[%s12977_s7 + $0x434] sm:$0xf0] }
 0x15c   :  { %2635 = vmatpush.bf16.msrb.mxu0 %v8594_v58  ;;  %v7195_v58 = vld [vmem:[%s12977_s7 + $0x1e0] sm:$0xf] }
 0x15d   :  { %v7196_v32 = vor.u32 %v8688_v1, %v7195_v58 }
 0x15e   :  { %2417 = vmatpush.bf16.msra.mxu3 %v6808_v18  ;;  %v7291_v18 = vld [vmem:[%s12977_s7 + $0x2a0] sm:$0xf]  ;;  %2656 = vmatpush.bf16.msrb.mxu2 %v8615_v62  ;;  %v8622_v62 = vld [vmem:[%s12976_s6 + $0xe8] sm:$0xff] }
 0x15f   :  { %v7292_v4 = vor.u32 %v8712_v19, %v7291_v18  ;;  %v7460_v19 = vor.u32 %v8754_v0, %v7459_v63 }
 0x160   :  { %2636 = vmatpush.bf16.msrb.mxu0 %v8593_v33 }
 0x161   :  { %v10854_v50 = vpop.f32.mrf.mxu1 }
 0x162   :  { %2418 = vmatpush.bf16.msra.mxu3 %v6792_v5  ;;  %v10891_v5 = vpop.f32.mrf.mxu0  ;;  %2657 = vmatpush.bf16.msrb.mxu2 %v8614_v7 }
 0x164   :  { %4529 = vmatpush.bf16.msra.mxu0 %v7124_v35  ;;  %v8610_v35 = vld [vmem:[%s12976_s6 + $0x88] sm:$0xff] }
 0x166   :  { %2419 = vmatpush.bf16.msra.mxu3 %v6776_v11  ;;  %v7267_v11 = vld [vmem:[%s12977_s7 + $0x270] sm:$0xf] }
 0x167   :  { %v7268_v14 = vor.u32 %v8706_v12, %v7267_v11 }
 0x168   :  { %4530 = vmatpush.bf16.msra.mxu0 %v7100_v39  ;;  %v7172_v39 = vor.u32 %v8682_v37, %v7171_v36  ;;  %v8844_v36 = vld [vmem:[%s12977_s7 + $0x6d4] sm:$0xf0]  ;;  %v8618_v37 = vld [vmem:[%s12976_s6 + $0xc8] sm:$0xff] }
 0x169   :  { %v10893_v6 = vpop.f32.mrf.mxu1 }
 0x16a   :  { %2420 = vmatpush.bf16.msra.mxu3 %v6760_v15  ;;  %v8613_v15 = vld [vmem:[%s12976_s6 + $0xa0] sm:$0xff]  ;;  %v2232_v21 = vpop.f32.mrf.mxu0  ;;  %v2244_v57 = vadd.f32 %v10893_v6, %v10891_v5  ;;  %v8748_v6 = vld [vmem:[%s12977_s7 + $0x3d4] sm:$0xf0] }
 0x16b   :  { %2658 = vmatpush.bf16.msrb.mxu2 %v8613_v15  ;;  %v7435_v5 = vld [vmem:[%s12977_s7 + $0x3c0] sm:$0xf]  ;;  %v8620_v21 = vld [vmem:[%s12976_s6 + $0xd8] sm:$0xff] }
 0x16c   :  { %4531 = vmatpush.bf16.msra.mxu0 %v7076_v54  ;;  %v8676_v54 = vld [vmem:[%s12977_s7 + $0x194] sm:$0xf0] }
 0x16d   :  { %v7148_v43 = vor.u32 %v8676_v54, %v7147_v41  ;;  %v8083_v41 = vld [vmem:[%s12977_s7 + $0x8d0] sm:$0xf] }
 0x16e   :  { %2421 = vmatpush.bf16.msra.mxu3 %v6744_v22  ;;  %v6956_v22 = vor.u32 %v8628_v20, %v6955_v16  ;;  %v7867_v16 = vld [vmem:[%s12977_s7 + $0x720] sm:$0xf]  ;;  %v8856_v20 = vld [vmem:[%s12977_s7 + $0x734] sm:$0xf0] }
 0x16f   :  { %v7868_v24 = vor.u32 %v8856_v20, %v7867_v16  ;;  %v8826_v16 = vld [vmem:[%s12977_s7 + $0x644] sm:$0xf0]  ;;  %v8035_v20 = vld [vmem:[%s12977_s7 + $0x870] sm:$0xf] }
 0x170   :  { %4532 = vmatpush.bf16.msra.mxu0 %v7052_v47 }
 0x171   :  { %v2245_v25 = vpop.f32.mrf.mxu1 }
 0x172   :  { %2422 = vmatpush.bf16.msra.mxu3 %v6728_v27  ;;  %v8612_v27 = vld [vmem:[%s12976_s6 + $0x98] sm:$0xff] }
 0x173   :  { %2659 = vmatpush.bf16.msrb.mxu2 %v8612_v27  ;;  %v8736_v27 = vld [vmem:[%s12977_s7 + $0x374] sm:$0xf0] }
 0x174   :  { %4533 = vmatpush.bf16.msra.mxu0 %v7028_v60  ;;  %v7484_v60 = vor.u32 %v8760_v56, %v7483_v55  ;;  %v8617_v55 = vld [vmem:[%s12976_s6 + $0xc0] sm:$0xff] }
 0x176   :  { %2423 = vmatpush.bf16.msra.mxu3 %v6712_v10  ;;  %v8611_v10 = vld [vmem:[%s12976_s6 + $0x90] sm:$0xff] }
 0x177   :  { %2660 = vmatpush.bf16.msrb.mxu2 %v8611_v10  ;;  %v8619_v10 = vld [vmem:[%s12976_s6 + $0xd0] sm:$0xff] }
 0x178   :  { %4534 = vmatpush.bf16.msra.mxu0 %v7004_v3 }
 0x179   :  { %2424 = vmatmul.bf16.vlgmr.msra.gmra.mxu3 %v10469_v48  ;;  %v8603_v48 = vld [vmem:[%s12976_s6 + $0x50] sm:$0xff] }
 0x17a   :  { %2647 = vmatpush.bf16.msrb.mxu1 %v8603_v48  ;;  %2668 = vmatpush.bf16.msrb.mxu3 %v8624_v42 }
 0x17b   :  { %2661 = vmatpush.bf16.msrb.mxu2 %v8610_v35  ;;  %v7819_v35 = vld [vmem:[%s12977_s7 + $0x6c0] sm:$0xf] }
 0x17c   :  { %v1354_v44 = vpop.f32.mrf.mxu2 }
 0x17d   :  { %v10850_v46 = vadd.f32 %v1354_v44, %v1341_v9  ;;  %v6980_v9 = vor.u32 %v8634_v2, %v6979_v8  ;;  %v7507_v44 = vld [vmem:[%s12977_s7 + $0x450] sm:$0xf]  ;;  %v8862_v2 = vld [vmem:[%s12977_s7 + $0x764] sm:$0xf0] }
 0x17e   :  { %2648 = vmatpush.bf16.msrb.mxu1 %v8602_v45  ;;  %v8766_v45 = vld [vmem:[%s12977_s7 + $0x464] sm:$0xf0]  ;;  %2669 = vmatpush.bf16.msrb.mxu3 %v8623_v53  ;;  %v7891_v8 = vld [vmem:[%s12977_s7 + $0x750] sm:$0xf] }
 0x17f   :  { %4535 = vmatpush.bf16.msra.mxu0 %v6980_v9  ;;  %2662 = vmatpush.bf16.msrb.mxu2 %v8609_v40  ;;  %v7508_v47 = vor.u32 %v8766_v45, %v7507_v44  ;;  %v7436_v9 = vor.u32 %v8748_v6, %v7435_v5  ;;  %v7892_v12 = vor.u32 %v8862_v2, %v7891_v8  ;;  %v7795_v40 = vld [vmem:[%s12977_s7 + $0x690] sm:$0xf]  ;;  %v8910_v45 = vld [vmem:[%s12977_s7 + $0x8e4] sm:$0xf0]  ;;  %v8832_v5 = vld [vmem:[%s12977_s7 + $0x674] sm:$0xf0] }
 0x180   :  { %v7820_v44 = vor.u32 %v8844_v36, %v7819_v35  ;;  %v8059_v6 = vld [vmem:[%s12977_s7 + $0x8a0] sm:$0xf]  ;;  %v8808_v2 = vld [vmem:[%s12977_s7 + $0x5b4] sm:$0xf0] }
 0x181   :  { %v10945_v17 = vpop.f32.mrf.mxu0  ;;  %v7675_v8 = vld [vmem:[%s12977_s7 + $0x5a0] sm:$0xf] }
 0x182   :  { %2649 = vmatpush.bf16.msrb.mxu1 %v8601_v51  ;;  %v10947_v33 = vpop.f32.mrf.mxu1  ;;  %2670 = vmatpush.bf16.msrb.mxu3 %v8622_v62 }
 0x183   :  { %4536 = vmatpush.bf16.msra.mxu0 %v6956_v22  ;;  %4555 = vmatpush.bf16.msra.mxu2 %v7508_v47  ;;  %v2296_v28 = vadd.f32 %v10947_v33, %v10945_v17  ;;  %v11058_v17 = vld [vmem:[%s12972_s2] sm:$0xff]  ;;  %v8730_v33 = vld [vmem:[%s12977_s7 + $0x344] sm:$0xf0]  ;;  %v8724_v47 = vld [vmem:[%s12977_s7 + $0x314] sm:$0xf0] }
 0x184   :  { %v10874_v59 = vpop.f32.mrf.mxu2  ;;  %v3071_v54 = vunpack.c.l.b16 %v11058_v17 }
 0x186   :  { %4542 = vmatpush.bf16.msra.mxu1 %v7316_v61  ;;  %v11106_v0 = vpack.c.b16 %v3071_v54, %v3071_v54  ;;  %v7987_v54 = vld [vmem:[%s12977_s7 + $0x810] sm:$0xf] }
 0x187   :  { %4556 = vmatpush.bf16.msra.mxu2 %v7484_v60  ;;  %v8814_v60 = vld [vmem:[%s12977_s7 + $0x5e4] sm:$0xf0] }
 0x18a   :  { %4543 = vmatpush.bf16.msra.mxu1 %v7292_v4  ;;  %v2297_v51 = vpop.f32.mrf.mxu1  ;;  %v8621_v4 = vld [vmem:[%s12976_s6 + $0xe0] sm:$0xff] }
 0x18b   :  { %4557 = vmatpush.bf16.msra.mxu2 %v7460_v19  ;;  %2671 = vmatpush.bf16.msrb.mxu3 %v8621_v4  ;;  %v8084_v19 = vor.u32 %v8910_v45, %v8083_v41  ;;  %v7485_v45 = vld [vmem:[%s12977_s7 + $0x438] sm:$0xf0] }
 0x18c   :  { %v10910_v13 = vpop.f32.mrf.mxu2 }
 0x18d   :  { %v2257_v18 = vadd.f32 %v10910_v13, %v2244_v57  ;;  %v7411_v13 = vld [vmem:[%s12977_s7 + $0x390] sm:$0xf] }
 0x18e   :  { %4544 = vmatpush.bf16.msra.mxu1 %v7268_v14  ;;  %v8742_v14 = vld [vmem:[%s12977_s7 + $0x3a4] sm:$0xf0]  ;;  %v7699_v57 = vld [vmem:[%s12977_s7 + $0x5d0] sm:$0xf] }
 0x18f   :  { %4558 = vmatpush.bf16.msra.mxu2 %v7436_v9  ;;  %v7412_v22 = vor.u32 %v8742_v14, %v7411_v13  ;;  %2672 = vmatpush.bf16.msrb.mxu3 %v8620_v21  ;;  %v7700_v62 = vor.u32 %v8814_v60, %v7699_v57  ;;  %v7747_v14 = vld [vmem:[%s12977_s7 + $0x630] sm:$0xf]  ;;  %v8898_v21 = vld [vmem:[%s12977_s7 + $0x884] sm:$0xf0]  ;;  %v7963_v60 = vld [vmem:[%s12977_s7 + $0x7e0] sm:$0xf] }
 0x192   :  { %4545 = vmatpush.bf16.msra.mxu1 %v7244_v26  ;;  %v7387_v26 = vld [vmem:[%s12977_s7 + $0x360] sm:$0xf] }
 0x193   :  { %4559 = vmatpush.bf16.msra.mxu2 %v7412_v22  ;;  %v7388_v58 = vor.u32 %v8736_v27, %v7387_v26  ;;  %2673 = vmatpush.bf16.msrb.mxu3 %v8619_v10  ;;  %v7651_v22 = vld [vmem:[%s12977_s7 + $0x570] sm:$0xf]  ;;  %v7748_v26 = vor.u32 %v8826_v16, %v7747_v14  ;;  %v8036_v27 = vor.u32 %v8898_v21, %v8035_v20  ;;  %v8892_v10 = vld [vmem:[%s12977_s7 + $0x854] sm:$0xf0]  ;;  %v7915_v16 = vld [vmem:[%s12977_s7 + $0x780] sm:$0xf] }
 0x194   :  { %v2258_v31 = vpop.f32.mrf.mxu2 }
 0x196   :  { %4546 = vmatpush.bf16.msra.mxu1 %v7220_v30  ;;  %v8850_v30 = vld [vmem:[%s12977_s7 + $0x704] sm:$0xf0] }
 0x197   :  { %v7844_v1 = vor.u32 %v8850_v30, %v7843_v29  ;;  %4560 = vmatpush.bf16.msra.mxu2 %v7388_v58  ;;  %2674 = vmatpush.bf16.msrb.mxu3 %v8618_v37  ;;  %v8820_v29 = vld [vmem:[%s12977_s7 + $0x614] sm:$0xf0]  ;;  %v8011_v30 = vld [vmem:[%s12977_s7 + $0x840] sm:$0xf]  ;;  %v8763_v58 = vld [vmem:[%s12977_s7 + $0x454] sm:$0xf] }
 0x19a   :  { %4547 = vmatpush.bf16.msra.mxu1 %v7196_v32  ;;  %v7363_v32 = vld [vmem:[%s12977_s7 + $0x330] sm:$0xf] }
 0x19b   :  { %2675 = vmatpush.bf16.msrb.mxu3 %v8617_v55 }
 0x19c   :  { %v1368_v34 = vpop.f32.mrf.mxu3  ;;  %v10961_v48 = vpop.f32.mrf.mxu2 }
 0x19d   :  { %v10959_v38 = vadd.f32 %v1368_v34, %v10850_v46  ;;  %v2284_v46 = vpop.f32.mrf.mxu0  ;;  %v2309_v34 = vadd.f32 %v10961_v48, %v2296_v28  ;;  %v8838_v48 = vld [vmem:[%s12977_s7 + $0x6a4] sm:$0xf0]  ;;  %v7723_v28 = vld [vmem:[%s12977_s7 + $0x600] sm:$0xf] }
 0x19e   :  { %4548 = vmatpush.bf16.msra.mxu1 %v7172_v39  ;;  %v7364_v39 = vor.u32 %v8730_v33, %v7363_v32  ;;  %v7339_v46 = vld [vmem:[%s12977_s7 + $0x300] sm:$0xf]  ;;  %v8796_v33 = vld [vmem:[%s12977_s7 + $0x554] sm:$0xf0]  ;;  %v7724_v37 = vor.u32 %v8820_v29, %v7723_v28  ;;  %v7413_v28 = vld [vmem:[%s12977_s7 + $0x3a8] sm:$0xf0] }
 0x19f   :  { %v7340_v56 = vor.u32 %v8724_v47, %v7339_v46  ;;  %4568 = vmatpush.bf16.msra.mxu3 %v7700_v62  ;;  %v7627_v32 = vld [vmem:[%s12977_s7 + $0x540] sm:$0xf]  ;;  %v7603_v46 = vld [vmem:[%s12977_s7 + $0x510] sm:$0xf]  ;;  %v8790_v47 = vld [vmem:[%s12977_s7 + $0x524] sm:$0xf0] }
 0x1a0   :  { %4561 = vmatpush.bf16.msra.mxu2 %v7364_v39  ;;  %v7628_v36 = vor.u32 %v8796_v33, %v7627_v32  ;;  %v8012_v39 = vor.u32 %v8892_v10, %v8011_v30  ;;  %v7604_v55 = vor.u32 %v8790_v47, %v7603_v46  ;;  %v8751_v62 = vld [vmem:[%s12977_s7 + $0x3f4] sm:$0xf]  ;;  %v7531_v29 = vld [vmem:[%s12977_s7 + $0x480] sm:$0xf]  ;;  %v8772_v30 = vld [vmem:[%s12977_s7 + $0x494] sm:$0xf0] }
 0x1a1   :  { %v8811_v10 = vld [vmem:[%s12977_s7 + $0x5d4] sm:$0xf] }
 0x1a2   :  { %4549 = vmatpush.bf16.msra.mxu1 %v7148_v43 }
 0x1a4   :  { %v10981_v52 = vpop.f32.mrf.mxu3  ;;  %v2310_v61 = vpop.f32.mrf.mxu2  ;;  %4562 = vmatpush.bf16.msra.mxu2 %v7340_v56 }
 0x1a5   :  { %v11034_v25 = vpop.f32.mrf.mxu0  ;;  %v11050_v31 = vpop.f32.mrf.mxu1 }
 0x1ac   :  { %v2269_v3 = vpop.f32.mrf.mxu3 }
 0x1ad   :  { %v2270_v7 = vadd.f32 %v2269_v3, %v2257_v18  ;;  %v2336_v51 = vpop.f32.mrf.mxu0  ;;  %v2349_v61 = vpop.f32.mrf.mxu1  ;;  %v7796_v18 = vor.u32 %v8838_v48, %v7795_v40  ;;  %v7771_v3 = vld [vmem:[%s12977_s7 + $0x660] sm:$0xf]  ;;  %v11177_v48 = vld [vmem:[%s12972_s2 + $0x10] sm:$0xff] }
 0x1ae   :  { %v8880_v61 = vld [vmem:[%s12977_s7 + $0x7f4] sm:$0xf0] }
 0x1af   :  { %v2429_v11 = vmax.f32 %v2270_v7, 0.0  ;;  %v8904_v7 = vld [vmem:[%s12977_s7 + $0x8b4] sm:$0xf0] }
 0x1b0   :  { %v8060_v13 = vor.u32 %v8904_v7, %v8059_v6  ;;  %v7939_v7 = vld [vmem:[%s12977_s7 + $0x7b0] sm:$0xf] }
 0x1b1   :  { %v2433_v15 = vpack.c.bf16 %v2429_v11, %v2429_v11  ;;  %v7676_v11 = vor.u32 %v8808_v2, %v7675_v8  ;;  %v8874_v8 = vld [vmem:[%s12977_s7 + $0x7c4] sm:$0xf0]  ;;  %v8745_v2 = vld [vmem:[%s12977_s7 + $0x3c4] sm:$0xf] }
 0x1b3   :  { %2637 = vmatmul.bf16.vlgmr.msrb.gmra.mxu0 %v2433_v15  ;;  %4569 = vmatpush.bf16.msra.mxu3 %v7676_v11  ;;  %v7437_v11 = vld [vmem:[%s12977_s7 + $0x3d8] sm:$0xf0] }
 0x1b4   :  { %4581 = vmatpush.bf16.msrb.mxu0 %v7892_v12  ;;  %v2271_v23 = vpop.f32.mrf.mxu3  ;;  %v7772_v12 = vor.u32 %v8832_v5, %v7771_v3  ;;  %v8784_v3 = vld [vmem:[%s12977_s7 + $0x4f4] sm:$0xf0] }
 0x1b5   :  { %v8802_v23 = vld [vmem:[%s12977_s7 + $0x584] sm:$0xf0] }
 0x1b8   :  { %4582 = vmatpush.bf16.msrb.mxu0 %v7868_v24  ;;  %v7652_v24 = vor.u32 %v8802_v23, %v7651_v22  ;;  %v7440_v22 = vor.u32 %v8745_v2, %v7437_v11  ;;  %v8667_v23 = vld [vmem:[%s12977_s7 + $0x154] sm:$0xf]  ;;  %v7341_v2 = vld [vmem:[%s12977_s7 + $0x318] sm:$0xf0] }
 0x1b9   :  { %v7629_v11 = vld [vmem:[%s12977_s7 + $0x558] sm:$0xf0] }
 0x1ba   :  { %4570 = vmatpush.bf16.msra.mxu3 %v7652_v24  ;;  %v7125_v24 = vld [vmem:[%s12977_s7 + $0x168] sm:$0xf0] }
 0x1bc   :  { %v11086_v42 = vpop.f32.mrf.mxu2  ;;  %4583 = vmatpush.bf16.msrb.mxu0 %v7844_v1  ;;  %v2321_v43 = vpop.f32.mrf.mxu3  ;;  %v7509_v1 = vld [vmem:[%s12977_s7 + $0x468] sm:$0xf0] }
 0x1bd   :  { %v2322_v53 = vadd.f32 %v2321_v43, %v2309_v34  ;;  %v3072_v34 = vunpack.c.h.b16 %v11058_v17  ;;  %v7512_v41 = vor.u32 %v8763_v58, %v7509_v1  ;;  %v8886_v17 = vld [vmem:[%s12977_s7 + $0x824] sm:$0xf0]  ;;  %v8757_v43 = vld [vmem:[%s12977_s7 + $0x424] sm:$0xf]  ;;  %v7701_v58 = vld [vmem:[%s12977_s7 + $0x5e8] sm:$0xf0]  ;;  %v7532_v1 = vor.u32 %v8772_v30, %v7531_v29 }
 0x1be   :  { %4571 = vmatpush.bf16.msra.mxu3 %v7628_v36  ;;  %v7988_v56 = vor.u32 %v8886_v17, %v7987_v54  ;;  %v7488_v57 = vor.u32 %v8757_v43, %v7485_v45  ;;  %v7704_v54 = vor.u32 %v8811_v10, %v7701_v58  ;;  %v7101_v17 = vld [vmem:[%s12977_s7 + $0x138] sm:$0xf0]  ;;  %v8733_v43 = vld [vmem:[%s12977_s7 + $0x364] sm:$0xf] }
 0x1bf   :  { %v2430_v63 = vmax.f32 %v2322_v53, 0.0  ;;  %v11198_v51 = vpack.c.b16 %v3072_v34, %v3072_v34  ;;  %v7128_v34 = vor.u32 %v8667_v23, %v7125_v24  ;;  %v8805_v45 = vld [vmem:[%s12977_s7 + $0x5a4] sm:$0xf]  ;;  %v7029_v23 = vld [vmem:[%s12977_s7 + $0xa8] sm:$0xf0] }
 0x1c0   :  { %4584 = vmatpush.bf16.msrb.mxu0 %v7820_v44  ;;  %v11170_v35 = vpop.f32.mrf.mxu0  ;;  %v3075_v44 = vunpack.c.l.b16 %v11177_v48  ;;  %v8787_v24 = vld [vmem:[%s12977_s7 + $0x514] sm:$0xf] }
 0x1c1   :  { %v2434_v4 = vpack.c.bf16 %v2430_v63, %v2430_v63  ;;  %v2348_v63 = vadd.f32 %v11050_v31, %v11034_v25  ;;  %v7964_v25 = vor.u32 %v8880_v61, %v7963_v60  ;;  %v8655_v60 = vld [vmem:[%s12977_s7 + $0xf4] sm:$0xf] }
 0x1c2   :  { %v11200_v53 = vpack.c.b16 %v3075_v44, %v3075_v44  ;;  %4572 = vmatpush.bf16.msra.mxu3 %v7604_v55  ;;  %v7389_v44 = vld [vmem:[%s12977_s7 + $0x378] sm:$0xf0] }
 0x1c3   :  { %2650 = vmatmul.bf16.vlgmr.msrb.gmra.mxu1 %v2434_v4  ;;  %4537 = vmatmul.bf16.vlgmr.msra.gmra.mxu0 %v11106_v0 }
 0x1c4   :  { %v2362_v9 = vpop.f32.mrf.mxu2  ;;  %4585 = vmatpush.bf16.msrb.mxu0 %v7796_v18  ;;  %4594 = vmatpush.bf16.msrb.mxu1 %v8084_v19  ;;  %v2323_v15 = vpop.f32.mrf.mxu3  ;;  %v7461_v18 = vld [vmem:[%s12977_s7 + $0x408] sm:$0xf0]  ;;  %v7579_v19 = vld [vmem:[%s12977_s7 + $0x4e0] sm:$0xf] }
 0x1c5   :  { %v11172_v40 = vpop.f32.mrf.mxu1  ;;  %v7580_v5 = vor.u32 %v8784_v3, %v7579_v19  ;;  %v7464_v6 = vor.u32 %v8751_v62, %v7461_v18  ;;  %v2361_v9 = vadd.f32 %v11086_v42, %v2348_v63  ;;  %v7940_v15 = vor.u32 %v8874_v8, %v7939_v7  ;;  %v8868_v42 = vld [vmem:[%s12977_s7 + $0x794] sm:$0xf0]  ;;  %v7077_v62 = vld [vmem:[%s12977_s7 + $0x108] sm:$0xf0]  ;;  %v8727_v63 = vld [vmem:[%s12977_s7 + $0x334] sm:$0xf] }
 0x1c6   :  { %v7916_v33 = vor.u32 %v8868_v42, %v7915_v16  ;;  %v7365_v18 = vld [vmem:[%s12977_s7 + $0x348] sm:$0xf0]  ;;  %v8799_v19 = vld [vmem:[%s12977_s7 + $0x574] sm:$0xf]  ;;  %v8721_v8 = vld [vmem:[%s12977_s7 + $0x304] sm:$0xf] }
 0x1c7   :  { %4573 = vmatpush.bf16.msra.mxu3 %v7580_v5  ;;  %v7653_v3 = vld [vmem:[%s12977_s7 + $0x588] sm:$0xf0]  ;;  %v7368_v5 = vor.u32 %v8727_v63, %v7365_v18  ;;  %v7344_v16 = vor.u32 %v8721_v8, %v7341_v2  ;;  %v7323_v2 = vld [vmem:[%s12977_s7 + $0x2d8] sm:$0xf] }
 0x1c8   :  { %4586 = vmatpush.bf16.msrb.mxu0 %v7772_v12  ;;  %4595 = vmatpush.bf16.msrb.mxu1 %v8060_v13  ;;  %v2388_v4 = vpop.f32.mrf.mxu0  ;;  %v7555_v12 = vld [vmem:[%s12977_s7 + $0x4b0] sm:$0xf]  ;;  %v8778_v13 = vld [vmem:[%s12977_s7 + $0x4c4] sm:$0xf0]  ;;  %v7656_v7 = vor.u32 %v8799_v19, %v7653_v3  ;;  %v7317_v63 = vld [vmem:[%s12977_s7 + $0x2e8] sm:$0xf0] }
 0x1c9   :  { %v7556_v14 = vor.u32 %v8778_v13, %v7555_v12  ;;  %v7080_v4 = vor.u32 %v8655_v60, %v7077_v62  ;;  %v7131_v12 = vld [vmem:[%s12977_s7 + $0x158] sm:$0xf]  ;;  %v8671_v13 = vld [vmem:[%s12977_s7 + $0x16c] sm:$0xf0]  ;;  %v8715_v62 = vld [vmem:[%s12977_s7 + $0x2d4] sm:$0xf] }
 0x1ca   :  { %v8769_v19 = vld [vmem:[%s12977_s7 + $0x484] sm:$0xf]  ;;  %v7533_v3 = vld [vmem:[%s12977_s7 + $0x498] sm:$0xf0] }
 0x1cb   :  { %4574 = vmatpush.bf16.msra.mxu3 %v7556_v14 }
 0x1cc   :  { %4587 = vmatpush.bf16.msrb.mxu0 %v7748_v26  ;;  %4596 = vmatpush.bf16.msrb.mxu1 %v8036_v27  ;;  %v8739_v26 = vld [vmem:[%s12977_s7 + $0x394] sm:$0xf] }
 0x1cd   :  { %v2401_v31 = vpop.f32.mrf.mxu1  ;;  %v7416_v36 = vor.u32 %v8739_v26, %v7413_v28  ;;  %v7605_v26 = vld [vmem:[%s12977_s7 + $0x528] sm:$0xf0]  ;;  %v8665_v28 = vld [vmem:[%s12977_s7 + $0x13c] sm:$0xf0] }
 0x1ce   :  { %v7053_v31 = vld [vmem:[%s12977_s7 + $0xd8] sm:$0xf0]  ;;  %v7608_v10 = vor.u32 %v8787_v24, %v7605_v26  ;;  %v7011_v26 = vld [vmem:[%s12977_s7 + $0x68] sm:$0xf] }
 0x1cf   :  { %4575 = vmatpush.bf16.msra.mxu3 %v7532_v1  ;;  %v8637_v1 = vld [vmem:[%s12977_s7 + $0x64] sm:$0xf]  ;;  %v7869_v24 = vld [vmem:[%s12977_s7 + $0x738] sm:$0xf0] }
 0x1d0   :  { %4588 = vmatpush.bf16.msrb.mxu0 %v7724_v37  ;;  %4597 = vmatpush.bf16.msrb.mxu1 %v8012_v39  ;;  %v8661_v37 = vld [vmem:[%s12977_s7 + $0x124] sm:$0xf]  ;;  %v3076_v39 = vunpack.c.h.b16 %v11177_v48  ;;  %v7677_v48 = vld [vmem:[%s12977_s7 + $0x5b8] sm:$0xf0] }
 0x1d1   :  { %v7104_v55 = vor.u32 %v8661_v37, %v7101_v17  ;;  %v7680_v61 = vor.u32 %v8805_v45, %v7677_v48  ;;  %v7083_v37 = vld [vmem:[%s12977_s7 + $0xf8] sm:$0xf]  ;;  %v6981_v17 = vld [vmem:[%s12977_s7 + $0x48] sm:$0xf0]  ;;  %v7059_v48 = vld [vmem:[%s12977_s7 + $0xc8] sm:$0xf] }
 0x1d2   :  { %v11294_v46 = vpack.c.b16 %v3076_v39, %v3076_v39  ;;  %v8659_v39 = vld [vmem:[%s12977_s7 + $0x10c] sm:$0xf0]  ;;  %v7557_v45 = vld [vmem:[%s12977_s7 + $0x4c8] sm:$0xf0] }
 0x1d3   :  { %4550 = vmatmul.bf16.vlgmr.msra.gmra.mxu1 %v11198_v51  ;;  %4589 = vmatmul.bf16.vlgmr.msrb.gmra.mxu0 %v11200_v53 }
 0x1d4   :  { %4633 = vmatpush.bf16.msra.mxu0 %v7512_v41  ;;  %4598 = vmatpush.bf16.msrb.mxu1 %v7988_v56  ;;  %v7392_v56 = vor.u32 %v8733_v43, %v7389_v44  ;;  %v8775_v43 = vld [vmem:[%s12977_s7 + $0x4b4] sm:$0xf] }
 0x1d8   :  { %4634 = vmatpush.bf16.msra.mxu0 %v7488_v57  ;;  %4599 = vmatpush.bf16.msrb.mxu1 %v7964_v25  ;;  %v8649_v25 = vld [vmem:[%s12977_s7 + $0xc4] sm:$0xf] }
 0x1dc   :  { %v11249_v20 = vpop.f32.mrf.mxu2  ;;  %v2373_v21 = vpop.f32.mrf.mxu3  ;;  %4635 = vmatpush.bf16.msra.mxu0 %v7464_v6  ;;  %4600 = vmatpush.bf16.msrb.mxu1 %v7940_v15  ;;  %v11324_v6 = vld [vmem:[%s12972_s2 + $0x8] sm:$0xff]  ;;  %v7056_v15 = vor.u32 %v8649_v25, %v7053_v31  ;;  %v7035_v25 = vld [vmem:[%s12977_s7 + $0x98] sm:$0xf]  ;;  %v8647_v31 = vld [vmem:[%s12977_s7 + $0xac] sm:$0xf0] }
 0x1dd   :  { %v2374_v27 = vadd.f32 %v2373_v21, %v2361_v9  ;;  %v8793_v9 = vld [vmem:[%s12977_s7 + $0x544] sm:$0xf]  ;;  %v3073_v14 = vunpack.c.l.b16 %v11324_v6  ;;  %v7132_v21 = vor.u32 %v8671_v13, %v7131_v12  ;;  %v7536_v12 = vor.u32 %v8769_v19, %v7533_v3 }
 0x1de   :  { %v7632_v42 = vor.u32 %v8793_v9, %v7629_v11  ;;  %v8719_v9 = vld [vmem:[%s12977_s7 + $0x2ec] sm:$0xf0]  ;;  %v7320_v11 = vor.u32 %v8715_v62, %v7317_v63  ;;  %v7899_v62 = vld [vmem:[%s12977_s7 + $0x758] sm:$0xf] }
 0x1df   :  { %v2431_v32 = vmax.f32 %v2374_v27, 0.0  ;;  %v7107_v27 = vld [vmem:[%s12977_s7 + $0x128] sm:$0xf]  ;;  %v11363_v29 = vpack.c.b16 %v3073_v14, %v3073_v14  ;;  %v8863_v63 = vld [vmem:[%s12977_s7 + $0x76c] sm:$0xf0] }
 0x1e0   :  { %4636 = vmatpush.bf16.msra.mxu0 %v7440_v22  ;;  %4601 = vmatpush.bf16.msrb.mxu1 %v7916_v33  ;;  %v8643_v22 = vld [vmem:[%s12977_s7 + $0x94] sm:$0xf]  ;;  %v7108_v58 = vor.u32 %v8665_v28, %v7107_v27  ;;  %v8781_v33 = vld [vmem:[%s12977_s7 + $0x4e4] sm:$0xf]  ;;  %v8641_v27 = vld [vmem:[%s12977_s7 + $0x7c] sm:$0xf0] }
 0x1e1   :  { %v2435_v41 = vpack.c.bf16 %v2431_v32, %v2431_v32  ;;  %v7032_v30 = vor.u32 %v8643_v22, %v7029_v23  ;;  %v7005_v32 = vld [vmem:[%s12977_s7 + $0x78] sm:$0xf0]  ;;  %v3074_v22 = vunpack.c.h.b16 %v11324_v6  ;;  %v7324_v23 = vor.u32 %v8719_v9, %v7323_v2  ;;  %v7299_v28 = vld [vmem:[%s12977_s7 + $0x2a8] sm:$0xf]  ;;  %v8713_v6 = vld [vmem:[%s12977_s7 + $0x2bc] sm:$0xf0] }
 0x1e2   :  { %v7227_v2 = vld [vmem:[%s12977_s7 + $0x218] sm:$0xf]  ;;  %v8695_v9 = vld [vmem:[%s12977_s7 + $0x22c] sm:$0xf0] }
 0x1e3   :  { %2663 = vmatmul.bf16.vlgmr.msrb.gmra.mxu2 %v2435_v41  ;;  %4602 = vmatmul.bf16.vlgmr.msrb.gmra.mxu1 %v11294_v46  ;;  %v7008_v41 = vor.u32 %v8637_v1, %v7005_v32  ;;  %v7012_v1 = vor.u32 %v8641_v27, %v7011_v26  ;;  %v8703_v32 = vld [vmem:[%s12977_s7 + $0x274] sm:$0xf]  ;;  %v8689_v26 = vld [vmem:[%s12977_s7 + $0x1fc] sm:$0xf0]  ;;  %v7851_v27 = vld [vmem:[%s12977_s7 + $0x6f8] sm:$0xf] }
 0x1e4   :  { %v2414_v47 = vpop.f32.mrf.mxu2  ;;  %4607 = vmatpush.bf16.msrb.mxu2 %v7128_v34  ;;  %4637 = vmatpush.bf16.msra.mxu0 %v7416_v36  ;;  %v2375_v57 = vpop.f32.mrf.mxu3  ;;  %v2400_v34 = vadd.f32 %v11172_v40, %v11170_v35  ;;  %v7581_v36 = vld [vmem:[%s12977_s7 + $0x4f8] sm:$0xf0]  ;;  %v7084_v40 = vor.u32 %v8659_v39, %v7083_v37  ;;  %v7300_v37 = vor.u32 %v8713_v6, %v7299_v28  ;;  %v7845_v39 = vld [vmem:[%s12977_s7 + $0x708] sm:$0xf0]  ;;  %v8851_v28 = vld [vmem:[%s12977_s7 + $0x70c] sm:$0xf0] }
 0x1e5   :  { %4646 = vmatpush.bf16.msra.mxu1 %v7704_v54  ;;  %v7584_v35 = vor.u32 %v8781_v33, %v7581_v36  ;;  %v8631_v54 = vld [vmem:[%s12977_s7 + $0x34] sm:$0xf]  ;;  %v8653_v47 = vld [vmem:[%s12977_s7 + $0xdc] sm:$0xf0]  ;;  %v7560_v57 = vor.u32 %v8775_v43, %v7557_v45  ;;  %v7269_v33 = vld [vmem:[%s12977_s7 + $0x288] sm:$0xf0]  ;;  %v11476_v36 = vpack.c.b16 %v3074_v22, %v3074_v22 }
 0x1e6   :  { %v2413_v44 = vadd.f32 %v11249_v20, %v2400_v34  ;;  %v7060_v60 = vor.u32 %v8653_v47, %v7059_v48  ;;  %v8847_v34 = vld [vmem:[%s12977_s7 + $0x6f4] sm:$0xf]  ;;  %v8697_v43 = vld [vmem:[%s12977_s7 + $0x244] sm:$0xf]  ;;  %v7245_v48 = vld [vmem:[%s12977_s7 + $0x258] sm:$0xf0] }
 0x1e7   :  { %v8841_v47 = vld [vmem:[%s12977_s7 + $0x6c4] sm:$0xf] }
 0x1e8   :  { %4608 = vmatpush.bf16.msrb.mxu2 %v7104_v55  ;;  %4638 = vmatpush.bf16.msra.mxu0 %v7392_v56  ;;  %v6984_v55 = vor.u32 %v8631_v54, %v6981_v17  ;;  %v8625_v56 = vld [vmem:[%s12977_s7 + $0x4] sm:$0xf]  ;;  %v8707_v54 = vld [vmem:[%s12977_s7 + $0x28c] sm:$0xf0]  ;;  %v7272_v17 = vor.u32 %v8703_v32, %v7269_v33  ;;  %v7852_v32 = vor.u32 %v8851_v28, %v7851_v27  ;;  %v8823_v33 = vld [vmem:[%s12977_s7 + $0x634] sm:$0xf] }
 0x1e9   :  { %4647 = vmatpush.bf16.msra.mxu1 %v7680_v61  ;;  %v6957_v61 = vld [vmem:[%s12977_s7 + $0x18] sm:$0xf0]  ;;  %v8829_v22 = vld [vmem:[%s12977_s7 + $0x664] sm:$0xf]  ;;  %v7467_v27 = vld [vmem:[%s12977_s7 + $0x3f8] sm:$0xf] }
 0x1ea   :  { %v6960_v8 = vor.u32 %v8625_v56, %v6957_v61  ;;  %v8701_v61 = vld [vmem:[%s12977_s7 + $0x25c] sm:$0xf0]  ;;  %v8755_v28 = vld [vmem:[%s12977_s7 + $0x40c] sm:$0xf0] }
 0x1ec   :  { %4609 = vmatpush.bf16.msrb.mxu2 %v7080_v4  ;;  %4639 = vmatpush.bf16.msra.mxu0 %v7368_v5  ;;  %v8859_v4 = vld [vmem:[%s12977_s7 + $0x754] sm:$0xf]  ;;  %v7893_v5 = vld [vmem:[%s12977_s7 + $0x768] sm:$0xf0] }
 0x1ed   :  { %4648 = vmatpush.bf16.msra.mxu1 %v7656_v7  ;;  %v7896_v14 = vor.u32 %v8859_v4, %v7893_v5  ;;  %v8691_v4 = vld [vmem:[%s12977_s7 + $0x214] sm:$0xf]  ;;  %v7221_v5 = vld [vmem:[%s12977_s7 + $0x228] sm:$0xf0] }
 0x1f0   :  { %4610 = vmatpush.bf16.msrb.mxu2 %v7056_v15  ;;  %4640 = vmatpush.bf16.msra.mxu0 %v7344_v16  ;;  %v7036_v15 = vor.u32 %v8647_v31, %v7035_v25  ;;  %v8709_v16 = vld [vmem:[%s12977_s7 + $0x2a4] sm:$0xf]  ;;  %v7900_v31 = vor.u32 %v8863_v63, %v7899_v62  ;;  %v7803_v62 = vld [vmem:[%s12977_s7 + $0x698] sm:$0xf] }
 0x1f1   :  { %4649 = vmatpush.bf16.msra.mxu1 %v7632_v42  ;;  %v7293_v42 = vld [vmem:[%s12977_s7 + $0x2b8] sm:$0xf0] }
 0x1f3   :  { %4563 = vmatmul.bf16.vlgmr.msra.gmra.mxu2 %v11363_v29  ;;  %4641 = vmatmul.bf16.vlgmr.msra.gmra.mxu0 %v11363_v29 }
 0x1f4   :  { %4685 = vmatpush.bf16.msrb.mxu0 %v7132_v21  ;;  %4611 = vmatpush.bf16.msrb.mxu2 %v7032_v30  ;;  %v8853_v21 = vld [vmem:[%s12977_s7 + $0x724] sm:$0xf] }
 0x1f5   :  { %4650 = vmatpush.bf16.msra.mxu1 %v7608_v10  ;;  %v7296_v10 = vor.u32 %v8709_v16, %v7293_v42  ;;  %v7197_v16 = vld [vmem:[%s12977_s7 + $0x1f8] sm:$0xf0]  ;;  %v7228_v42 = vor.u32 %v8695_v9, %v7227_v2 }
 0x1f8   :  { %4686 = vmatpush.bf16.msrb.mxu0 %v7108_v58  ;;  %4612 = vmatpush.bf16.msrb.mxu2 %v7008_v41  ;;  %v7872_v58 = vor.u32 %v8853_v21, %v7869_v24  ;;  %v6987_v41 = vld [vmem:[%s12977_s7 + $0x38] sm:$0xf]  ;;  %v7203_v24 = vld [vmem:[%s12977_s7 + $0x1e8] sm:$0xf] }
 0x1f9   :  { %4651 = vmatpush.bf16.msra.mxu1 %v7584_v35  ;;  %v8635_v35 = vld [vmem:[%s12977_s7 + $0x4c] sm:$0xf0] }
 0x1fa   :  { %v6988_v45 = vor.u32 %v8635_v35, %v6987_v41  ;;  %v7827_v41 = vld [vmem:[%s12977_s7 + $0x6c8] sm:$0xf]  ;;  %v8845_v35 = vld [vmem:[%s12977_s7 + $0x6dc] sm:$0xf0] }
 0x1fc   :  { %v2425_v20 = vpop.f32.mrf.mxu3  ;;  %4687 = vmatpush.bf16.msrb.mxu0 %v7084_v40  ;;  %4613 = vmatpush.bf16.msrb.mxu2 %v6984_v55  ;;  %v7275_v40 = vld [vmem:[%s12977_s7 + $0x278] sm:$0xf]  ;;  %v7821_v55 = vld [vmem:[%s12977_s7 + $0x6d8] sm:$0xf0] }
 0x1fd   :  { %v2426_v18 = vadd.f32 %v2425_v20, %v2413_v44  ;;  %4652 = vmatpush.bf16.msra.mxu1 %v7560_v57  ;;  %v7848_v44 = vor.u32 %v8847_v34, %v7845_v39  ;;  %v7276_v56 = vor.u32 %v8707_v54, %v7275_v40  ;;  %v6963_v20 = vld [vmem:[%s12977_s7 + $0x8] sm:$0xf]  ;;  %v8629_v57 = vld [vmem:[%s12977_s7 + $0x1c] sm:$0xf0]  ;;  %v7824_v19 = vor.u32 %v8841_v47, %v7821_v55  ;;  %v7749_v34 = vld [vmem:[%s12977_s7 + $0x648] sm:$0xf0] }
 0x1fe   :  { %v6964_v3 = vor.u32 %v8629_v57, %v6963_v20  ;;  %v8683_v39 = vld [vmem:[%s12977_s7 + $0x1cc] sm:$0xf0]  ;;  %v8673_v54 = vld [vmem:[%s12977_s7 + $0x184] sm:$0xf]  ;;  %v7828_v55 = vor.u32 %v8845_v35, %v7827_v41  ;;  %v7155_v20 = vld [vmem:[%s12977_s7 + $0x188] sm:$0xf] }
 0x1ff   :  { %v2432_v7 = vmax.f32 %v2426_v18, 0.0  ;;  %v7248_v18 = vor.u32 %v8697_v43, %v7245_v48  ;;  %v7752_v43 = vor.u32 %v8823_v33, %v7749_v34  ;;  %v8907_v48 = vld [vmem:[%s12977_s7 + $0x8d4] sm:$0xf]  ;;  %v8677_v57 = vld [vmem:[%s12977_s7 + $0x19c] sm:$0xf0] }
 0x200   :  { %4688 = vmatpush.bf16.msrb.mxu0 %v7060_v60  ;;  %4614 = vmatpush.bf16.msrb.mxu2 %v6960_v8  ;;  %v7251_v60 = vld [vmem:[%s12977_s7 + $0x248] sm:$0xf]  ;;  %v7797_v8 = vld [vmem:[%s12977_s7 + $0x6a8] sm:$0xf0]  ;;  %v8889_v33 = vld [vmem:[%s12977_s7 + $0x844] sm:$0xf] }
 0x201   :  { %v2436_v13 = vpack.c.bf16 %v2432_v7, %v2432_v7  ;;  %4653 = vmatpush.bf16.msra.mxu1 %v7536_v12  ;;  %v7252_v25 = vor.u32 %v8701_v61, %v7251_v60  ;;  %v8835_v7 = vld [vmem:[%s12977_s7 + $0x694] sm:$0xf]  ;;  %v8857_v12 = vld [vmem:[%s12977_s7 + $0x73c] sm:$0xf0]  ;;  %v7515_v60 = vld [vmem:[%s12977_s7 + $0x458] sm:$0xf] }
 0x202   :  { %v8767_v61 = vld [vmem:[%s12977_s7 + $0x46c] sm:$0xf0]  ;;  %v8013_v34 = vld [vmem:[%s12977_s7 + $0x858] sm:$0xf0]  ;;  %v7443_v41 = vld [vmem:[%s12977_s7 + $0x3c8] sm:$0xf] }
 0x203   :  { %2676 = vmatmul.bf16.vlgmr.msrb.gmra.mxu3 %v2436_v13  ;;  %4615 = vmatmul.bf16.vlgmr.msrb.gmra.mxu2 %v11106_v0  ;;  %v7224_v13 = vor.u32 %v8691_v4, %v7221_v5  ;;  %v8749_v35 = vld [vmem:[%s12977_s7 + $0x3dc] sm:$0xf0] }
 0x204   :  { %4620 = vmatpush.bf16.msrb.mxu3 %v7320_v11  ;;  %v2427_v30 = vpop.f32.mrf.mxu3  ;;  %4659 = vmatpush.bf16.msra.mxu2 %v7896_v14  ;;  %v7875_v11 = vld [vmem:[%s12977_s7 + $0x728] sm:$0xf]  ;;  %v7800_v14 = vor.u32 %v8835_v7, %v7797_v8  ;;  %v8901_v7 = vld [vmem:[%s12977_s7 + $0x8a4] sm:$0xf]  ;;  %v8061_v8 = vld [vmem:[%s12977_s7 + $0x8b8] sm:$0xf0] }
 0x205   :  { %4689 = vmatpush.bf16.msrb.mxu0 %v7036_v15  ;;  %4698 = vmatpush.bf16.msrb.mxu1 %v7324_v23  ;;  %v8685_v15 = vld [vmem:[%s12977_s7 + $0x1e4] sm:$0xf]  ;;  %v7876_v21 = vor.u32 %v8857_v12, %v7875_v11  ;;  %v7773_v23 = vld [vmem:[%s12977_s7 + $0x678] sm:$0xf0]  ;;  %v7491_v11 = vld [vmem:[%s12977_s7 + $0x428] sm:$0xf] }
 0x206   :  { %4654 = vmatmul.bf16.vlgmr.msra.gmra.mxu1 %v11476_v36  ;;  %v7200_v6 = vor.u32 %v8685_v15, %v7197_v16  ;;  %v7776_v30 = vor.u32 %v8829_v22, %v7773_v23  ;;  %v8761_v12 = vld [vmem:[%s12977_s7 + $0x43c] sm:$0xf0]  ;;  %v8067_v15 = vld [vmem:[%s12977_s7 + $0x8a8] sm:$0xf]  ;;  %v8895_v22 = vld [vmem:[%s12977_s7 + $0x874] sm:$0xf] }
 0x207   :  { %v8905_v16 = vld [vmem:[%s12977_s7 + $0x8bc] sm:$0xf0]  ;;  %v8037_v23 = vld [vmem:[%s12977_s7 + $0x888] sm:$0xf0] }
 0x208   :  { %4621 = vmatpush.bf16.msrb.mxu3 %v7296_v10  ;;  %4660 = vmatpush.bf16.msra.mxu2 %v7872_v58  ;;  %v8679_v10 = vld [vmem:[%s12977_s7 + $0x1b4] sm:$0xf]  ;;  %v7173_v58 = vld [vmem:[%s12977_s7 + $0x1c8] sm:$0xf0] }
 0x209   :  { %4690 = vmatpush.bf16.msrb.mxu0 %v7012_v1  ;;  %4699 = vmatpush.bf16.msrb.mxu1 %v7300_v37  ;;  %v7204_v1 = vor.u32 %v8689_v26, %v7203_v24  ;;  %v7179_v37 = vld [vmem:[%s12977_s7 + $0x1b8] sm:$0xf]  ;;  %v7176_v40 = vor.u32 %v8679_v10, %v7173_v58  ;;  %v8068_v26 = vor.u32 %v8905_v16, %v8067_v15  ;;  %v8899_v58 = vld [vmem:[%s12977_s7 + $0x88c] sm:$0xf0]  ;;  %v7469_v15 = vld [vmem:[%s12977_s7 + $0x410] sm:$0xf0] }
 0x20a   :  { %v7180_v47 = vor.u32 %v8683_v39, %v7179_v37  ;;  %v8043_v10 = vld [vmem:[%s12977_s7 + $0x878] sm:$0xf] }
 0x20b   :  { %v8044_v39 = vor.u32 %v8899_v58, %v8043_v10  ;;  %v7445_v10 = vld [vmem:[%s12977_s7 + $0x3e0] sm:$0xf0] }
 0x20c   :  { %4622 = vmatpush.bf16.msrb.mxu3 %v7272_v17  ;;  %4661 = vmatpush.bf16.msra.mxu2 %v7848_v44  ;;  %v7149_v17 = vld [vmem:[%s12977_s7 + $0x198] sm:$0xf0]  ;;  %v8817_v44 = vld [vmem:[%s12977_s7 + $0x604] sm:$0xf] }
 0x20d   :  { %4691 = vmatpush.bf16.msrb.mxu0 %v6988_v45  ;;  %4700 = vmatpush.bf16.msrb.mxu1 %v7276_v56  ;;  %v7725_v45 = vld [vmem:[%s12977_s7 + $0x618] sm:$0xf0]  ;;  %v8085_v56 = vld [vmem:[%s12977_s7 + $0x8e8] sm:$0xf0]  ;;  %v7152_v63 = vor.u32 %v8673_v54, %v7149_v17  ;;  %v8821_v54 = vld [vmem:[%s12977_s7 + $0x61c] sm:$0xf0] }
 0x20e   :  { %v7728_v4 = vor.u32 %v8817_v44, %v7725_v45  ;;  %v8088_v5 = vor.u32 %v8907_v48, %v8085_v56  ;;  %v8019_v17 = vld [vmem:[%s12977_s7 + $0x848] sm:$0xf]  ;;  %v8016_v44 = vor.u32 %v8889_v33, %v8013_v34  ;;  %v8764_v45 = vld [vmem:[%s12977_s7 + $0x45c] sm:$0xf]  ;;  %v7517_v48 = vld [vmem:[%s12977_s7 + $0x470] sm:$0xf0] }
 0x20f   :  { %v7989_v56 = vld [vmem:[%s12977_s7 + $0x828] sm:$0xf0]  ;;  %v8865_v58 = vld [vmem:[%s12977_s7 + $0x784] sm:$0xf]  ;;  %v7347_v34 = vld [vmem:[%s12977_s7 + $0x308] sm:$0xf] }
 0x210   :  { %4623 = vmatpush.bf16.msrb.mxu3 %v7248_v18  ;;  %4662 = vmatpush.bf16.msra.mxu2 %v7824_v19  ;;  %v8839_v18 = vld [vmem:[%s12977_s7 + $0x6ac] sm:$0xf0]  ;;  %v8091_v19 = vld [vmem:[%s12977_s7 + $0x8d8] sm:$0xf] }
 0x211   :  { %4692 = vmatpush.bf16.msrb.mxu0 %v6964_v3  ;;  %4701 = vmatpush.bf16.msrb.mxu1 %v7252_v25  ;;  %v8911_v3 = vld [vmem:[%s12977_s7 + $0x8ec] sm:$0xf0]  ;;  %v7156_v25 = vor.u32 %v8677_v57, %v7155_v20  ;;  %v7804_v2 = vor.u32 %v8839_v18, %v7803_v62  ;;  %v7520_v62 = vor.u32 %v8764_v45, %v7517_v48  ;;  %v8740_v45 = vld [vmem:[%s12977_s7 + $0x39c] sm:$0xf] }
 0x212   :  { %v8092_v9 = vor.u32 %v8911_v3, %v8091_v19  ;;  %v8887_v18 = vld [vmem:[%s12977_s7 + $0x82c] sm:$0xf0]  ;;  %v8758_v3 = vld [vmem:[%s12977_s7 + $0x42c] sm:$0xf] }
 0x213   :  { %4576 = vmatmul.bf16.vlgmr.msra.gmra.mxu3 %v11476_v36 }
 0x214   :  { %4624 = vmatpush.bf16.msrb.mxu3 %v7224_v13  ;;  %4693 = vmatmul.bf16.vlgmr.msrb.gmra.mxu0 %v11106_v0  ;;  %v7779_v13 = vld [vmem:[%s12977_s7 + $0x668] sm:$0xf] }
 0x215   :  { %4737 = vmatpush.bf16.msra.mxu0 %v7900_v31  ;;  %4663 = vmatpush.bf16.msra.mxu2 %v7800_v14  ;;  %v7516_v31 = vor.u32 %v8767_v61, %v7515_v60  ;;  %v8833_v14 = vld [vmem:[%s12977_s7 + $0x67c] sm:$0xf0]  ;;  %v7419_v60 = vld [vmem:[%s12977_s7 + $0x398] sm:$0xf]  ;;  %v8743_v61 = vld [vmem:[%s12977_s7 + $0x3ac] sm:$0xf0] }
 0x216   :  { %4702 = vmatpush.bf16.msrb.mxu1 %v7228_v42  ;;  %v8064_v42 = vor.u32 %v8901_v7, %v8061_v8  ;;  %v7780_v24 = vor.u32 %v8833_v14, %v7779_v13  ;;  %v7395_v8 = vld [vmem:[%s12977_s7 + $0x368] sm:$0xf]  ;;  %v8752_v14 = vld [vmem:[%s12977_s7 + $0x3fc] sm:$0xf] }
 0x218   :  { %4625 = vmatpush.bf16.msrb.mxu3 %v7200_v6  ;;  %v7755_v6 = vld [vmem:[%s12977_s7 + $0x638] sm:$0xf] }
 0x219   :  { %4738 = vmatpush.bf16.msra.mxu0 %v7876_v21  ;;  %4664 = vmatpush.bf16.msra.mxu2 %v7776_v30  ;;  %v7492_v21 = vor.u32 %v8761_v12, %v7491_v11  ;;  %v8827_v30 = vld [vmem:[%s12977_s7 + $0x64c] sm:$0xf0]  ;;  %v7971_v11 = vld [vmem:[%s12977_s7 + $0x7e8] sm:$0xf]  ;;  %v8881_v12 = vld [vmem:[%s12977_s7 + $0x7fc] sm:$0xf0] }
 0x21a   :  { %4703 = vmatpush.bf16.msrb.mxu1 %v7204_v1  ;;  %v8040_v1 = vor.u32 %v8895_v22, %v8037_v23  ;;  %v7756_v37 = vor.u32 %v8827_v30, %v7755_v6  ;;  %v7972_v22 = vor.u32 %v8881_v12, %v7971_v11  ;;  %v7371_v23 = vld [vmem:[%s12977_s7 + $0x338] sm:$0xf]  ;;  %v8746_v6 = vld [vmem:[%s12977_s7 + $0x3cc] sm:$0xf]  ;;  %v8803_v12 = vld [vmem:[%s12977_s7 + $0x58c] sm:$0xf0] }
 0x21b   :  { %v7659_v11 = vld [vmem:[%s12977_s7 + $0x578] sm:$0xf] }
 0x21c   :  { %4626 = vmatpush.bf16.msrb.mxu3 %v7176_v40  ;;  %v7731_v40 = vld [vmem:[%s12977_s7 + $0x608] sm:$0xf] }
 0x21d   :  { %4739 = vmatpush.bf16.msra.mxu0 %v7852_v32  ;;  %4665 = vmatpush.bf16.msra.mxu2 %v7752_v43  ;;  %v7468_v32 = vor.u32 %v8755_v28, %v7467_v27  ;;  %v8893_v43 = vld [vmem:[%s12977_s7 + $0x85c] sm:$0xf0]  ;;  %v7732_v20 = vor.u32 %v8821_v54, %v7731_v40  ;;  %v7947_v27 = vld [vmem:[%s12977_s7 + $0x7b8] sm:$0xf]  ;;  %v8875_v28 = vld [vmem:[%s12977_s7 + $0x7cc] sm:$0xf0] }
 0x21e   :  { %4704 = vmatpush.bf16.msrb.mxu1 %v7180_v47  ;;  %v7444_v47 = vor.u32 %v8749_v35, %v7443_v41  ;;  %v8020_v57 = vor.u32 %v8893_v43, %v8019_v17  ;;  %v7948_v41 = vor.u32 %v8875_v28, %v7947_v27  ;;  %v8815_v35 = vld [vmem:[%s12977_s7 + $0x5ec] sm:$0xf0]  ;;  %v7923_v40 = vld [vmem:[%s12977_s7 + $0x788] sm:$0xf]  ;;  %v8869_v54 = vld [vmem:[%s12977_s7 + $0x79c] sm:$0xf0]  ;;  %v7448_v17 = vor.u32 %v8746_v6, %v7445_v10 }
 0x21f   :  { %v8668_v43 = vld [vmem:[%s12977_s7 + $0x15c] sm:$0xf]  ;;  %v7635_v27 = vld [vmem:[%s12977_s7 + $0x548] sm:$0xf]  ;;  %v8797_v28 = vld [vmem:[%s12977_s7 + $0x55c] sm:$0xf0] }
 0x220   :  { %4627 = vmatpush.bf16.msrb.mxu3 %v7152_v63  ;;  %v7995_v63 = vld [vmem:[%s12977_s7 + $0x818] sm:$0xf]  ;;  %v8650_v10 = vld [vmem:[%s12977_s7 + $0xcc] sm:$0xf] }
 0x221   :  { %4740 = vmatpush.bf16.msra.mxu0 %v7828_v55  ;;  %4666 = vmatpush.bf16.msra.mxu2 %v7728_v4  ;;  %v8883_v55 = vld [vmem:[%s12977_s7 + $0x814] sm:$0xf]  ;;  %v7493_v4 = vld [vmem:[%s12977_s7 + $0x440] sm:$0xf0]  ;;  %v7996_v7 = vor.u32 %v8887_v18, %v7995_v63  ;;  %v8809_v63 = vld [vmem:[%s12977_s7 + $0x5bc] sm:$0xf0] }
 0x222   :  { %4705 = vmatpush.bf16.msrb.mxu1 %v7156_v25  ;;  %v7992_v19 = vor.u32 %v8883_v55, %v7989_v56  ;;  %v8877_v25 = vld [vmem:[%s12977_s7 + $0x7e4] sm:$0xf]  ;;  %v8812_v55 = vld [vmem:[%s12977_s7 + $0x5dc] sm:$0xf]  ;;  %v7709_v56 = vld [vmem:[%s12977_s7 + $0x5f0] sm:$0xf0] }
 0x223   :  { %4628 = vmatmul.bf16.vlgmr.msrb.gmra.mxu3 %v11198_v51 }
 0x224   :  { %4672 = vmatpush.bf16.msra.mxu3 %v8088_v5  ;;  %4667 = vmatmul.bf16.vlgmr.msra.gmra.mxu2 %v11200_v53  ;;  %v7420_v5 = vor.u32 %v8743_v61, %v7419_v60  ;;  %v7924_v60 = vor.u32 %v8869_v54, %v7923_v40  ;;  %v8672_v40 = vld [vmem:[%s12977_s7 + $0x174] sm:$0xf0] }
 0x225   :  { %4711 = vmatpush.bf16.msrb.mxu2 %v7516_v31  ;;  %4741 = vmatpush.bf16.msra.mxu0 %v7804_v2  ;;  %v7965_v31 = vld [vmem:[%s12977_s7 + $0x7f8] sm:$0xf0]  ;;  %v8737_v2 = vld [vmem:[%s12977_s7 + $0x37c] sm:$0xf0] }
 0x226   :  { %4750 = vmatpush.bf16.msra.mxu1 %v8092_v9  ;;  %v7496_v9 = vor.u32 %v8758_v3, %v7493_v4  ;;  %v7968_v13 = vor.u32 %v8877_v25, %v7965_v31  ;;  %v7396_v16 = vor.u32 %v8737_v2, %v7395_v8  ;;  %v8662_v3 = vld [vmem:[%s12977_s7 + $0x12c] sm:$0xf]  ;;  %v7109_v4 = vld [vmem:[%s12977_s7 + $0x140] sm:$0xf0] }
 0x227   :  { %4706 = vmatmul.bf16.vlgmr.msrb.gmra.mxu1 %v11198_v51  ;;  %v7397_v25 = vld [vmem:[%s12977_s7 + $0x380] sm:$0xf0]  ;;  %v8806_v31 = vld [vmem:[%s12977_s7 + $0x5ac] sm:$0xf] }
 0x228   :  { %4673 = vmatpush.bf16.msra.mxu3 %v8064_v42  ;;  %v8871_v42 = vld [vmem:[%s12977_s7 + $0x7b4] sm:$0xf] }
 0x229   :  { %4712 = vmatpush.bf16.msrb.mxu2 %v7492_v21  ;;  %4742 = vmatpush.bf16.msra.mxu0 %v7780_v24  ;;  %v7941_v21 = vld [vmem:[%s12977_s7 + $0x7c8] sm:$0xf0]  ;;  %v8731_v24 = vld [vmem:[%s12977_s7 + $0x34c] sm:$0xf0] }
 0x22a   :  { %4751 = vmatpush.bf16.msra.mxu1 %v8068_v26  ;;  %v7472_v26 = vor.u32 %v8752_v14, %v7469_v15  ;;  %v7944_v30 = vor.u32 %v8871_v42, %v7941_v21  ;;  %v8656_v15 = vld [vmem:[%s12977_s7 + $0xfc] sm:$0xf]  ;;  %v7373_v21 = vld [vmem:[%s12977_s7 + $0x350] sm:$0xf0] }
 0x22b   :  { %v8728_v42 = vld [vmem:[%s12977_s7 + $0x33c] sm:$0xf] }
 0x22c   :  { %4674 = vmatpush.bf16.msra.mxu3 %v8040_v1  ;;  %v7917_v1 = vld [vmem:[%s12977_s7 + $0x798] sm:$0xf0]  ;;  %v7376_v6 = vor.u32 %v8728_v42, %v7373_v21 }
 0x22d   :  { %4713 = vmatpush.bf16.msrb.mxu2 %v7468_v32  ;;  %4743 = vmatpush.bf16.msra.mxu0 %v7756_v37  ;;  %v7372_v32 = vor.u32 %v8731_v24, %v7371_v23  ;;  %v8725_v37 = vld [vmem:[%s12977_s7 + $0x31c] sm:$0xf0]  ;;  %v7920_v48 = vor.u32 %v8865_v58, %v7917_v1  ;;  %v7661_v23 = vld [vmem:[%s12977_s7 + $0x590] sm:$0xf0]  ;;  %v7660_v24 = vor.u32 %v8803_v12, %v7659_v11  ;;  %v7061_v58 = vld [vmem:[%s12977_s7 + $0xe0] sm:$0xf0] }
 0x22e   :  { %4752 = vmatpush.bf16.msra.mxu1 %v8044_v39  ;;  %v7707_v39 = vld [vmem:[%s12977_s7 + $0x5d8] sm:$0xf]  ;;  %v8722_v1 = vld [vmem:[%s12977_s7 + $0x30c] sm:$0xf]  ;;  %v8776_v21 = vld [vmem:[%s12977_s7 + $0x4bc] sm:$0xf] }
 0x22f   :  { %v7563_v12 = vld [vmem:[%s12977_s7 + $0x4b8] sm:$0xf] }
 0x230   :  { %4675 = vmatpush.bf16.msra.mxu3 %v8016_v44  ;;  %v11801_v33 = vpop.f32.mrf.mxu0  ;;  %v7133_v44 = vld [vmem:[%s12977_s7 + $0x170] sm:$0xf0] }
 0x231   :  { %4714 = vmatpush.bf16.msrb.mxu2 %v7444_v47  ;;  %4744 = vmatpush.bf16.msra.mxu0 %v7732_v20  ;;  %v7421_v47 = vld [vmem:[%s12977_s7 + $0x3b0] sm:$0xf0]  ;;  %v7348_v20 = vor.u32 %v8725_v37, %v7347_v34  ;;  %v7136_v61 = vor.u32 %v8668_v43, %v7133_v44  ;;  %v8794_v34 = vld [vmem:[%s12977_s7 + $0x54c] sm:$0xf]  ;;  %v7637_v37 = vld [vmem:[%s12977_s7 + $0x560] sm:$0xf0] }
 0x232   :  { %4753 = vmatpush.bf16.msra.mxu1 %v8020_v57  ;;  %v7708_v57 = vor.u32 %v8815_v35, %v7707_v39  ;;  %v7424_v18 = vor.u32 %v8740_v45, %v7421_v47  ;;  %v7139_v35 = vld [vmem:[%s12977_s7 + $0x160] sm:$0xf]  ;;  %v7611_v43 = vld [vmem:[%s12977_s7 + $0x518] sm:$0xf]  ;;  %v8791_v44 = vld [vmem:[%s12977_s7 + $0x52c] sm:$0xf0] }
 0x233   :  { %v8644_v47 = vld [vmem:[%s12977_s7 + $0x9c] sm:$0xf] }
 0x234   :  { %4676 = vmatpush.bf16.msra.mxu3 %v7992_v19  ;;  %4745 = vmatmul.bf16.vlgmr.msra.gmra.mxu0 %v11200_v53  ;;  %v7712_v19 = vor.u32 %v8812_v55, %v7709_v56  ;;  %v7140_v55 = vor.u32 %v8672_v40, %v7139_v35  ;;  %v8788_v56 = vld [vmem:[%s12977_s7 + $0x51c] sm:$0xf]  ;;  %v7901_v35 = vld [vmem:[%s12977_s7 + $0x770] sm:$0xf0]  ;;  %v7043_v40 = vld [vmem:[%s12977_s7 + $0xa0] sm:$0xf] }
 0x235   :  { %4789 = vmatpush.bf16.msrb.mxu0 %v7520_v62  ;;  %4715 = vmatpush.bf16.msrb.mxu2 %v7420_v5  ;;  %v7683_v62 = vld [vmem:[%s12977_s7 + $0x5a8] sm:$0xf]  ;;  %v8734_v5 = vld [vmem:[%s12977_s7 + $0x36c] sm:$0xf] }
 0x236   :  { %4754 = vmatpush.bf16.msra.mxu1 %v7996_v7  ;;  %v7685_v7 = vld [vmem:[%s12977_s7 + $0x5c0] sm:$0xf0]  ;;  %v7684_v8 = vor.u32 %v8809_v63, %v7683_v62  ;;  %v7587_v63 = vld [vmem:[%s12977_s7 + $0x4e8] sm:$0xf] }
 0x237   :  { %v7688_v14 = vor.u32 %v8806_v31, %v7685_v7  ;;  %v7589_v31 = vld [vmem:[%s12977_s7 + $0x500] sm:$0xf0] }
 0x238   :  { %4677 = vmatpush.bf16.msra.mxu3 %v7968_v13  ;;  %v2640_v2 = vpop.f32.mrf.mxu0  ;;  %v7400_v13 = vor.u32 %v8734_v5, %v7397_v25  ;;  %v8782_v25 = vld [vmem:[%s12977_s7 + $0x4ec] sm:$0xf] }
 0x239   :  { %4790 = vmatpush.bf16.msrb.mxu0 %v7496_v9  ;;  %4716 = vmatpush.bf16.msrb.mxu2 %v7396_v16  ;;  %v7112_v9 = vor.u32 %v8662_v3, %v7109_v4  ;;  %v7085_v16 = vld [vmem:[%s12977_s7 + $0x110] sm:$0xf0]  ;;  %v8638_v3 = vld [vmem:[%s12977_s7 + $0x6c] sm:$0xf]  ;;  %v7013_v4 = vld [vmem:[%s12977_s7 + $0x80] sm:$0xf0] }
 0x23a   :  { %4755 = vmatpush.bf16.msra.mxu1 %v7972_v22  ;;  %v8800_v22 = vld [vmem:[%s12977_s7 + $0x57c] sm:$0xf]  ;;  %v8660_v2 = vld [vmem:[%s12977_s7 + $0x114] sm:$0xf0]  ;;  %v7016_v11 = vor.u32 %v8638_v3, %v7013_v4  ;;  %v8714_v3 = vld [vmem:[%s12977_s7 + $0x2c4] sm:$0xf0] }
 0x23c   :  { %4678 = vmatpush.bf16.msra.mxu3 %v7944_v30  ;;  %v7664_v30 = vor.u32 %v8800_v22, %v7661_v23  ;;  %v7565_v22 = vld [vmem:[%s12977_s7 + $0x4d0] sm:$0xf0]  ;;  %v7067_v23 = vld [vmem:[%s12977_s7 + $0xd0] sm:$0xf] }
 0x23d   :  { %4791 = vmatpush.bf16.msrb.mxu0 %v7472_v26  ;;  %4717 = vmatpush.bf16.msrb.mxu2 %v7372_v32  ;;  %v7088_v26 = vor.u32 %v8656_v15, %v7085_v16  ;;  %v7349_v32 = vld [vmem:[%s12977_s7 + $0x320] sm:$0xf0]  ;;  %v8632_v15 = vld [vmem:[%s12977_s7 + $0x3c] sm:$0xf]  ;;  %v6989_v16 = vld [vmem:[%s12977_s7 + $0x50] sm:$0xf0] }
 0x23e   :  { %4756 = vmatpush.bf16.msra.mxu1 %v7948_v41  ;;  %v7636_v41 = vor.u32 %v8797_v28, %v7635_v27  ;;  %v7352_v45 = vor.u32 %v8722_v1, %v7349_v32  ;;  %v7539_v27 = vld [vmem:[%s12977_s7 + $0x488] sm:$0xf]  ;;  %v8773_v28 = vld [vmem:[%s12977_s7 + $0x49c] sm:$0xf0]  ;;  %v7568_v1 = vor.u32 %v8776_v21, %v7565_v22  ;;  %v7325_v32 = vld [vmem:[%s12977_s7 + $0x2f0] sm:$0xf0] }
 0x23f   :  { %v7253_v21 = vld [vmem:[%s12977_s7 + $0x260] sm:$0xf0] }
 0x240   :  { %4679 = vmatpush.bf16.msra.mxu3 %v7920_v48  ;;  %v2651_v39 = vpop.f32.mrf.mxu1  ;;  %v7640_v48 = vor.u32 %v8794_v34, %v7637_v37  ;;  %v8770_v34 = vld [vmem:[%s12977_s7 + $0x48c] sm:$0xf]  ;;  %v7541_v37 = vld [vmem:[%s12977_s7 + $0x4a0] sm:$0xf0] }
 0x241   :  { %4792 = vmatpush.bf16.msrb.mxu0 %v7448_v17  ;;  %4718 = vmatpush.bf16.msrb.mxu2 %v7348_v20  ;;  %v11921_v54 = vadd.f32 %v2651_v39, %v11801_v33  ;;  %v7064_v17 = vor.u32 %v8650_v10, %v7061_v58  ;;  %v7037_v33 = vld [vmem:[%s12977_s7 + $0xb0] sm:$0xf0]  ;;  %v6965_v10 = vld [vmem:[%s12977_s7 + $0x20] sm:$0xf0]  ;;  %v8716_v58 = vld [vmem:[%s12977_s7 + $0x2dc] sm:$0xf] }
 0x242   :  { %4757 = vmatpush.bf16.msra.mxu1 %v7924_v60  ;;  %v7613_v20 = vld [vmem:[%s12977_s7 + $0x530] sm:$0xf0]  ;;  %v7115_v60 = vld [vmem:[%s12977_s7 + $0x130] sm:$0xf]  ;;  %v7040_v62 = vor.u32 %v8644_v47, %v7037_v33  ;;  %v7328_v47 = vor.u32 %v8716_v58, %v7325_v32  ;;  %v7544_v33 = vor.u32 %v8770_v34, %v7541_v37  ;;  %v7907_v58 = vld [vmem:[%s12977_s7 + $0x760] sm:$0xf] }
 0x243   :  { %4680 = vmatmul.bf16.vlgmr.msra.gmra.mxu3 %v11294_v46  ;;  %v8692_v34 = vld [vmem:[%s12977_s7 + $0x21c] sm:$0xf]  ;;  %v7229_v37 = vld [vmem:[%s12977_s7 + $0x230] sm:$0xf0] }
 0x244   :  { %4724 = vmatpush.bf16.msrb.mxu3 %v7708_v57  ;;  %4719 = vmatmul.bf16.vlgmr.msrb.gmra.mxu2 %v11363_v29  ;;  %v7612_v57 = vor.u32 %v8791_v44, %v7611_v43  ;;  %v8648_v43 = vld [vmem:[%s12977_s7 + $0xb4] sm:$0xf0]  ;;  %v7331_v44 = vld [vmem:[%s12977_s7 + $0x2e0] sm:$0xf] }
 0x245   :  { %4763 = vmatpush.bf16.msra.mxu2 %v7136_v61  ;;  %4793 = vmatpush.bf16.msrb.mxu0 %v7424_v18  ;;  %v8666_v61 = vld [vmem:[%s12977_s7 + $0x144] sm:$0xf0]  ;;  %v8785_v18 = vld [vmem:[%s12977_s7 + $0x4fc] sm:$0xf0] }
 0x246   :  { %4802 = vmatpush.bf16.msrb.mxu1 %v7712_v19  ;;  %v7616_v19 = vor.u32 %v8788_v56, %v7613_v20  ;;  %v7116_v5 = vor.u32 %v8666_v61, %v7115_v60  ;;  %v7588_v7 = vor.u32 %v8785_v18, %v7587_v63  ;;  %v8710_v56 = vld [vmem:[%s12977_s7 + $0x2ac] sm:$0xf]  ;;  %v7301_v20 = vld [vmem:[%s12977_s7 + $0x2c0] sm:$0xf0]  ;;  %v7019_v63 = vld [vmem:[%s12977_s7 + $0x70] sm:$0xf] }
 0x247   :  { %4758 = vmatmul.bf16.vlgmr.msra.gmra.mxu1 %v11294_v46  ;;  %v8854_v61 = vld [vmem:[%s12977_s7 + $0x72c] sm:$0xf]  ;;  %v8642_v18 = vld [vmem:[%s12977_s7 + $0x84] sm:$0xf0]  ;;  %v7304_v4 = vor.u32 %v8710_v56, %v7301_v20  ;;  %v7205_v56 = vld [vmem:[%s12977_s7 + $0x200] sm:$0xf0] }
 0x248   :  { %4725 = vmatpush.bf16.msrb.mxu3 %v7684_v8  ;;  %v7091_v8 = vld [vmem:[%s12977_s7 + $0x100] sm:$0xf] }
 0x249   :  { %4764 = vmatpush.bf16.msra.mxu2 %v7112_v9  ;;  %4794 = vmatpush.bf16.msrb.mxu0 %v7400_v13  ;;  %v2653_v9 = vpop.f32.mrf.mxu1  ;;  %v8779_v13 = vld [vmem:[%s12977_s7 + $0x4cc] sm:$0xf0]  ;;  %v7092_v42 = vor.u32 %v8660_v2, %v7091_v8  ;;  %v8848_v2 = vld [vmem:[%s12977_s7 + $0x6fc] sm:$0xf] }
 0x24a   :  { %4803 = vmatpush.bf16.msrb.mxu1 %v7688_v14  ;;  %v7592_v14 = vor.u32 %v8782_v25, %v7589_v31  ;;  %v8704_v25 = vld [vmem:[%s12977_s7 + $0x27c] sm:$0xf]  ;;  %v7277_v31 = vld [vmem:[%s12977_s7 + $0x290] sm:$0xf0] }
 0x24b   :  { %v7853_v9 = vld [vmem:[%s12977_s7 + $0x710] sm:$0xf0] }
 0x24c   :  { %4726 = vmatpush.bf16.msrb.mxu3 %v7660_v24  ;;  %v7564_v24 = vor.u32 %v8779_v13, %v7563_v12  ;;  %v8636_v12 = vld [vmem:[%s12977_s7 + $0x54] sm:$0xf0]  ;;  %v7283_v13 = vld [vmem:[%s12977_s7 + $0x280] sm:$0xf] }
 0x24d   :  { %4765 = vmatpush.bf16.msra.mxu2 %v7088_v26  ;;  %4795 = vmatpush.bf16.msrb.mxu0 %v7376_v6  ;;  %v8654_v26 = vld [vmem:[%s12977_s7 + $0xe4] sm:$0xf0]  ;;  %v6992_v6 = vor.u32 %v8632_v15, %v6989_v16  ;;  %v7280_v15 = vor.u32 %v8704_v25, %v7277_v31  ;;  %v7856_v16 = vor.u32 %v8848_v2, %v7853_v9  ;;  %v8680_v25 = vld [vmem:[%s12977_s7 + $0x1bc] sm:$0xf]  ;;  %v7181_v31 = vld [vmem:[%s12977_s7 + $0x1d0] sm:$0xf0] }
 0x24e   :  { %4804 = vmatpush.bf16.msrb.mxu1 %v7664_v30  ;;  %v8626_v30 = vld [vmem:[%s12977_s7 + $0xc] sm:$0xf]  ;;  %v7068_v39 = vor.u32 %v8654_v26, %v7067_v23  ;;  %v7829_v26 = vld [vmem:[%s12977_s7 + $0x6e0] sm:$0xf0]  ;;  %v7757_v2 = vld [vmem:[%s12977_s7 + $0x650] sm:$0xf0] }
 0x250   :  { %4727 = vmatpush.bf16.msrb.mxu3 %v7636_v41  ;;  %v8860_v41 = vld [vmem:[%s12977_s7 + $0x75c] sm:$0xf] }
 0x251   :  { %4766 = vmatpush.bf16.msra.mxu2 %v7064_v17  ;;  %4796 = vmatpush.bf16.msrb.mxu0 %v7352_v45  ;;  %v7540_v17 = vor.u32 %v8773_v28, %v7539_v27  ;;  %v8720_v45 = vld [vmem:[%s12977_s7 + $0x2f4] sm:$0xf0]  ;;  %v6971_v27 = vld [vmem:[%s12977_s7 + $0x10] sm:$0xf]  ;;  %v8630_v28 = vld [vmem:[%s12977_s7 + $0x24] sm:$0xf0] }
 0x252   :  { %4805 = vmatpush.bf16.msrb.mxu1 %v7640_v48  ;;  %v6968_v48 = vor.u32 %v8626_v30, %v6965_v10  ;;  %v7332_v60 = vor.u32 %v8720_v45, %v7331_v44  ;;  %v8702_v30 = vld [vmem:[%s12977_s7 + $0x264] sm:$0xf0]  ;;  %v8696_v44 = vld [vmem:[%s12977_s7 + $0x234] sm:$0xf0]  ;;  %v7232_v45 = vor.u32 %v8692_v34, %v7229_v37 }
 0x253   :  { %v8840_v37 = vld [vmem:[%s12977_s7 + $0x6b4] sm:$0xf0] }
 0x254   :  { %4728 = vmatpush.bf16.msrb.mxu3 %v7612_v57  ;;  %4797 = vmatmul.bf16.vlgmr.msrb.gmra.mxu0 %v11363_v29  ;;  %v7044_v57 = vor.u32 %v8648_v43, %v7043_v40  ;;  %v7805_v40 = vld [vmem:[%s12977_s7 + $0x6b0] sm:$0xf0]  ;;  %v7235_v43 = vld [vmem:[%s12977_s7 + $0x220] sm:$0xf] }
 0x255   :  { %4841 = vmatpush.bf16.msra.mxu0 %v7140_v55  ;;  %4767 = vmatpush.bf16.msra.mxu2 %v7040_v62  ;;  %v7904_v55 = vor.u32 %v8860_v41, %v7901_v35  ;;  %v7877_v62 = vld [vmem:[%s12977_s7 + $0x740] sm:$0xf0]  ;;  %v8836_v35 = vld [vmem:[%s12977_s7 + $0x69c] sm:$0xf] }
 0x256   :  { %4806 = vmatpush.bf16.msrb.mxu1 %v7616_v19  ;;  %v7307_v19 = vld [vmem:[%s12977_s7 + $0x2b0] sm:$0xf] }
 0x257   :  { %v7308_v8 = vor.u32 %v8714_v3, %v7307_v19  ;;  %v8690_v19 = vld [vmem:[%s12977_s7 + $0x204] sm:$0xf0] }
 0x258   :  { %4729 = vmatpush.bf16.msrb.mxu3 %v7588_v7  ;;  %v7020_v7 = vor.u32 %v8642_v18, %v7019_v63  ;;  %v7211_v18 = vld [vmem:[%s12977_s7 + $0x1f0] sm:$0xf] }
 0x259   :  { %4842 = vmatpush.bf16.msra.mxu0 %v7116_v5  ;;  %4768 = vmatpush.bf16.msra.mxu2 %v7016_v11  ;;  %v7880_v5 = vor.u32 %v8854_v61, %v7877_v62  ;;  %v6995_v11 = vld [vmem:[%s12977_s7 + $0x40] sm:$0xf]  ;;  %v7781_v61 = vld [vmem:[%s12977_s7 + $0x680] sm:$0xf0] }
 0x25a   :  { %4807 = vmatpush.bf16.msrb.mxu1 %v7592_v14  ;;  %v8708_v14 = vld [vmem:[%s12977_s7 + $0x294] sm:$0xf0]  ;;  %v6996_v22 = vor.u32 %v8636_v12, %v6995_v11  ;;  %v7187_v11 = vld [vmem:[%s12977_s7 + $0x1c0] sm:$0xf] }
 0x25b   :  { %v7284_v23 = vor.u32 %v8708_v14, %v7283_v13  ;;  %v8684_v12 = vld [vmem:[%s12977_s7 + $0x1d4] sm:$0xf0]  ;;  %v7835_v13 = vld [vmem:[%s12977_s7 + $0x6d0] sm:$0xf]  ;;  %v7184_v14 = vor.u32 %v8680_v25, %v7181_v31  ;;  %v7475_v25 = vld [vmem:[%s12977_s7 + $0x400] sm:$0xf] }
 0x25c   :  { %4730 = vmatpush.bf16.msrb.mxu3 %v7564_v24  ;;  %v8842_v24 = vld [vmem:[%s12977_s7 + $0x6cc] sm:$0xf]  ;;  %v8756_v31 = vld [vmem:[%s12977_s7 + $0x414] sm:$0xf0] }
 0x25d   :  { %4843 = vmatpush.bf16.msra.mxu0 %v7092_v42  ;;  %4769 = vmatpush.bf16.msra.mxu2 %v6992_v6  ;;  %v8698_v42 = vld [vmem:[%s12977_s7 + $0x24c] sm:$0xf]  ;;  %v7259_v6 = vld [vmem:[%s12977_s7 + $0x250] sm:$0xf]  ;;  %v7832_v32 = vor.u32 %v8842_v24, %v7829_v26  ;;  %v8908_v24 = vld [vmem:[%s12977_s7 + $0x8dc] sm:$0xf]  ;;  %v7188_v26 = vor.u32 %v8684_v12, %v7187_v11 }
 0x25e   :  { %4808 = vmatpush.bf16.msrb.mxu1 %v7568_v1  ;;  %v7256_v10 = vor.u32 %v8698_v42, %v7253_v21  ;;  %v8864_v1 = vld [vmem:[%s12977_s7 + $0x774] sm:$0xf0]  ;;  %v7260_v41 = vor.u32 %v8702_v30, %v7259_v6  ;;  %v7157_v42 = vld [vmem:[%s12977_s7 + $0x1a0] sm:$0xf0]  ;;  %v7163_v6 = vld [vmem:[%s12977_s7 + $0x190] sm:$0xf] }
 0x25f   :  { %v8678_v30 = vld [vmem:[%s12977_s7 + $0x1a4] sm:$0xf0]  ;;  %v8900_v11 = vld [vmem:[%s12977_s7 + $0x894] sm:$0xf0] }
 0x260   :  { %4731 = vmatpush.bf16.msrb.mxu3 %v7540_v17  ;;  %v7908_v17 = vor.u32 %v8864_v1, %v7907_v58  ;;  %v7523_v58 = vld [vmem:[%s12977_s7 + $0x460] sm:$0xf]  ;;  %v8768_v1 = vld [vmem:[%s12977_s7 + $0x474] sm:$0xf0] }
 0x261   :  { %4844 = vmatpush.bf16.msra.mxu0 %v7068_v39  ;;  %4770 = vmatpush.bf16.msra.mxu2 %v6968_v48  ;;  %v6972_v39 = vor.u32 %v8630_v28, %v6971_v27  ;;  %v7883_v48 = vld [vmem:[%s12977_s7 + $0x730] sm:$0xf]  ;;  %v8093_v28 = vld [vmem:[%s12977_s7 + $0x8f0] sm:$0xf0] }
 0x262   :  { %4809 = vmatpush.bf16.msrb.mxu1 %v7544_v33  ;;  %v7808_v33 = vor.u32 %v8836_v35, %v7805_v40  ;;  %v12237_v35 = vpop.f32.mrf.mxu0 }
 0x263   :  { %4732 = vmatmul.bf16.vlgmr.msrb.gmra.mxu3 %v11476_v36 }
 0x264   :  { %4776 = vmatpush.bf16.msra.mxu3 %v7328_v47  ;;  %4771 = vmatmul.bf16.vlgmr.msra.gmra.mxu2 %v11106_v0  ;;  %v8858_v47 = vld [vmem:[%s12977_s7 + $0x744] sm:$0xf0] }
 0x265   :  { %4815 = vmatpush.bf16.msrb.mxu2 %v7904_v55  ;;  %4845 = vmatpush.bf16.msra.mxu0 %v7044_v57  ;;  %v8686_v55 = vld [vmem:[%s12977_s7 + $0x1ec] sm:$0xf]  ;;  %v7236_v57 = vor.u32 %v8696_v44, %v7235_v43  ;;  %v7884_v63 = vor.u32 %v8858_v47, %v7883_v48  ;;  %v7164_v43 = vor.u32 %v8678_v30, %v7163_v6  ;;  %v8069_v48 = vld [vmem:[%s12977_s7 + $0x8c0] sm:$0xf0]  ;;  %v8894_v6 = vld [vmem:[%s12977_s7 + $0x864] sm:$0xf0] }
 0x266   :  { %4854 = vmatpush.bf16.msra.mxu1 %v7332_v60  ;;  %v2664_v20 = vpop.f32.mrf.mxu2  ;;  %v8830_v60 = vld [vmem:[%s12977_s7 + $0x66c] sm:$0xf]  ;;  %v7208_v3 = vor.u32 %v8686_v55, %v7205_v56  ;;  %v7524_v44 = vor.u32 %v8768_v1, %v7523_v58  ;;  %v7499_v55 = vld [vmem:[%s12977_s7 + $0x430] sm:$0xf]  ;;  %v8762_v56 = vld [vmem:[%s12977_s7 + $0x444] sm:$0xf0] }
 0x267   :  { %4810 = vmatmul.bf16.vlgmr.msrb.gmra.mxu1 %v11476_v36  ;;  %v12156_v62 = vadd.f32 %v2664_v20, %v11921_v54  ;;  %v8852_v54 = vld [vmem:[%s12977_s7 + $0x714] sm:$0xf0]  ;;  %v7787_v20 = vld [vmem:[%s12977_s7 + $0x670] sm:$0xf]  ;;  %v7525_v58 = vld [vmem:[%s12977_s7 + $0x478] sm:$0xf0] }
 0x268   :  { %4777 = vmatpush.bf16.msra.mxu3 %v7304_v4  ;;  %v7859_v4 = vld [vmem:[%s12977_s7 + $0x700] sm:$0xf] }
 0x269   :  { %4816 = vmatpush.bf16.msrb.mxu2 %v7880_v5  ;;  %4846 = vmatpush.bf16.msra.mxu0 %v7020_v7  ;;  %v7784_v5 = vor.u32 %v8830_v60, %v7781_v61  ;;  %v7212_v7 = vor.u32 %v8690_v19, %v7211_v18  ;;  %v7860_v9 = vor.u32 %v8852_v54, %v7859_v4  ;;  %v8834_v60 = vld [vmem:[%s12977_s7 + $0x684] sm:$0xf0]  ;;  %v8075_v61 = vld [vmem:[%s12977_s7 + $0x8b0] sm:$0xf]  ;;  %v8045_v4 = vld [vmem:[%s12977_s7 + $0x890] sm:$0xf0] }
 0x26a   :  { %4855 = vmatpush.bf16.msra.mxu1 %v7308_v8  ;;  %v8824_v8 = vld [vmem:[%s12977_s7 + $0x63c] sm:$0xf]  ;;  %v7500_v19 = vor.u32 %v8762_v56, %v7499_v55  ;;  %v7788_v54 = vor.u32 %v8834_v60, %v7787_v20  ;;  %v4540_v12 = vpop.f32.mrf.mxu0  ;;  %v8878_v20 = vld [vmem:[%s12977_s7 + $0x7ec] sm:$0xf]  ;;  %v7973_v60 = vld [vmem:[%s12977_s7 + $0x800] sm:$0xf0] }
 0x26b   :  { %v7760_v21 = vor.u32 %v8824_v8, %v7757_v2  ;;  %v8828_v2 = vld [vmem:[%s12977_s7 + $0x654] sm:$0xf0] }
 0x26c   :  { %4778 = vmatpush.bf16.msra.mxu3 %v7280_v15  ;;  %v8846_v15 = vld [vmem:[%s12977_s7 + $0x6e4] sm:$0xf0] }
 0x26d   :  { %4817 = vmatpush.bf16.msrb.mxu2 %v7856_v16  ;;  %4847 = vmatpush.bf16.msra.mxu0 %v6996_v22  ;;  %v8674_v16 = vld [vmem:[%s12977_s7 + $0x18c] sm:$0xf] }
 0x26e   :  { %4856 = vmatpush.bf16.msra.mxu1 %v7284_v23  ;;  %v8818_v22 = vld [vmem:[%s12977_s7 + $0x60c] sm:$0xf]  ;;  %v7733_v23 = vld [vmem:[%s12977_s7 + $0x620] sm:$0xf0]  ;;  %v2666_v27 = vpop.f32.mrf.mxu2  ;;  %v7160_v34 = vor.u32 %v8674_v16, %v7157_v42 }
 0x26f   :  { %v7736_v40 = vor.u32 %v8818_v22, %v7733_v23  ;;  %v8021_v16 = vld [vmem:[%s12977_s7 + $0x860] sm:$0xf0]  ;;  %v7451_v22 = vld [vmem:[%s12977_s7 + $0x3d0] sm:$0xf]  ;;  %v8750_v23 = vld [vmem:[%s12977_s7 + $0x3e4] sm:$0xf0] }
 0x270   :  { %4779 = vmatpush.bf16.msra.mxu3 %v7256_v10  ;;  %v7836_v10 = vor.u32 %v8846_v15, %v7835_v13  ;;  %v8890_v15 = vld [vmem:[%s12977_s7 + $0x84c] sm:$0xf]  ;;  %v8822_v27 = vld [vmem:[%s12977_s7 + $0x624] sm:$0xf0]  ;;  %v7452_v1 = vor.u32 %v8750_v23, %v7451_v22 }
 0x271   :  { %4818 = vmatpush.bf16.msrb.mxu2 %v7832_v32  ;;  %4848 = vmatpush.bf16.msra.mxu0 %v6972_v39  ;;  %v7811_v32 = vld [vmem:[%s12977_s7 + $0x6a0] sm:$0xf]  ;;  %v8024_v30 = vor.u32 %v8890_v15, %v8021_v16  ;;  %v7453_v23 = vld [vmem:[%s12977_s7 + $0x3e8] sm:$0xf0] }
 0x272   :  { %4857 = vmatpush.bf16.msra.mxu1 %v7260_v41  ;;  %v8099_v39 = vld [vmem:[%s12977_s7 + $0x8e0] sm:$0xf]  ;;  %v8912_v41 = vld [vmem:[%s12977_s7 + $0x8f4] sm:$0xf0]  ;;  %v7812_v47 = vor.u32 %v8840_v37, %v7811_v32  ;;  %v8884_v32 = vld [vmem:[%s12977_s7 + $0x81c] sm:$0xf]  ;;  %v12348_v55 = vpop.f32.mrf.mxu0 }
 0x273   :  { %v7955_v16 = vld [vmem:[%s12977_s7 + $0x7c0] sm:$0xf] }
 0x274   :  { %4780 = vmatpush.bf16.msra.mxu3 %v7232_v45  ;;  %4849 = vmatmul.bf16.vlgmr.msra.gmra.mxu0 %v11106_v0  ;;  %v8902_v45 = vld [vmem:[%s12977_s7 + $0x8ac] sm:$0xf] }
 0x275   :  { %4893 = vmatpush.bf16.msrb.mxu0 %v7908_v17  ;;  %4819 = vmatpush.bf16.msrb.mxu2 %v7808_v33  ;;  %v8096_v17 = vor.u32 %v8908_v24, %v8093_v28  ;;  %v8100_v33 = vor.u32 %v8912_v41, %v8099_v39  ;;  %v8072_v18 = vor.u32 %v8902_v45, %v8069_v48  ;;  %v7739_v24 = vld [vmem:[%s12977_s7 + $0x610] sm:$0xf]  ;;  %v7427_v41 = vld [vmem:[%s12977_s7 + $0x3a0] sm:$0xf]  ;;  %v8888_v45 = vld [vmem:[%s12977_s7 + $0x834] sm:$0xf0] }
 0x276   :  { %4858 = vmatpush.bf16.msra.mxu1 %v7236_v57  ;;  %v12254_v57 = vpop.f32.mrf.mxu1  ;;  %v12280_v8 = vpop.f32.mrf.mxu2  ;;  %v8027_v28 = vld [vmem:[%s12977_s7 + $0x850] sm:$0xf]  ;;  %v7740_v37 = vor.u32 %v8822_v27, %v7739_v24  ;;  %v8866_v24 = vld [vmem:[%s12977_s7 + $0x78c] sm:$0xf] }
 0x277   :  { %v8028_v39 = vor.u32 %v8894_v6, %v8027_v28  ;;  %v7355_v6 = vld [vmem:[%s12977_s7 + $0x310] sm:$0xf] }
 0x278   :  { %4781 = vmatpush.bf16.msra.mxu3 %v7208_v3  ;;  %v8896_v3 = vld [vmem:[%s12977_s7 + $0x87c] sm:$0xf] }
 0x279   :  { %4894 = vmatpush.bf16.msrb.mxu0 %v7884_v63  ;;  %4820 = vmatpush.bf16.msrb.mxu2 %v7784_v5  ;;  %v8906_v63 = vld [vmem:[%s12977_s7 + $0x8c4] sm:$0xf0]  ;;  %v8048_v13 = vor.u32 %v8896_v3, %v8045_v4 }
 0x27a   :  { %4859 = vmatpush.bf16.msra.mxu1 %v7212_v7  ;;  %v8076_v5 = vor.u32 %v8906_v63, %v8075_v61  ;;  %v7763_v7 = vld [vmem:[%s12977_s7 + $0x640] sm:$0xf]  ;;  %v4592_v27 = vpop.f32.mrf.mxu0 }
 0x27b   :  { %v7764_v42 = vor.u32 %v8828_v2, %v7763_v7  ;;  %v8753_v7 = vld [vmem:[%s12977_s7 + $0x404] sm:$0xf] }
 0x27c   :  { %4782 = vmatpush.bf16.msra.mxu3 %v7184_v14  ;;  %v7476_v14 = vor.u32 %v8756_v31, %v7475_v25  ;;  %v8882_v25 = vld [vmem:[%s12977_s7 + $0x804] sm:$0xf0]  ;;  %v7976_v31 = vor.u32 %v8878_v20, %v7973_v60 }
 0x27d   :  { %4895 = vmatpush.bf16.msrb.mxu0 %v7860_v9  ;;  %4821 = vmatpush.bf16.msrb.mxu2 %v7760_v21  ;;  %v8051_v9 = vld [vmem:[%s12977_s7 + $0x880] sm:$0xf] }
 0x27e   :  { %4860 = vmatpush.bf16.msra.mxu1 %v7188_v26  ;;  %v8052_v21 = vor.u32 %v8900_v11, %v8051_v9  ;;  %v4553_v26 = vpop.f32.mrf.mxu1  ;;  %v8872_v9 = vld [vmem:[%s12977_s7 + $0x7bc] sm:$0xf]  ;;  %v7949_v11 = vld [vmem:[%s12977_s7 + $0x7d0] sm:$0xf0] }
 0x27f   :  { %v7952_v22 = vor.u32 %v8872_v9, %v7949_v11  ;;  %v7925_v26 = vld [vmem:[%s12977_s7 + $0x7a0] sm:$0xf0] }
 0x280   :  { %4783 = vmatpush.bf16.msra.mxu3 %v7160_v34  ;;  %v7997_v34 = vld [vmem:[%s12977_s7 + $0x830] sm:$0xf0] }
 0x281   :  { %4896 = vmatpush.bf16.msrb.mxu0 %v7836_v10  ;;  %4822 = vmatpush.bf16.msrb.mxu2 %v7736_v40  ;;  %v8765_v10 = vld [vmem:[%s12977_s7 + $0x464] sm:$0xf]  ;;  %v8744_v40 = vld [vmem:[%s12977_s7 + $0x3b4] sm:$0xf0]  ;;  %v8000_v48 = vor.u32 %v8884_v32, %v7997_v34  ;;  %v7931_v34 = vld [vmem:[%s12977_s7 + $0x790] sm:$0xf] }
 0x282   :  { %4861 = vmatpush.bf16.msra.mxu1 %v7164_v43  ;;  %v7528_v43 = vor.u32 %v8765_v10, %v7525_v58  ;;  %v7428_v56 = vor.u32 %v8744_v40, %v7427_v41  ;;  %v7715_v10 = vld [vmem:[%s12977_s7 + $0x5e0] sm:$0xf]  ;;  %v8816_v32 = vld [vmem:[%s12977_s7 + $0x5f4] sm:$0xf0]  ;;  %v8669_v40 = vld [vmem:[%s12977_s7 + $0x164] sm:$0xf] }
 0x283   :  { %4784 = vmatmul.bf16.vlgmr.msra.gmra.mxu3 %v11198_v51 }
 0x284   :  { %4828 = vmatpush.bf16.msrb.mxu3 %v8096_v17  ;;  %4823 = vmatmul.bf16.vlgmr.msrb.gmra.mxu2 %v11200_v53  ;;  %v4566_v17 = vpop.f32.mrf.mxu2 }
 0x285   :  { %4867 = vmatpush.bf16.msra.mxu2 %v7524_v44  ;;  %4897 = vmatpush.bf16.msrb.mxu0 %v7812_v47  ;;  %v8003_v44 = vld [vmem:[%s12977_s7 + $0x820] sm:$0xf]  ;;  %v8759_v47 = vld [vmem:[%s12977_s7 + $0x434] sm:$0xf]  ;;  %v7141_v17 = vld [vmem:[%s12977_s7 + $0x178] sm:$0xf0] }
 0x286   :  { %4906 = vmatpush.bf16.msrb.mxu1 %v8100_v33  ;;  %v7501_v33 = vld [vmem:[%s12977_s7 + $0x448] sm:$0xf0]  ;;  %v2677_v61 = vpop.f32.mrf.mxu3  ;;  %v8004_v63 = vor.u32 %v8888_v45, %v8003_v44  ;;  %v12362_v3 = vpop.f32.mrf.mxu1  ;;  %v7928_v44 = vor.u32 %v8866_v24, %v7925_v26  ;;  %v7429_v45 = vld [vmem:[%s12977_s7 + $0x3b8] sm:$0xf0]  ;;  %v7144_v60 = vor.u32 %v8669_v40, %v7141_v17  ;;  %v8801_v24 = vld [vmem:[%s12977_s7 + $0x584] sm:$0xf] }
 0x287   :  { %4862 = vmatmul.bf16.vlgmr.msra.gmra.mxu1 %v11198_v51  ;;  %v12365_v4 = vadd.f32 %v2677_v61, %v12156_v62  ;;  %v7477_v62 = vld [vmem:[%s12977_s7 + $0x418] sm:$0xf0]  ;;  %v7691_v61 = vld [vmem:[%s12977_s7 + $0x5b0] sm:$0xf] }
 0x288   :  { %4829 = vmatpush.bf16.msrb.mxu3 %v8072_v18  ;;  %v7403_v18 = vld [vmem:[%s12977_s7 + $0x370] sm:$0xf]  ;;  %v7480_v15 = vor.u32 %v8753_v7, %v7477_v62  ;;  %v8807_v7 = vld [vmem:[%s12977_s7 + $0x5b4] sm:$0xf]  ;;  %v7693_v62 = vld [vmem:[%s12977_s7 + $0x5c8] sm:$0xf0] }
 0x289   :  { %4868 = vmatpush.bf16.msra.mxu2 %v7500_v19  ;;  %4898 = vmatpush.bf16.msrb.mxu0 %v7788_v54  ;;  %v8738_v19 = vld [vmem:[%s12977_s7 + $0x384] sm:$0xf0]  ;;  %v7504_v54 = vor.u32 %v8759_v47, %v7501_v33  ;;  %v7717_v47 = vld [vmem:[%s12977_s7 + $0x5f8] sm:$0xf0] }
 0x28a   :  { %4907 = vmatpush.bf16.msrb.mxu1 %v8076_v5  ;;  %v7979_v5 = vld [vmem:[%s12977_s7 + $0x7f0] sm:$0xf]  ;;  %v7404_v2 = vor.u32 %v8738_v19, %v7403_v18  ;;  %v7669_v26 = vld [vmem:[%s12977_s7 + $0x598] sm:$0xf0] }
 0x28b   :  { %v7980_v12 = vor.u32 %v8882_v25, %v7979_v5  ;;  %v7117_v5 = vld [vmem:[%s12977_s7 + $0x148] sm:$0xf0]  ;;  %v8735_v25 = vld [vmem:[%s12977_s7 + $0x374] sm:$0xf] }
 0x28c   :  { %4830 = vmatpush.bf16.msrb.mxu3 %v8048_v13  ;;  %v7379_v13 = vld [vmem:[%s12977_s7 + $0x340] sm:$0xf]  ;;  %v12470_v9 = vpop.f32.mrf.mxu2 }
 0x28d   :  { %4869 = vmatpush.bf16.msra.mxu2 %v7476_v14  ;;  %4899 = vmatpush.bf16.msrb.mxu0 %v7764_v42  ;;  %v8732_v14 = vld [vmem:[%s12977_s7 + $0x354] sm:$0xf0] }
 0x28e   :  { %4908 = vmatpush.bf16.msrb.mxu1 %v8052_v21  ;;  %v8876_v42 = vld [vmem:[%s12977_s7 + $0x7d4] sm:$0xf0]  ;;  %v8747_v21 = vld [vmem:[%s12977_s7 + $0x3d4] sm:$0xf]  ;;  %v7380_v28 = vor.u32 %v8732_v14, %v7379_v13  ;;  %v2679_v58 = vpop.f32.mrf.mxu3  ;;  %v7667_v13 = vld [vmem:[%s12977_s7 + $0x580] sm:$0xf] }
 0x28f   :  { %v7456_v41 = vor.u32 %v8747_v21, %v7453_v23  ;;  %v8804_v14 = vld [vmem:[%s12977_s7 + $0x594] sm:$0xf0]  ;;  %v7093_v21 = vld [vmem:[%s12977_s7 + $0x118] sm:$0xf0]  ;;  %v7672_v58 = vor.u32 %v8801_v24, %v7669_v26 }
 0x290   :  { %4831 = vmatpush.bf16.msrb.mxu3 %v8024_v30  ;;  %v8726_v30 = vld [vmem:[%s12977_s7 + $0x324] sm:$0xf0]  ;;  %v7381_v23 = vld [vmem:[%s12977_s7 + $0x358] sm:$0xf0]  ;;  %v7668_v27 = vor.u32 %v8804_v14, %v7667_v13  ;;  %v8783_v13 = vld [vmem:[%s12977_s7 + $0x4f4] sm:$0xf] }
 0x291   :  { %4870 = vmatpush.bf16.msra.mxu2 %v7452_v1  ;;  %4900 = vmatpush.bf16.msrb.mxu0 %v7740_v37  ;;  %v7956_v1 = vor.u32 %v8876_v42, %v7955_v16  ;;  %v8870_v37 = vld [vmem:[%s12977_s7 + $0x7a4] sm:$0xf0]  ;;  %v7356_v33 = vor.u32 %v8726_v30, %v7355_v6  ;;  %v7696_v16 = vor.u32 %v8807_v7, %v7693_v62  ;;  %v8657_v42 = vld [vmem:[%s12977_s7 + $0x104] sm:$0xf]  ;;  %v7643_v6 = vld [vmem:[%s12977_s7 + $0x550] sm:$0xf] }
 0x292   :  { %4909 = vmatpush.bf16.msrb.mxu1 %v8028_v39  ;;  %v4605_v39 = vpop.f32.mrf.mxu1  ;;  %v7932_v20 = vor.u32 %v8870_v37, %v7931_v34  ;;  %v8798_v30 = vld [vmem:[%s12977_s7 + $0x564] sm:$0xf0]  ;;  %v8723_v34 = vld [vmem:[%s12977_s7 + $0x314] sm:$0xf]  ;;  %v7357_v37 = vld [vmem:[%s12977_s7 + $0x328] sm:$0xf0] }
 0x293   :  { %v8795_v39 = vld [vmem:[%s12977_s7 + $0x554] sm:$0xf]  ;;  %v7644_v40 = vor.u32 %v8798_v30, %v7643_v6  ;;  %v7021_v62 = vld [vmem:[%s12977_s7 + $0x88] sm:$0xf0]  ;;  %v6997_v24 = vld [vmem:[%s12977_s7 + $0x58] sm:$0xf0] }
 0x294   :  { %4832 = vmatpush.bf16.msrb.mxu3 %v8000_v48  ;;  %4901 = vmatmul.bf16.vlgmr.msrb.gmra.mxu0 %v11200_v53  ;;  %v8813_v48 = vld [vmem:[%s12977_s7 + $0x5e4] sm:$0xf]  ;;  %v4618_v17 = vpop.f32.mrf.mxu2  ;;  %v8639_v7 = vld [vmem:[%s12977_s7 + $0x74] sm:$0xf]  ;;  %v7597_v14 = vld [vmem:[%s12977_s7 + $0x508] sm:$0xf0] }
 0x295   :  { %4945 = vmatpush.bf16.msra.mxu0 %v7528_v43  ;;  %4871 = vmatpush.bf16.msra.mxu2 %v7428_v56  ;;  %v8741_v43 = vld [vmem:[%s12977_s7 + $0x3a4] sm:$0xf]  ;;  %v7716_v56 = vor.u32 %v8816_v32, %v7715_v10  ;;  %v7720_v19 = vor.u32 %v8813_v48, %v7717_v47  ;;  %v7069_v32 = vld [vmem:[%s12977_s7 + $0xe8] sm:$0xf0]  ;;  %v8792_v48 = vld [vmem:[%s12977_s7 + $0x534] sm:$0xf0]  ;;  %v7360_v47 = vor.u32 %v8723_v34, %v7357_v37 }
 0x296   :  { %4910 = vmatpush.bf16.msrb.mxu1 %v8004_v63  ;;  %v8810_v63 = vld [vmem:[%s12977_s7 + $0x5c4] sm:$0xf0]  ;;  %v7432_v18 = vor.u32 %v8741_v43, %v7429_v45  ;;  %v7619_v45 = vld [vmem:[%s12977_s7 + $0x520] sm:$0xf]  ;;  %v7573_v6 = vld [vmem:[%s12977_s7 + $0x4d8] sm:$0xf0] }
 0x297   :  { %v8917_v34 = vld [vmem:[%s12978_s8 + $0x20] sm:$0xff]  ;;  %v8774_v37 = vld [vmem:[%s12977_s7 + $0x4a4] sm:$0xf0]  ;;  %v8771_v17 = vld [vmem:[%s12977_s7 + $0x494] sm:$0xf] }
 0x298   :  { %4833 = vmatpush.bf16.msrb.mxu3 %v7976_v31  ;;  %v7405_v31 = vld [vmem:[%s12977_s7 + $0x388] sm:$0xf0] }
 0x299   :  { %4946 = vmatpush.bf16.msra.mxu0 %v7504_v54  ;;  %4872 = vmatpush.bf16.msra.mxu2 %v7404_v2  ;;  %v8663_v54 = vld [vmem:[%s12977_s7 + $0x134] sm:$0xf]  ;;  %v7692_v2 = vor.u32 %v8810_v63, %v7691_v61  ;;  %v8789_v61 = vld [vmem:[%s12977_s7 + $0x524] sm:$0xf]  ;;  %v7621_v63 = vld [vmem:[%s12977_s7 + $0x538] sm:$0xf0] }
 0x29a   :  { %4911 = vmatpush.bf16.msrb.mxu1 %v7980_v12  ;;  %v7120_v11 = vor.u32 %v8663_v54, %v7117_v5  ;;  %v12472_v12 = vpop.f32.mrf.mxu3  ;;  %v7595_v5 = vld [vmem:[%s12977_s7 + $0x4f0] sm:$0xf] }
 0x29c   :  { %4834 = vmatpush.bf16.msrb.mxu3 %v7952_v22  ;;  %v8729_v22 = vld [vmem:[%s12977_s7 + $0x344] sm:$0xf] }
 0x29d   :  { %4947 = vmatpush.bf16.msra.mxu0 %v7480_v15  ;;  %4873 = vmatpush.bf16.msra.mxu2 %v7380_v28  ;;  %v7408_v15 = vor.u32 %v8735_v25, %v7405_v31  ;;  %v7096_v28 = vor.u32 %v8657_v42, %v7093_v21  ;;  %v7384_v10 = vor.u32 %v8729_v22, %v7381_v23  ;;  %v8786_v25 = vld [vmem:[%s12977_s7 + $0x504] sm:$0xf0]  ;;  %v7571_v42 = vld [vmem:[%s12977_s7 + $0x4c0] sm:$0xf]  ;;  %v8780_v21 = vld [vmem:[%s12977_s7 + $0x4d4] sm:$0xf0] }
 0x29e   :  { %4912 = vmatpush.bf16.msrb.mxu1 %v7956_v1  ;;  %v8651_v1 = vld [vmem:[%s12977_s7 + $0xd4] sm:$0xf]  ;;  %v7624_v31 = vor.u32 %v8789_v61, %v7621_v63  ;;  %v7600_v22 = vor.u32 %v8783_v13, %v7597_v14  ;;  %v8633_v23 = vld [vmem:[%s12977_s7 + $0x44] sm:$0xf]  ;;  %v8916_v63 = vld [vmem:[%s12978_s8 + $0x18] sm:$0xff] }
 0x29f   :  { %v7072_v43 = vor.u32 %v8651_v1, %v7069_v32  ;;  %v7547_v1 = vld [vmem:[%s12977_s7 + $0x490] sm:$0xf]  ;;  %v7000_v32 = vor.u32 %v8633_v23, %v6997_v24 }
 0x2a0   :  { %4835 = vmatpush.bf16.msrb.mxu3 %v7928_v44  ;;  %v8915_v14 = vld [vmem:[%s12978_s8 + $0x10] sm:$0xff] }
 0x2a1   :  { %4948 = vmatpush.bf16.msra.mxu0 %v7456_v41  ;;  %4874 = vmatpush.bf16.msra.mxu2 %v7356_v33  ;;  %v7645_v41 = vld [vmem:[%s12977_s7 + $0x568] sm:$0xf0] }
 0x2a2   :  { %4913 = vmatpush.bf16.msrb.mxu1 %v7932_v20  ;;  %v4579_v44 = vpop.f32.mrf.mxu3  ;;  %v7648_v33 = vor.u32 %v8795_v39, %v7645_v41  ;;  %v7045_v20 = vld [vmem:[%s12977_s7 + $0xb8] sm:$0xf0]  ;;  %v8717_v41 = vld [vmem:[%s12977_s7 + $0x2e4] sm:$0xf] }
 0x2a3   :  { %4836 = vmatmul.bf16.vlgmr.msrb.gmra.mxu3 %v11294_v46  ;;  %v7549_v44 = vld [vmem:[%s12977_s7 + $0x4a8] sm:$0xf0] }
 0x2a4   :  { %4880 = vmatpush.bf16.msra.mxu3 %v7716_v56  ;;  %4875 = vmatmul.bf16.vlgmr.msra.gmra.mxu2 %v11363_v29  ;;  %v8645_v56 = vld [vmem:[%s12977_s7 + $0xa4] sm:$0xf] }
 0x2a5   :  { %4919 = vmatpush.bf16.msrb.mxu2 %v7144_v60  ;;  %4949 = vmatpush.bf16.msra.mxu0 %v7432_v18  ;;  %v8920_v60 = vld [vmem:[%s12978_s8 + $0x38] sm:$0xff]  ;;  %v12546_v18 = vpop.f32.mrf.mxu0  ;;  %v7048_v54 = vor.u32 %v8645_v56, %v7045_v20 }
 0x2a6   :  { %4958 = vmatpush.bf16.msra.mxu1 %v7720_v19  ;;  %v7620_v19 = vor.u32 %v8792_v48, %v7619_v45  ;;  %v8861_v45 = vld [vmem:[%s12977_s7 + $0x764] sm:$0xf]  ;;  %v7909_v48 = vld [vmem:[%s12977_s7 + $0x778] sm:$0xf0] }
 0x2a7   :  { %4914 = vmatmul.bf16.vlgmr.msrb.gmra.mxu1 %v11294_v46  ;;  %v7912_v61 = vor.u32 %v8861_v45, %v7909_v48  ;;  %v8687_v45 = vld [vmem:[%s12977_s7 + $0x1f4] sm:$0xf]  ;;  %v7213_v48 = vld [vmem:[%s12977_s7 + $0x208] sm:$0xf0] }
 0x2a8   :  { %4881 = vmatpush.bf16.msra.mxu3 %v7692_v2  ;;  %v12560_v2 = vpop.f32.mrf.mxu1 }
 0x2a9   :  { %4920 = vmatpush.bf16.msrb.mxu2 %v7120_v11  ;;  %4950 = vmatpush.bf16.msra.mxu0 %v7408_v15  ;;  %v8919_v11 = vld [vmem:[%s12978_s8 + $0x30] sm:$0xff]  ;;  %v7596_v15 = vor.u32 %v8786_v25, %v7595_v5  ;;  %v8928_v25 = vld [vmem:[%s12978_s8 + $0x78] sm:$0xff] }
 0x2aa   :  { %4959 = vmatpush.bf16.msra.mxu1 %v7696_v16  ;;  %v7024_v16 = vor.u32 %v8639_v7, %v7021_v62  ;;  %v12584_v26 = vpop.f32.mrf.mxu3  ;;  %v7885_v7 = vld [vmem:[%s12977_s7 + $0x748] sm:$0xf0] }
 0x2ac   :  { %4882 = vmatpush.bf16.msra.mxu3 %v7668_v27  ;;  %v12586_v27 = vpop.f32.mrf.mxu2 }
 0x2ad   :  { %4921 = vmatpush.bf16.msrb.mxu2 %v7096_v28  ;;  %4951 = vmatpush.bf16.msra.mxu0 %v7384_v10  ;;  %v8918_v28 = vld [vmem:[%s12978_s8 + $0x28] sm:$0xff]  ;;  %v4644_v30 = vpop.f32.mrf.mxu0  ;;  %v4552_v10 = vadd.f32 %v12254_v57, %v12237_v35  ;;  %v8627_v35 = vld [vmem:[%s12977_s7 + $0x14] sm:$0xf] }
 0x2ae   :  { %4960 = vmatpush.bf16.msra.mxu1 %v7672_v58  ;;  %v7572_v58 = vor.u32 %v8780_v21, %v7571_v42  ;;  %v6973_v57 = vld [vmem:[%s12977_s7 + $0x28] sm:$0xf0]  ;;  %v8849_v42 = vld [vmem:[%s12977_s7 + $0x704] sm:$0xf]  ;;  %v7861_v21 = vld [vmem:[%s12977_s7 + $0x718] sm:$0xf0] }
 0x2af   :  { %v6976_v56 = vor.u32 %v8627_v35, %v6973_v57  ;;  %v8699_v30 = vld [vmem:[%s12977_s7 + $0x254] sm:$0xf]  ;;  %v8693_v35 = vld [vmem:[%s12977_s7 + $0x224] sm:$0xf]  ;;  %v7237_v57 = vld [vmem:[%s12977_s7 + $0x238] sm:$0xf0] }
 0x2b0   :  { %4883 = vmatpush.bf16.msra.mxu3 %v7644_v40  ;;  %v7333_v40 = vld [vmem:[%s12977_s7 + $0x2f8] sm:$0xf0] }
 0x2b1   :  { %4922 = vmatpush.bf16.msrb.mxu2 %v7072_v43  ;;  %4952 = vmatpush.bf16.msra.mxu0 %v7360_v47  ;;  %v4657_v43 = vpop.f32.mrf.mxu1  ;;  %v4565_v47 = vadd.f32 %v12280_v8, %v4552_v10  ;;  %v7336_v20 = vor.u32 %v8717_v41, %v7333_v40  ;;  %v7309_v8 = vld [vmem:[%s12977_s7 + $0x2c8] sm:$0xf0] }
 0x2b2   :  { %4961 = vmatpush.bf16.msra.mxu1 %v7648_v33  ;;  %v7548_v33 = vor.u32 %v8774_v37, %v7547_v1  ;;  %v7837_v10 = vld [vmem:[%s12977_s7 + $0x6e8] sm:$0xf0]  ;;  %v4630_v1 = vadd.f32 %v12584_v26, %v12470_v9  ;;  %v8913_v37 = vld [vmem:[%s12978_s8] sm:$0xff]  ;;  %v7813_v26 = vld [vmem:[%s12977_s7 + $0x6b8] sm:$0xf0]  ;;  %v7240_v43 = vor.u32 %v8693_v35, %v7237_v57 }
 0x2b3   :  { %v4578_v62 = vadd.f32 %v12472_v12, %v4565_v47  ;;  %v8927_v12 = vld [vmem:[%s12978_s8 + $0x70] sm:$0xff]  ;;  %v8837_v9 = vld [vmem:[%s12977_s7 + $0x6a4] sm:$0xf]  ;;  %v8924_v47 = vld [vmem:[%s12978_s8 + $0x58] sm:$0xff] }
 0x2b4   :  { %4884 = vmatpush.bf16.msra.mxu3 %v7620_v19  ;;  %4953 = vmatmul.bf16.vlgmr.msra.gmra.mxu0 %v11363_v29  ;;  %v8777_v29 = vld [vmem:[%s12977_s7 + $0x4c4] sm:$0xf]  ;;  %v8711_v19 = vld [vmem:[%s12977_s7 + $0x2b4] sm:$0xf]  ;;  %v4670_v5 = vpop.f32.mrf.mxu2 }
 0x2b5   :  { %5297 = vmatpush.bf16.msrb.mxu0 %v8920_v60  ;;  %4923 = vmatpush.bf16.msrb.mxu2 %v7048_v54  ;;  %v7576_v39 = vor.u32 %v8777_v29, %v7573_v6  ;;  %v7552_v60 = vor.u32 %v8771_v17, %v7549_v44  ;;  %v4631_v54 = vpop.f32.mrf.mxu3  ;;  %v4591_v24 = vadd.f32 %v12348_v55, %v4578_v62  ;;  %v8914_v6 = vld [vmem:[%s12978_s8 + $0x8] sm:$0xff]  ;;  %v7765_v5 = vld [vmem:[%s12977_s7 + $0x658] sm:$0xf0]  ;;  %v8935_v35 = vld [vmem:[%s12978_s8 + $0xb0] sm:$0xff] }
 0x2b6   :  { %4962 = vmatpush.bf16.msra.mxu1 %v7624_v31  ;;  %v8855_v31 = vld [vmem:[%s12977_s7 + $0x734] sm:$0xf]  ;;  %v7864_v29 = vor.u32 %v8849_v42, %v7861_v21  ;;  %v7261_v55 = vld [vmem:[%s12977_s7 + $0x268] sm:$0xf0]  ;;  %v4643_v17 = vadd.f32 %v12546_v18, %v4630_v1  ;;  %v7816_v44 = vor.u32 %v8837_v9, %v7813_v26  ;;  %v8909_v42 = vld [vmem:[%s12977_s7 + $0x8e4] sm:$0xf] }
 0x2b7   :  { %v7888_v13 = vor.u32 %v8855_v31, %v7885_v7  ;;  %v8831_v18 = vld [vmem:[%s12977_s7 + $0x674] sm:$0xf]  ;;  %v8101_v21 = vld [vmem:[%s12977_s7 + $0x8f8] sm:$0xf0]  ;;  %v8897_v57 = vld [vmem:[%s12977_s7 + $0x884] sm:$0xf] }
 0x2b8   :  { %4885 = vmatpush.bf16.msra.mxu3 %v7596_v15  ;;  %v8705_v15 = vld [vmem:[%s12977_s7 + $0x284] sm:$0xf]  ;;  %v8923_v54 = vld [vmem:[%s12978_s8 + $0x50] sm:$0xff] }
 0x2b9   :  { %5298 = vmatpush.bf16.msrb.mxu0 %v8919_v11  ;;  %4924 = vmatpush.bf16.msrb.mxu2 %v7024_v16  ;;  %v7312_v11 = vor.u32 %v8711_v19, %v7309_v8  ;;  %v7285_v16 = vld [vmem:[%s12977_s7 + $0x298] sm:$0xf0]  ;;  %v12672_v23 = vpop.f32.mrf.mxu1 }
 0x2ba   :  { %4963 = vmatpush.bf16.msra.mxu1 %v7600_v22  ;;  %v12670_v22 = vpop.f32.mrf.mxu0  ;;  %v7189_v19 = vld [vmem:[%s12977_s7 + $0x1d8] sm:$0xf0] }
 0x2bc   :  { %4886 = vmatpush.bf16.msra.mxu3 %v7572_v58  ;;  %v4604_v58 = vadd.f32 %v12362_v3, %v4591_v24  ;;  %v8925_v3 = vld [vmem:[%s12978_s8 + $0x60] sm:$0xff] }
 0x2bd   :  { %5299 = vmatpush.bf16.msrb.mxu0 %v8918_v28  ;;  %4925 = vmatpush.bf16.msrb.mxu2 %v7000_v32  ;;  %v7288_v28 = vor.u32 %v8705_v15, %v7285_v16  ;;  %v7264_v32 = vor.u32 %v8699_v30, %v7261_v55  ;;  %v8675_v15 = vld [vmem:[%s12977_s7 + $0x194] sm:$0xf]  ;;  %v8921_v30 = vld [vmem:[%s12978_s8 + $0x40] sm:$0xff]  ;;  %v8936_v55 = vld [vmem:[%s12978_s8 + $0xb8] sm:$0xff] }
 0x2be   :  { %4964 = vmatpush.bf16.msra.mxu1 %v7576_v39  ;;  %v4997_v40 = vmax.f32 %v4604_v58, 0.0  ;;  %v8819_v16 = vld [vmem:[%s12977_s7 + $0x614] sm:$0xf] }
 0x2c0   :  { %4887 = vmatpush.bf16.msra.mxu3 %v7548_v33  ;;  %v7789_v33 = vld [vmem:[%s12977_s7 + $0x688] sm:$0xf0] }
 0x2c1   :  { %5300 = vmatpush.bf16.msrb.mxu0 %v8917_v34  ;;  %4926 = vmatpush.bf16.msrb.mxu2 %v6976_v56  ;;  %v4709_v41 = vpop.f32.mrf.mxu1  ;;  %v5003_v56 = vpack.c.bf16 %v4997_v40, %v4997_v40  ;;  %v8029_v40 = vld [vmem:[%s12977_s7 + $0x868] sm:$0xf0] }
 0x2c2   :  { %4965 = vmatpush.bf16.msra.mxu1 %v7552_v60  ;;  %v4696_v39 = vpop.f32.mrf.mxu0  ;;  %v7216_v60 = vor.u32 %v8687_v45, %v7213_v48  ;;  %v8891_v41 = vld [vmem:[%s12977_s7 + $0x854] sm:$0xf]  ;;  %v8932_v48 = vld [vmem:[%s12978_s8 + $0x98] sm:$0xff] }
 0x2c3   :  { %4888 = vmatmul.bf16.vlgmr.msra.gmra.mxu3 %v11476_v36  ;;  %v8934_v39 = vld [vmem:[%s12978_s8 + $0xa8] sm:$0xff] }
 0x2c4   :  { %4932 = vmatpush.bf16.msrb.mxu3 %v7336_v20  ;;  %4927 = vmatmul.bf16.vlgmr.msrb.gmra.mxu2 %v11106_v0  ;;  %v8926_v0 = vld [vmem:[%s12978_s8 + $0x68] sm:$0xff]  ;;  %v4656_v20 = vadd.f32 %v12560_v2, %v4643_v17  ;;  %v8825_v2 = vld [vmem:[%s12977_s7 + $0x644] sm:$0xf] }
 0x2c5   :  { %4971 = vmatpush.bf16.msra.mxu2 %v7912_v61  ;;  %5301 = vmatpush.bf16.msrb.mxu0 %v8916_v63  ;;  %v7792_v61 = vor.u32 %v8831_v18, %v7789_v33  ;;  %v8681_v63 = vld [vmem:[%s12977_s7 + $0x1c4] sm:$0xf]  ;;  %v7981_v18 = vld [vmem:[%s12977_s7 + $0x808] sm:$0xf0] }
 0x2c6   :  { %5310 = vmatpush.bf16.msrb.mxu1 %v8928_v25  ;;  %v4681_v8 = vpop.f32.mrf.mxu3  ;;  %v4669_v31 = vadd.f32 %v12586_v27, %v4656_v20  ;;  %v7165_v27 = vld [vmem:[%s12977_s7 + $0x1a8] sm:$0xf0]  ;;  %v8885_v17 = vld [vmem:[%s12977_s7 + $0x824] sm:$0xf] }
 0x2c7   :  { %4966 = vmatmul.bf16.vlgmr.msra.gmra.mxu1 %v11476_v36  ;;  %v8843_v36 = vld [vmem:[%s12977_s7 + $0x6d4] sm:$0xf]  ;;  %v12749_v25 = vpop.f32.mrf.mxu2  ;;  %v8873_v20 = vld [vmem:[%s12977_s7 + $0x7c4] sm:$0xf] }
 0x2c8   :  { %4933 = vmatpush.bf16.msrb.mxu3 %v7312_v11  ;;  %v7840_v34 = vor.u32 %v8843_v36, %v7837_v10  ;;  %v7192_v11 = vor.u32 %v8681_v63, %v7189_v19  ;;  %v4682_v24 = vadd.f32 %v4681_v8, %v4669_v31  ;;  %v8077_v36 = vld [vmem:[%s12977_s7 + $0x8c8] sm:$0xf0] }
 0x2c9   :  { %4972 = vmatpush.bf16.msra.mxu2 %v7888_v13  ;;  %5302 = vmatpush.bf16.msrb.mxu0 %v8915_v14  ;;  %v12754_v62 = vpop.f32.mrf.mxu1  ;;  %v8922_v13 = vld [vmem:[%s12978_s8 + $0x48] sm:$0xff]  ;;  %v7768_v14 = vor.u32 %v8825_v2, %v7765_v5  ;;  %v8867_v2 = vld [vmem:[%s12977_s7 + $0x794] sm:$0xf] }
 0x2ca   :  { %5311 = vmatpush.bf16.msrb.mxu1 %v8927_v12  ;;  %v12752_v7 = vpop.f32.mrf.mxu0  ;;  %v7741_v12 = vld [vmem:[%s12977_s7 + $0x628] sm:$0xf0]  ;;  %v4998_v1 = vmax.f32 %v4682_v24, 0.0 }
 0x2cb   :  { %v7933_v5 = vld [vmem:[%s12977_s7 + $0x7a8] sm:$0xf0] }
 0x2cc   :  { %4934 = vmatpush.bf16.msrb.mxu3 %v7288_v28  ;;  %v7168_v28 = vor.u32 %v8675_v15, %v7165_v27  ;;  %v5004_v9 = vpack.c.bf16 %v4998_v1, %v4998_v1  ;;  %v8944_v15 = vld [vmem:[%s12978_s8 + $0xf8] sm:$0xff]  ;;  %v8942_v24 = vld [vmem:[%s12978_s8 + $0xe8] sm:$0xff]  ;;  %v8937_v1 = vld [vmem:[%s12978_s8 + $0xc0] sm:$0xff] }
 0x2cd   :  { %4973 = vmatpush.bf16.msra.mxu2 %v7864_v29  ;;  %5303 = vmatpush.bf16.msrb.mxu0 %v8914_v6  ;;  %v7744_v29 = vor.u32 %v8819_v16, %v7741_v12  ;;  %v8104_v6 = vor.u32 %v8909_v42, %v8101_v21 }
 0x2ce   :  { %5312 = vmatpush.bf16.msrb.mxu1 %v8926_v0  ;;  %v8903_v0 = vld [vmem:[%s12977_s7 + $0x8b4] sm:$0xf]  ;;  %v4683_v10 = vpop.f32.mrf.mxu3 }
 0x2cf   :  { %v4722_v58 = vpop.f32.mrf.mxu2 }
 0x2d0   :  { %4935 = vmatpush.bf16.msrb.mxu3 %v7264_v32  ;;  %v8952_v58 = vld [vmem:[%s12978_s8 + $0x138] sm:$0xff] }
 0x2d1   :  { %4974 = vmatpush.bf16.msra.mxu2 %v7840_v34  ;;  %5304 = vmatpush.bf16.msrb.mxu0 %v8913_v37  ;;  %v4761_v34 = vpop.f32.mrf.mxu1  ;;  %v8080_v37 = vor.u32 %v8903_v0, %v8077_v36  ;;  %v8938_v36 = vld [vmem:[%s12978_s8 + $0xc8] sm:$0xff] }
 0x2d2   :  { %5313 = vmatpush.bf16.msrb.mxu1 %v8925_v3  ;;  %v4748_v32 = vpop.f32.mrf.mxu0  ;;  %v8053_v3 = vld [vmem:[%s12977_s7 + $0x898] sm:$0xf0] }
 0x2d3   :  { %v8056_v26 = vor.u32 %v8897_v57, %v8053_v3  ;;  %v8951_v32 = vld [vmem:[%s12978_s8 + $0x130] sm:$0xff]  ;;  %v8950_v3 = vld [vmem:[%s12978_s8 + $0x128] sm:$0xff] }
 0x2d4   :  { %4936 = vmatpush.bf16.msrb.mxu3 %v7240_v43  ;;  %5305 = vmatmul.bf16.vlgmr.msrb.gmra.mxu0 %v5003_v56  ;;  %v8005_v43 = vld [vmem:[%s12977_s7 + $0x838] sm:$0xf0] }
 0x2d5   :  { %4975 = vmatpush.bf16.msra.mxu2 %v7816_v44  ;;  %v4708_v44 = vadd.f32 %v12672_v23, %v12670_v22  ;;  %v8008_v45 = vor.u32 %v8885_v17, %v8005_v43  ;;  %v8931_v23 = vld [vmem:[%s12978_s8 + $0x90] sm:$0xff]  ;;  %5349 = vmatpush.bf16.msra.mxu0 %v8952_v58  ;;  %v8946_v43 = vld [vmem:[%s12978_s8 + $0x108] sm:$0xff] }
 0x2d6   :  { %5314 = vmatpush.bf16.msrb.mxu1 %v8924_v47  ;;  %v8879_v47 = vld [vmem:[%s12977_s7 + $0x7f4] sm:$0xf] }
 0x2d7   :  { %v4721_v56 = vadd.f32 %v12749_v25, %v4708_v44  ;;  %v7984_v22 = vor.u32 %v8879_v47, %v7981_v18 }
 0x2d8   :  { %4937 = vmatpush.bf16.msrb.mxu3 %v7216_v60  ;;  %v7957_v60 = vld [vmem:[%s12977_s7 + $0x7d8] sm:$0xf0] }
 0x2d9   :  { %4976 = vmatpush.bf16.msra.mxu2 %v7792_v61  ;;  %v7960_v19 = vor.u32 %v8873_v20, %v7957_v60  ;;  %5350 = vmatpush.bf16.msra.mxu0 %v8951_v32 }
 0x2da   :  { %5315 = vmatpush.bf16.msrb.mxu1 %v8923_v54  ;;  %v12829_v33 = vpop.f32.mrf.mxu0  ;;  %v8930_v54 = vld [vmem:[%s12978_s8 + $0x88] sm:$0xff] }
 0x2dc   :  { %4938 = vmatpush.bf16.msrb.mxu3 %v7192_v11 }
 0x2dd   :  { %4977 = vmatpush.bf16.msra.mxu2 %v7768_v14  ;;  %5351 = vmatpush.bf16.msra.mxu0 %v8950_v3 }
 0x2de   :  { %5316 = vmatpush.bf16.msrb.mxu1 %v8922_v13  ;;  %v7936_v13 = vor.u32 %v8867_v2, %v7933_v5 }
 0x2e0   :  { %4939 = vmatpush.bf16.msrb.mxu3 %v7168_v28 }
 0x2e1   :  { %4978 = vmatpush.bf16.msra.mxu2 %v7744_v29  ;;  %v8941_v29 = vld [vmem:[%s12978_s8 + $0xe0] sm:$0xff] }
 0x2e2   :  { %5317 = vmatpush.bf16.msrb.mxu1 %v8921_v30  ;;  %v4800_v25 = vpop.f32.mrf.mxu0  ;;  %v8940_v30 = vld [vmem:[%s12978_s8 + $0xd8] sm:$0xff] }
 0x2e3   :  { %4940 = vmatmul.bf16.vlgmr.msrb.gmra.mxu3 %v11198_v51  ;;  %v8032_v51 = vor.u32 %v8891_v41, %v8029_v40  ;;  %v8948_v40 = vld [vmem:[%s12978_s8 + $0x118] sm:$0xff] }
 0x2e4   :  { %4984 = vmatpush.bf16.msra.mxu3 %v8104_v6  ;;  %4979 = vmatmul.bf16.vlgmr.msra.gmra.mxu2 %v11200_v53  ;;  %v8933_v53 = vld [vmem:[%s12978_s8 + $0xa0] sm:$0xff]  ;;  %v4811_v16 = vpop.f32.mrf.mxu1 }
 0x2e5   :  { %5323 = vmatpush.bf16.msrb.mxu2 %v8936_v55  ;;  %5318 = vmatmul.bf16.vlgmr.msrb.gmra.mxu1 %v5004_v9 }
 0x2e6   :  { %v4733_v61 = vpop.f32.mrf.mxu3 }
 0x2e7   :  { %v4734_v63 = vadd.f32 %v4733_v61, %v4721_v56  ;;  %v4772_v31 = vpop.f32.mrf.mxu2  ;;  %v1343_v61 = vadd.f32 %v10854_v50, %v10852_v49  ;;  %v8959_v49 = vld [vmem:[%s12978_s8 + $0x170] sm:$0xff] }
 0x2e8   :  { %4985 = vmatpush.bf16.msra.mxu3 %v8080_v37 }
 0x2e9   :  { %5324 = vmatpush.bf16.msrb.mxu2 %v8935_v35  ;;  %v4747_v8 = vadd.f32 %v12752_v7, %v4734_v63  ;;  %v8929_v7 = vld [vmem:[%s12978_s8 + $0x80] sm:$0xff]  ;;  %v1357_v63 = vadd.f32 %v10874_v59, %v1343_v61 }
 0x2eb   :  { %v4760_v11 = vadd.f32 %v12754_v62, %v4747_v8  ;;  %v8943_v62 = vld [vmem:[%s12978_s8 + $0xf0] sm:$0xff] }
 0x2ec   :  { %4986 = vmatpush.bf16.msra.mxu3 %v8056_v26  ;;  %v4813_v28 = vpop.f32.mrf.mxu1  ;;  %v8949_v26 = vld [vmem:[%s12978_s8 + $0x120] sm:$0xff] }
 0x2ed   :  { %5325 = vmatpush.bf16.msrb.mxu2 %v8934_v39  ;;  %v4999_v14 = vmax.f32 %v4760_v11, 0.0  ;;  %5352 = vmatpush.bf16.msra.mxu0 %v8949_v26  ;;  %v8954_v28 = vld [vmem:[%s12978_s8 + $0x148] sm:$0xff] }
 0x2ee   :  { %v4735_v27 = vpop.f32.mrf.mxu3 }
 0x2ef   :  { %v5005_v12 = vpack.c.bf16 %v4999_v14, %v4999_v14  ;;  %v4774_v21 = vpop.f32.mrf.mxu2 }
 0x2f0   :  { %4987 = vmatpush.bf16.msra.mxu3 %v8032_v51  ;;  %v8955_v21 = vld [vmem:[%s12978_s8 + $0x150] sm:$0xff] }
 0x2f1   :  { %5326 = vmatpush.bf16.msrb.mxu2 %v8933_v53  ;;  %v12861_v42 = vpop.f32.mrf.mxu0  ;;  %5353 = vmatpush.bf16.msra.mxu0 %v8948_v40 }
 0x2f4   :  { %4988 = vmatpush.bf16.msra.mxu3 %v8008_v45 }
 0x2f5   :  { %5327 = vmatpush.bf16.msrb.mxu2 %v8932_v48 }
 0x2f8   :  { %4989 = vmatpush.bf16.msra.mxu3 %v7984_v22 }
 0x2f9   :  { %5328 = vmatpush.bf16.msrb.mxu2 %v8931_v23  ;;  %v4852_v6 = vpop.f32.mrf.mxu0 }
 0x2fc   :  { %4990 = vmatpush.bf16.msra.mxu3 %v7960_v19  ;;  %v1371_v19 = vadd.f32 %v10981_v52, %v1357_v63 }
 0x2fd   :  { %5329 = vmatpush.bf16.msrb.mxu2 %v8930_v54 }
 0x300   :  { %4991 = vmatpush.bf16.msra.mxu3 %v7936_v13  ;;  %v8958_v13 = vld [vmem:[%s12978_s8 + $0x168] sm:$0xff] }
 0x301   :  { %5330 = vmatpush.bf16.msrb.mxu2 %v8929_v7 }
 0x303   :  { %4992 = vmatmul.bf16.vlgmr.msra.gmra.mxu3 %v11294_v46  ;;  %v8939_v46 = vld [vmem:[%s12978_s8 + $0xd0] sm:$0xff] }
 0x304   :  { %5336 = vmatpush.bf16.msrb.mxu3 %v8944_v15  ;;  %5331 = vmatmul.bf16.vlgmr.msrb.gmra.mxu2 %v5005_v12  ;;  %v4863_v10 = vpop.f32.mrf.mxu1  ;;  %v8957_v12 = vld [vmem:[%s12978_s8 + $0x160] sm:$0xff] }
 0x305   :  { %v4864_v8 = vadd.f32 %v4863_v10, %v12861_v42 }
 0x306   :  { %v4785_v55 = vpop.f32.mrf.mxu3 }
 0x307   :  { %v4824_v0 = vpop.f32.mrf.mxu2  ;;  %v4786_v9 = vadd.f32 %v4785_v55, %v4772_v31  ;;  %v8960_v31 = vld [vmem:[%s12978_s8 + $0x178] sm:$0xff] }
 0x308   :  { %5337 = vmatpush.bf16.msrb.mxu3 %v8943_v62  ;;  %5362 = vmatpush.bf16.msra.mxu1 %v8960_v31  ;;  %v8956_v62 = vld [vmem:[%s12978_s8 + $0x158] sm:$0xff] }
 0x309   :  { %v4799_v41 = vadd.f32 %v12829_v33, %v4786_v9  ;;  %v8945_v33 = vld [vmem:[%s12978_s8 + $0x100] sm:$0xff] }
 0x30b   :  { %v4812_v51 = vadd.f32 %v4811_v16, %v4799_v41 }
 0x30c   :  { %5338 = vmatpush.bf16.msrb.mxu3 %v8942_v24  ;;  %v4865_v57 = vpop.f32.mrf.mxu1  ;;  %5363 = vmatpush.bf16.msra.mxu1 %v8959_v49 }
 0x30d   :  { %v4825_v17 = vadd.f32 %v4824_v0, %v4812_v51 }
 0x30e   :  { %v4787_v34 = vpop.f32.mrf.mxu3 }
 0x30f   :  { %v4826_v35 = vpop.f32.mrf.mxu2 }
 0x310   :  { %5339 = vmatpush.bf16.msrb.mxu3 %v8941_v29  ;;  %5364 = vmatpush.bf16.msra.mxu1 %v8958_v13 }
 0x311   :  { %v4902_v37 = vpop.f32.mrf.mxu0 }
 0x314   :  { %5340 = vmatpush.bf16.msrb.mxu3 %v8940_v30  ;;  %5365 = vmatpush.bf16.msra.mxu1 %v8957_v12  ;;  %v8953_v30 = vld [vmem:[%s12978_s8 + $0x140] sm:$0xff] }
 0x318   :  { %5341 = vmatpush.bf16.msrb.mxu3 %v8939_v46  ;;  %5366 = vmatpush.bf16.msra.mxu1 %v8956_v62 }
 0x319   :  { %v4904_v39 = vpop.f32.mrf.mxu0 }
 0x31c   :  { %5342 = vmatpush.bf16.msrb.mxu3 %v8938_v36  ;;  %5367 = vmatpush.bf16.msra.mxu1 %v8955_v21 }
 0x320   :  { %5343 = vmatpush.bf16.msrb.mxu3 %v8937_v1  ;;  %5368 = vmatpush.bf16.msra.mxu1 %v8954_v28 }
 0x324   :  { %8299 = vmatpush.xpose.msk.msra.mxu3 %vm5380_vm0, %v12365_v4  ;;  %v4915_v53 = vpop.f32.mrf.mxu1  ;;  %v8947_v4 = vld [vmem:[%s12978_s8 + $0x110] sm:$0xff]  ;;  %5369 = vmatpush.bf16.msra.mxu1 %v8953_v30 }
 0x325   :  { %5354 = vmatpush.bf16.msra.mxu0 %v8947_v4 }
 0x326   :  { %v4837_v44 = vpop.f32.mrf.mxu3 }
 0x327   :  { %v4838_v45 = vadd.f32 %v4837_v44, %v4825_v17  ;;  %v4876_v48 = vpop.f32.mrf.mxu2 }
 0x328   :  { %v4877_v2 = vadd.f32 %v4876_v48, %v4864_v8  ;;  %v5375_v48 = vlaneseq }
 0x329   :  { %5355 = vmatpush.bf16.msra.mxu0 %v8946_v43  ;;  %v5000_v47 = vmax.f32 %v4838_v45, 0.0 }
 0x32b   :  { %v5006_v56 = vpack.c.bf16 %v5000_v47, %v5000_v47  ;;  %v5376_v47 = vshrl.u32 %v5375_v48, 7 }
 0x32c   :  { %v4917_v18 = vpop.f32.mrf.mxu1 }
 0x32d   :  { %5356 = vmatpush.bf16.msra.mxu0 %v8945_v33  ;;  %5344 = vmatmul.bf16.vlgmr.msrb.gmra.mxu3 %v5006_v56  ;;  %v5378_v18 = vand.u32 127, %v5375_v48 }
 0x32e   :  { %v4839_v22 = vpop.f32.mrf.mxu3 }
 0x32f   :  { %v4878_v20 = vpop.f32.mrf.mxu2  ;;  %vm5379_vm2 = vcmp.eq.s32.totalorder %v5376_v47, %v5378_v18 }
 0x331   :  { %v4954_v23 = vpop.f32.mrf.mxu0 }
 0x339   :  { %v4956_v60 = vpop.f32.mrf.mxu0 }
 0x33d   :  { %8300 = vmatmul.msk.f32.vlgmr.msra.gmra.mxu3 %vm5380_vm0, %v1371_v19 }
 0x344   :  { %v4967_v54 = vpop.f32.mrf.mxu1 }
 0x346   :  { %v4889_v5 = vpop.f32.mrf.mxu3 }
 0x347   :  { %v4928_v25 = vpop.f32.mrf.mxu2  ;;  %v4890_v11 = vadd.f32 %v4889_v5, %v4877_v2 }
 0x349   :  { %v4903_v50 = vadd.f32 %v4902_v37, %v4890_v11 }
 0x34b   :  { %v4916_v52 = vadd.f32 %v4915_v53, %v4903_v50 }
 0x34c   :  { %v4969_v59 = vpop.f32.mrf.mxu1 }
 0x34d   :  { %v5001_v14 = vmax.f32 %v4916_v52, 0.0 }
 0x34e   :  { %v4891_v15 = vpop.f32.mrf.mxu3 }
 0x34f   :  { %v5007_v27 = vpack.c.bf16 %v5001_v14, %v5001_v14  ;;  %v4930_v16 = vpop.f32.mrf.mxu2 }
 0x351   :  { %v5306_v7 = vpop.f32.mrf.mxu0  ;;  %5357 = vmatmul.bf16.vlgmr.msra.gmra.mxu0 %v5007_v27 }
 0x359   :  { %v5308_v42 = vpop.f32.mrf.mxu0 }
 0x362   :  { %v5319_v24 = vpop.f32.mrf.mxu1 }
 0x363   :  { %v5320_v29 = vadd.f32 %v5319_v24, %v5306_v7 }
 0x366   :  { %v4941_v6 = vpop.f32.mrf.mxu3 }
 0x367   :  { %v4980_v46 = vpop.f32.mrf.mxu2  ;;  %v4942_v10 = vadd.f32 %v4941_v6, %v4928_v25 }
 0x369   :  { %v4955_v58 = vadd.f32 %v4954_v23, %v4942_v10 }
 0x36a   :  { %v5321_v55 = vpop.f32.mrf.mxu1 }
 0x36b   :  { %v4968_v1 = vadd.f32 %v4967_v54, %v4955_v58 }
 0x36d   :  { %v4981_v32 = vadd.f32 %v4980_v46, %v4968_v1 }
 0x36e   :  { %v4943_v0 = vpop.f32.mrf.mxu3 }
 0x36f   :  { %v4982_v36 = vpop.f32.mrf.mxu2 }
 0x386   :  { %v4993_v34 = vpop.f32.mrf.mxu3 }
 0x387   :  { %v4994_v37 = vadd.f32 %v4993_v34, %v4981_v32  ;;  %v5332_v35 = vpop.f32.mrf.mxu2 }
 0x388   :  { %v5333_v57 = vadd.f32 %v5332_v35, %v5320_v29 }
 0x389   :  { %v5002_v3 = vmax.f32 %v4994_v37, 0.0 }
 0x38b   :  { %v5008_v9 = vpack.c.bf16 %v5002_v3, %v5002_v3 }
 0x38d   :  { %5370 = vmatmul.bf16.vlgmr.msra.gmra.mxu1 %v5008_v9 }
 0x38e   :  { %v4995_v26 = vpop.f32.mrf.mxu3 }
 0x38f   :  { %v5334_v39 = vpop.f32.mrf.mxu2 }
 0x3b0   :  { %v5345_v41 = vpop.f32.mrf.mxu3 }
 0x3b1   :  { %v5346_v40 = vadd.f32 %v5345_v41, %v5333_v57 }
 0x3b8   :  { %v5347_v51 = vpop.f32.mrf.mxu3 }
 0x3c0   :  { %v12944_v61 = vpop.f32.mrf.mxu3 }
 0x3c1   :  { %v5535_v54 = vsel %vm5379_vm2, %v12944_v61, 0.0  ;;  %v5545_v25 = vsel %vm5408_vm1, %v12944_v61, -inf }
 0x3c2   :  { %v12950_v11 = vsel %vm5408_vm1, %v5535_v54, 0.0 }
 0x3ce   :  { %v5358_v53 = vpop.f32.mrf.mxu0 }
 0x3cf   :  { %v5359_v17 = vadd.f32 %v5358_v53, %v5346_v40 }
 0x3d6   :  { %v5360_v4 = vpop.f32.mrf.mxu0 }
 0x40a   :  { %v5371_v43 = vpop.f32.mrf.mxu1 }
 0x40b   :  { %v5372_v44 = vadd.f32 %v5371_v43, %v5359_v17  ;;  %v5572_v43 = vrot.slane %v5545_v25, 4 }
 0x40d   :  { %8297 = vmatpush.xpose.msk.msra.mxu2 %vm5380_vm0, %v5372_v44  ;;  %v5573_v44 = vmax.f32 %v5545_v25, %v5572_v43 }
 0x410   :  { %8298 = vmatmul.msk.f32.vlgmr.msra.gmra.mxu2 %vm5380_vm0, %v10959_v38 }
 0x412   :  { %v5373_v45 = vpop.f32.mrf.mxu1 }
 0x413   :  { %v5574_v45 = vrot.slane %v5573_v44, 2 }
 0x415   :  { %v5575_v48 = vmax.f32 %v5573_v44, %v5574_v45 }
 0x417   :  { %v5576_v47 = vrot.slane %v5575_v48, 1 }
 0x419   :  { %v5577_v18 = vmax.f32 %v5575_v48, %v5576_v47 }
 0x493   :  { %v5404_v33 = vpop.f32.mrf.mxu2 }
 0x494   :  { %v5418_v56 = vsel %vm5408_vm1, %v5404_v33, -inf  ;;  %v5407_v22 = vsel %vm5379_vm2, %v5404_v33, 0.0 }
 0x495   :  { %5419 = vmax.xlane.f32.xlu0 %v5418_v56  ;;  %v5445_v23 = vrot.slane %v5418_v56, 4  ;;  %v5409_v20 = vsel %vm5408_vm1, %v5407_v22, 0.0 }
 0x496   :  { %5410 = vadd.xlane.f32.xlu2 %v5409_v20  ;;  %v5412_v60 = vrot.slane %v5409_v20, 4 }
 0x497   :  { %v5446_v63 = vmax.f32 %v5418_v56, %v5445_v23 }
 0x498   :  { %v5413_v38 = vadd.f32 %v5412_v60, %v5409_v20 }
 0x499   :  { %v5447_v19 = vrot.slane %v5446_v63, 2 }
 0x49a   :  { %v5414_v8 = vrot.slane %v5413_v38, 2 }
 0x49b   :  { %v5448_v2 = vmax.f32 %v5446_v63, %v5447_v19  ;;  %v5539_v19 = vrot.slane %v12950_v11, 4 }
 0x49c   :  { %v5415_v5 = vadd.f32 %v5414_v8, %v5413_v38 }
 0x49d   :  { %v5449_v31 = vrot.slane %v5448_v2, 1  ;;  %5546 = vmax.xlane.f32.xlu0 %v5545_v25  ;;  %v5540_v54 = vadd.f32 %v5539_v19, %v12950_v11 }
 0x49e   :  { %v5416_v49 = vrot.slane %v5415_v5, 1  ;;  %5537 = vadd.xlane.f32.xlu2 %v12950_v11 }
 0x49f   :  { %v5450_v50 = vmax.f32 %v5448_v2, %v5449_v31 }
 0x4a0   :  { %v5417_v59 = vadd.f32 %v5416_v49, %v5415_v5  ;;  %v5541_v5 = vrot.slane %v5540_v54, 2 }
 0x4a1   :  { %v5451_v52 = vsub.f32 %v5404_v33, %v5450_v50 }
 0x4a2   :  { %v5461_v13 = vsub.f32 %v5417_v59, %v5450_v50  ;;  %v5542_v25 = vadd.f32 %v5541_v5, %v5540_v54 }
 0x4a3   :  { %v5452_v14 = vmul.f32 1.442695, %v5451_v52 }
 0x4a4   :  { %v5462_v28 = vmul.f32 1.442695, %v5461_v13 }
 0x4a5   :  { %8970 = vpow2.f32 %v5452_v14 }
 0x4ab   :  { %v8971_v7 = vpop.eup %8970 }
 0x4ac   :  { %v5454_v15 = vsel %vm5408_vm1, %v8971_v7, 0.0 }
 0x4ad   :  { %v5455_v27 = vrot.slane %v5454_v15, 4 }
 0x4af   :  { %v5456_v16 = vadd.f32 %v5455_v27, %v5454_v15 }
 0x4b1   :  { %v5457_v12 = vrot.slane %v5456_v16, 2 }
 0x4b3   :  { %v5458_v62 = vadd.f32 %v5457_v12, %v5456_v16 }
 0x4b5   :  { %v5459_v42 = vrot.slane %v5458_v62, 1 }
 0x4b7   :  { %v5460_v21 = vadd.f32 %v5459_v42, %v5458_v62 }
 0x4b9   :  { %8972 = vrcp.f32 %v5460_v21  ;;  %v5475_v30 = vand.u32 2147483648, %v5460_v21  ;;  %v5473_v55 = vand.u32 2147483647, %v5460_v21  ;;  %vm5469_vm4 = vweird.f32 %v5460_v21 }
 0x4ba   :  { %8974 = vpow2.f32 %v5462_v28 }
 0x4bb   :  { %v5476_v36 = vor.u32 1.1754944e-38, %v5475_v30  ;;  %vm5474_vm6 = vcmp.eq.f32.partialorder %v5473_v55, 8.507059e+37 }
 0x4bf   :  { %v8973_v24 = vpop.eup %8972 }
 0x4c0   :  { %v5465_v29 = vmul.f32 %v8973_v24, %v5460_v21  ;;  %vm5470_vm3 = vweird.f32 %v8973_v24  ;;  %v8975_v58 = vpop.eup %8974 }
 0x4c1   :  { %vm5471_vm5 = vmor %vm5469_vm4, %vm5470_vm3  ;;  %vm5482_vm4 = vcmask 7168  }
 0x4c2   :  { %v5466_v6 = vsub.f32 1.0, %v5465_v29 }
 0x4c4   :  { %v5467_v46 = vmul.f32 %v8973_v24, %v5466_v6 }
 0x4c6   :  { %v5468_v0 = vadd.f32 %v8973_v24, %v5467_v46 }
 0x4c8   :  { %v5472_v10 = vsel %vm5471_vm5, %v8973_v24, %v5468_v0 }
 0x4c9   :  { %v5477_v1 = vsel %vm5474_vm6, %v5476_v36, %v5472_v10 }
 0x4ca   :  { %v5478_v32 = vmul.f32 %v8975_v58, %v5477_v1 }
 0x4cc   :  { %v5494_v39 = vadd.f32 1e-10, %v5478_v32 }
 0x508   :  { %v5420_v34 = vpop.xlane.xlu0 %5419 }
 0x509   :  { %v5421_v37 = vsub.f32 %v5404_v33, %v5420_v34  ;;  %v5578_v33 = vsub.f32 %v12944_v61, %v5577_v18  ;;  %v5411_v59 = vpop.xlane.xlu2 %5410 }
 0x50a   :  { %v5427_v7 = vsub.f32 %v5411_v59, %v5420_v34 }
 0x50b   :  { %v5422_v35 = vmul.f32 1.442695, %v5421_v37  ;;  %v5579_v56 = vmul.f32 1.442695, %v5578_v33 }
 0x50c   :  { %v5428_v12 = vmul.f32 1.442695, %v5427_v7 }
 0x50d   :  { %8976 = vpow2.f32 %v5422_v35 }
 0x510   :  { %v12954_v57 = vpop.xlane.xlu0 %5546 }
 0x511   :  { %v5548_v3 = vsub.f32 %v12944_v61, %v12954_v57  ;;  %v5543_v61 = vrot.slane %v5542_v25, 1  ;;  %v5538_v62 = vpop.xlane.xlu2 %5537 }
 0x512   :  { %v5554_v6 = vsub.f32 %v5538_v62, %v12954_v57 }
 0x513   :  { %v8977_v9 = vpop.eup %8976  ;;  %v5549_v26 = vmul.f32 1.442695, %v5548_v3  ;;  %v5544_v50 = vadd.f32 %v5543_v61, %v5542_v25 }
 0x514   :  { %v5424_v41 = vsel %vm5408_vm1, %v8977_v9, 0.0  ;;  %v5555_v1 = vmul.f32 1.442695, %v5554_v6 }
 0x515   :  { %8978 = vpow2.f32 %v5549_v26  ;;  %5425 = vadd.xlane.f32.xlu1 %v5424_v41  ;;  %v5588_v14 = vsub.f32 %v5544_v50, %v5577_v18 }
 0x516   :  { %8980 = vlog2.f32 %v5494_v39 }
 0x517   :  { %8982 = vpow2.f32 %v5579_v56  ;;  %v5589_v27 = vmul.f32 1.442695, %v5588_v14 }
 0x51b   :  { %v8979_v40 = vpop.eup %8978 }
 0x51c   :  { %v5551_v51 = vsel %vm5408_vm1, %v8979_v40, 0.0  ;;  %v8981_v53 = vpop.eup %8980 }
 0x51d   :  { %5552 = vadd.xlane.f32.xlu1 %v5551_v51  ;;  %v5496_v4 = vmul.f32 0.6931472, %v8981_v53  ;;  %v8983_v22 = vpop.eup %8982 }
 0x51e   :  { %v5581_v23 = vsel %vm5408_vm1, %v8983_v22, 0.0 }
 0x51f   :  { %v5498_v17 = vsel %vm5497_vm7, %v5496_v4, 0.0  ;;  %v5582_v20 = vrot.slane %v5581_v23, 4 }
 0x521   :  { %v5583_v60 = vadd.f32 %v5582_v20, %v5581_v23 }
 0x523   :  { %v5584_v63 = vrot.slane %v5583_v60, 2 }
 0x525   :  { %5499 = vadd.xlane.f32.xlu1 %v5498_v17  ;;  %v5585_v38 = vadd.f32 %v5584_v63, %v5583_v60 }
 0x527   :  { %v5586_v8 = vrot.slane %v5585_v38, 1 }
 0x529   :  { %v5587_v2 = vadd.f32 %v5586_v8, %v5585_v38 }
 0x52b   :  { %8984 = vrcp.f32 %v5587_v2  ;;  %v5602_v24 = vand.u32 2147483648, %v5587_v2  ;;  %vm5596_vm9 = vweird.f32 %v5587_v2  ;;  %v5600_v29 = vand.u32 2147483647, %v5587_v2 }
 0x52d   :  { %v5603_v36 = vor.u32 1.1754944e-38, %v5602_v24  ;;  %vm5601_vm13 = vcmp.eq.f32.partialorder %v5600_v29, 8.507059e+37 }
 0x531   :  { %v8985_v31 = vpop.eup %8984 }
 0x532   :  { %v5592_v49 = vmul.f32 %v8985_v31, %v5587_v2  ;;  %vm5597_vm8 = vweird.f32 %v8985_v31 }
 0x533   :  { %vm5598_vm10 = vmor %vm5596_vm9, %vm5597_vm8 }
 0x534   :  { %v5593_v13 = vsub.f32 1.0, %v5592_v49 }
 0x536   :  { %v5594_v15 = vmul.f32 %v8985_v31, %v5593_v13 }
 0x538   :  { %v5595_v21 = vadd.f32 %v8985_v31, %v5594_v15 }
 0x53a   :  { %v5599_v0 = vsel %vm5598_vm10, %v8985_v31, %v5595_v21 }
 0x53b   :  { %v5604_v34 = vsel %vm5601_vm13, %v5603_v36, %v5599_v0 }
 0x588   :  { %v5426_v52 = vpop.xlane.xlu1 %5425 }
 0x589   :  { %8986 = vrcp.f32 %v5426_v52  ;;  %v5441_v30 = vand.u32 2147483648, %v5426_v52  ;;  %v5439_v55 = vand.u32 2147483647, %v5426_v52  ;;  %vm5435_vm12 = vweird.f32 %v5426_v52 }
 0x58b   :  { %v5442_v32 = vor.u32 1.1754944e-38, %v5441_v30  ;;  %vm5440_vm15 = vcmp.eq.f32.partialorder %v5439_v55, 8.507059e+37 }
 0x58f   :  { %v8987_v16 = vpop.eup %8986 }
 0x590   :  { %v5431_v11 = vmul.f32 %v8987_v16, %v5426_v52  ;;  %v5553_v42 = vpop.xlane.xlu1 %5552  ;;  %vm5436_vm11 = vweird.f32 %v8987_v16 }
 0x591   :  { %8988 = vrcp.f32 %v5553_v42  ;;  %vm5437_vm14 = vmor %vm5435_vm12, %vm5436_vm11  ;;  %v5568_v40 = vand.u32 2147483648, %v5553_v42  ;;  %v5566_v53 = vand.u32 2147483647, %v5553_v42  ;;  %vm5562_vm1 = vweird.f32 %v5553_v42 }
 0x592   :  { %8990 = vpow2.f32 %v5589_v27  ;;  %v5432_v28 = vsub.f32 1.0, %v5431_v11 }
 0x593   :  { %8992 = vpow2.f32 %v5428_v12  ;;  %v5569_v44 = vor.u32 1.1754944e-38, %v5568_v40  ;;  %vm5567_vm3 = vcmp.eq.f32.partialorder %v5566_v53, 8.507059e+37 }
 0x594   :  { %v5433_v46 = vmul.f32 %v8987_v16, %v5432_v28  ;;  %8994 = vpow2.f32 %v5555_v1 }
 0x596   :  { %v5434_v10 = vadd.f32 %v8987_v16, %v5433_v46 }
 0x597   :  { %v8989_v58 = vpop.eup %8988 }
 0x598   :  { %v8991_v37 = vpop.eup %8990  ;;  %v5558_v35 = vmul.f32 %v8989_v58, %v5553_v42  ;;  %v5438_v3 = vsel %vm5437_vm14, %v8987_v16, %v5434_v10  ;;  %vm5563_vm0 = vweird.f32 %v8989_v58  ;;  %v5500_v54 = vpop.xlane.xlu1 %5499 }
 0x599   :  { %v8993_v57 = vpop.eup %8992  ;;  %v5443_v9 = vsel %vm5440_vm15, %v5442_v32, %v5438_v3  ;;  %v5605_v41 = vmul.f32 %v8991_v37, %v5604_v34  ;;  %vm5564_vm2 = vmor %vm5562_vm1, %vm5563_vm0  ;;  %v5501_v2 = vrot.slane %v5500_v54, 4 }
 0x59a   :  { %v5559_v26 = vsub.f32 1.0, %v5558_v35  ;;  %v5444_v39 = vmul.f32 %v8993_v57, %v5443_v9  ;;  %v8995_v48 = vpop.eup %8994 }
 0x59b   :  { %v5620_v43 = vadd.f32 1e-10, %v5605_v41  ;;  %v5502_v5 = vadd.f32 %v5501_v2, %v5500_v54 }
 0x59c   :  { %v5560_v51 = vmul.f32 %v8989_v58, %v5559_v26  ;;  %v5479_v4 = vadd.f32 1e-10, %v5444_v39 }
 0x59d   :  { %v5503_v25 = vrot.slane %v5502_v5, 2 }
 0x59e   :  { %8996 = vlog2.f32 %v5479_v4  ;;  %v5561_v17 = vadd.f32 %v8989_v58, %v5560_v51 }
 0x59f   :  { %8998 = vlog2.f32 %v5620_v43  ;;  %v5504_v50 = vadd.f32 %v5503_v25, %v5502_v5 }
 0x5a0   :  { %v5565_v45 = vsel %vm5564_vm2, %v8989_v58, %v5561_v17 }
 0x5a1   :  { %v5570_v47 = vsel %vm5567_vm3, %v5569_v44, %v5565_v45  ;;  %v5505_v7 = vrot.slane %v5504_v50, 1 }
 0x5a2   :  { %v5571_v18 = vmul.f32 %v8995_v48, %v5570_v47 }
 0x5a3   :  { %v5506_v42 = vadd.f32 %v5505_v7, %v5504_v50 }
 0x5a4   :  { %v8997_v33 = vpop.eup %8996  ;;  %v5606_v56 = vadd.f32 1e-10, %v5571_v18 }
 0x5a5   :  { %v5481_v22 = vmul.f32 0.6931472, %v8997_v33  ;;  %v8999_v20 = vpop.eup %8998 }
 0x5a6   :  { %9000 = vlog2.f32 %v5606_v56  ;;  %v5622_v60 = vmul.f32 0.6931472, %v8999_v20 }
 0x5a7   :  { %v5483_v23 = vsel %vm5482_vm4, %v5481_v22, 0.0 }
 0x5a8   :  { %5484 = vadd.xlane.f32.xlu0 %v5483_v23  ;;  %v5623_v8 = vsel %vm5497_vm7, %v5622_v60, 0.0 }
 0x5ac   :  { %v9001_v63 = vpop.eup %9000 }
 0x5ad   :  { %v5608_v38 = vmul.f32 0.6931472, %v9001_v63 }
 0x5af   :  { %v5609_v19 = vsel %vm5482_vm4, %v5608_v38, 0.0 }
 0x5b0   :  { %5610 = vadd.xlane.f32.xlu2 %v5609_v19  ;;  %5624 = vadd.xlane.f32.xlu0 %v5623_v8 }
 0x61b   :  { %v5485_v31 = vpop.xlane.xlu0 %5484 }
 0x61c   :  { %v5486_v61 = vrot.slane %v5485_v31, 4 }
 0x61e   :  { %v5487_v49 = vadd.f32 %v5486_v61, %v5485_v31 }
 0x620   :  { %v5488_v59 = vrot.slane %v5487_v49, 2 }
 0x622   :  { %v5489_v52 = vadd.f32 %v5488_v59, %v5487_v49 }
 0x623   :  { %v5611_v13 = vpop.xlane.xlu2 %5610  ;;  %v5625_v14 = vpop.xlane.xlu0 %5624 }
 0x624   :  { %v5612_v15 = vrot.slane %v5611_v13, 4  ;;  %v5626_v27 = vrot.slane %v5625_v14, 4  ;;  %v5490_v16 = vrot.slane %v5489_v52, 1 }
 0x626   :  { %v5613_v12 = vadd.f32 %v5612_v15, %v5611_v13  ;;  %v5627_v62 = vadd.f32 %v5626_v27, %v5625_v14  ;;  %v5491_v11 = vadd.f32 %v5490_v16, %v5489_v52 }
 0x628   :  { %v5614_v21 = vrot.slane %v5613_v12, 2  ;;  %v5628_v24 = vrot.slane %v5627_v62, 2  ;;  %8961 = vpush %v5491_v11 }
 0x629   :  { %8963 = vpush %v5506_v42 }
 0x62a   :  { %v5615_v28 = vadd.f32 %v5614_v21, %v5613_v12  ;;  %v5629_v29 = vadd.f32 %v5628_v24, %v5627_v62 }
 0x62c   :  { %v5616_v6 = vrot.slane %v5615_v28, 1  ;;  %v5630_v30 = vrot.slane %v5629_v29, 1 }
 0x62e   :  { %v5617_v46 = vadd.f32 %v5616_v6, %v5615_v28  ;;  %v5631_v55 = vadd.f32 %v5630_v30, %v5629_v29 }
 0x630   :  { %8965 = vpush %v5617_v46 }
 0x631   :  { %8967 = vpush %v5631_v55 }
 0x659   :  { %s8962_s8 = spop %8961 }
 0x65a   :  { %s5493_s26 = ssub.f32 0.0, %s8962_s8  ;;  %s8964_s27 = spop %8963 }
 0x65b   :  { %s5508_s5 = ssub.f32 0.0, %s8964_s27 }
 0x65c   :  { %5635 = sst [smem:[#allocation2]] %s5493_s26 }
 0x65d   :  { %5637 = sst [smem:[#allocation2 + $0x1]] %s5508_s5 }
 0x661   :  { %s8966_s10 = spop %8965 }
 0x662   :  { %s5619_s11 = ssub.f32 0.0, %s8966_s10  ;;  %s8968_s12 = spop %8967 }
 0x663   :  { %s5633_s13 = ssub.f32 0.0, %s8968_s12 }
 0x664   :  { %5639 = sst [smem:[#allocation2 + $0x2]] %s5619_s11 }
 0x665   :  { %5641 = sst [smem:[#allocation2 + $0x3]] %s5633_s13 }
 0x666   :  { %5650 = dma.smem_to_vmem %s9016_s14, 16, %s5648_s30, [#allocation3]  }
 0x667   :  { %9014 = dma.done.wait [#allocation3], 16  }
 0x668   :  { %9015 = vsyncadd [#allocation3], 4294967280 }
 0x669   :  { %5655 = sfence }
 0x66a   :  { %5656 = vsyncpa [#allocation3], 1 }

</bundles_post_ra>
